<compile_context>
chip_gen: v7x
topology: tpu7x:2x2x1
jax: 0.10.0
libtpu: 0.0.40
codegen_flags: <defaults>
</compile_context>

<pallas_src>
import numpy as np
import jax
import jax.numpy as jnp
from jax import lax
from jax.experimental import pallas as pl
from jax.experimental.pallas import tpu as pltpu


# ------------------------------ fused kernel -------------------------------- #

def _pnet_dims(H0, W0):
    H1, V1 = H0 - 2, W0 - 2                  # conv1: rows / valid cols (row width W0)
    Hp, Wp = -(-H1 // 2), -(-V1 // 2)        # ceil-mode 2x2/2 maxpool
    H2, V2 = Hp - 2, Wp - 2                  # conv2 (row width Wp)
    H3, V3 = H2 - 2, V2 - 2                  # conv3 (row width Wp)
    return H1, V1, Hp, Wp, H2, V2, H3, V3


def _make_pnet_kernel(H0, W0, C0, C1, C2, C3):
    H1, V1, Hp, Wp, H2, V2, H3, V3 = _pnet_dims(H0, W0)
    M1, M2, M3 = H1 * W0, H2 * Wp, H3 * Wp   # matmul M sizes per layer
    R1 = (H1 + (H1 & 1)) * W0                # conv1 scratch rows (+pad row if H1 odd)
    RP = Hp * Wp + 8                         # pooled scratch rows (+slab-read slack)
    R2 = H2 * Wp + 8                         # conv2 scratch rows (+slab-read slack)

    def conv3x3_prelu(read, w_ref, b_ref, a_ref, row_w, m, cout):
        # read(off, m) -> contiguous flattened (m, Cin) slab of the input buffer.
        acc = jnp.zeros((m, cout), jnp.float32)
        for t in range(9):
            dh, dw = t // 3, t % 3
            acc = acc + jnp.dot(read(dh * row_w + dw, m), w_ref[t],
                                preferred_element_type=jnp.float32)
        y = acc + b_ref[:, :]
        return jnp.where(y > 0, y, y * a_ref[:, :])           # PReLU

    def kernel(x_ref, w1_ref, b1_ref, a1_ref, w2_ref, b2_ref, a2_ref,
               w3_ref, b3_ref, a3_ref, wh_ref, bh_ref, out_ref,
               c1_ref, p1_ref, c2_ref):
        # Keep the slab-read slack finite (it only ever feeds garbage columns).
        p1_ref[pl.ds(Hp * Wp, RP - Hp * Wp), :] = jnp.zeros((RP - Hp * Wp, C1),
                                                            jnp.float32)
        c2_ref[pl.ds(H2 * Wp, R2 - H2 * Wp), :] = jnp.zeros((R2 - H2 * Wp, C2),
                                                            jnp.float32)
        if H1 & 1:  # ceil-mode pool needs a -inf row when conv1 height is odd
            c1_ref[pl.ds(H1 * W0, W0), :] = jnp.full((W0, C1), -jnp.inf, jnp.float32)

        # ---- conv1 (3x3, C0->C1) + PReLU: 9 full-width slab matmuls ---------
        c1_ref[pl.ds(0, M1), :] = conv3x3_prelu(
            lambda off, m: x_ref[0, pl.ds(off, m), :],
            w1_ref, b1_ref, a1_ref, W0, M1, C1)

        # ---- 2x2 stride-2 ceil-mode maxpool: one pooled row per step --------
        npair = V1 // 2                      # pooled cols that have a right neighbour
        for i in range(Hp):
            e0, e1 = 2 * i * W0, (2 * i + 1) * W0
            ev = jnp.maximum(c1_ref[pl.ds(e0, Wp, stride=2), :],
                             c1_ref[pl.ds(e1, Wp, stride=2), :])
            if V1 % 2 == 0:
                od = jnp.maximum(c1_ref[pl.ds(e0 + 1, Wp, stride=2), :],
                                 c1_ref[pl.ds(e1 + 1, Wp, stride=2), :])
                p1_ref[pl.ds(i * Wp, Wp), :] = jnp.maximum(ev, od)
            else:
                p1_ref[pl.ds(i * Wp, Wp), :] = ev            # last col: no pair
                if npair:
                    od = jnp.maximum(c1_ref[pl.ds(e0 + 1, npair, stride=2), :],
                                     c1_ref[pl.ds(e1 + 1, npair, stride=2), :])
                    p1_ref[pl.ds(i * Wp, npair), :] = jnp.maximum(ev[:npair, :], od)

        # ---- conv2 (3x3, C1->C2) + PReLU ------------------------------------
        c2_ref[pl.ds(0, M2), :] = conv3x3_prelu(
            lambda off, m: p1_ref[pl.ds(off, m), :],
            w2_ref, b2_ref, a2_ref, Wp, M2, C2)

        # ---- conv3 (3x3, C2->C3) + PReLU (kept in registers) ----------------
        feat = conv3x3_prelu(
            lambda off, m: c2_ref[pl.ds(off, m), :],
            w3_ref, b3_ref, a3_ref, Wp, M3, C3)

        # ---- fused 1x1 heads: cols 0..3 bbox reg, col 4 = logit1 - logit0 ----
        r = jnp.dot(feat, wh_ref[:, :],
                    preferred_element_type=jnp.float32) + bh_ref[:, :]
        prob = 1.0 / (1.0 + jnp.exp(-r))     # sigmoid == softmax(.)[..., 1] exactly
        col = lax.broadcasted_iota(jnp.int32, r.shape, 1)
        out_ref[0, :, :] = jnp.where(col == 4, prob, r)

    scratch = [pltpu.VMEM((R1, C1), jnp.float32),
               pltpu.VMEM((RP, C1), jnp.float32),
               pltpu.VMEM((R2, C2), jnp.float32)]
    return kernel, scratch, (M3, Wp, H3, V3)


# ------------------------------- PNet forward -------------------------------- #

def pnet_forward(x_nchw, p):
    """x_nchw: (N, 3, H, W) float32 -> (reg: (N, 4, H', W'), prob: (N, H', W'))."""
    N, C0, H0, W0 = x_nchw.shape
    C1, C2, C3 = p['w1'].shape[0], p['w2'].shape[0], p['w3'].shape[0]
    kernel, scratch, (M3, Wp, H3, V3) = _make_pnet_kernel(H0, W0, C0, C1, C2, C3)

    # NCHW -> per-image flattened channels-last (H*W, C), with a few slack rows so
    # the contiguous full-width slab reads (tap offsets up to 2*W0+2) stay in bounds.
    x = jnp.transpose(x_nchw, (0, 2, 3, 1)).astype(jnp.float32)
    x = x.reshape(N, H0 * W0, C0)
    x = jnp.pad(x, ((0, 0), (0, 8), (0, 0)))
    L0 = H0 * W0 + 8

    def taps(w):  # (O, I, 3, 3) -> (9, I, O), tap index t = dh*3 + dw
        return jnp.transpose(w, (2, 3, 1, 0)).reshape(9, w.shape[1], w.shape[0])

    w1, w2, w3 = taps(p['w1']), taps(p['w2']), taps(p['w3'])

    # Fuse the two 1x1 heads: cols 0..3 = bbox regression, col 4 = class-logit diff.
    w41 = p['w41'][:, :, 0, 0]                                # (2, C3)
    w42 = p['w42'][:, :, 0, 0]                                # (4, C3)
    wh = jnp.zeros((C3, 8), jnp.float32)
    wh = wh.at[:, 0:4].set(jnp.transpose(w42))
    wh = wh.at[:, 4].set(w41[1] - w41[0])
    bh = jnp.zeros((1, 8), jnp.float32)
    bh = bh.at[0, 0:4].set(p['b42'])
    bh = bh.at[0, 4].set(p['b41'][1] - p['b41'][0])

    def full(*shape):
        return pl.BlockSpec(shape, lambda b: (0,) * len(shape))

    out = pl.pallas_call(
        kernel,
        out_shape=jax.ShapeDtypeStruct((N, M3, 8), jnp.float32),
        grid=(N,),
        in_specs=[
            pl.BlockSpec((1, L0, C0), lambda b: (b, 0, 0)),
            full(9, C0, C1), full(1, C1), full(1, C1),
            full(9, C1, C2), full(1, C2), full(1, C2),
            full(9, C2, C3), full(1, C3), full(1, C3),
            full(C3, 8), full(1, 8),
        ],
        out_specs=pl.BlockSpec((1, M3, 8), lambda b: (b, 0, 0)),
        scratch_shapes=scratch,
        compiler_params=pltpu.CompilerParams(dimension_semantics=("parallel",)),
    )(x, w1, p['b1'][None, :], p['a1'][None, :],
      w2, p['b2'][None, :], p['a2'][None, :],
      w3, p['b3'][None, :], p['a3'][None, :], wh, bh)

    out = out.reshape(N, H3, Wp, 8)[:, :, :V3, :]             # drop garbage columns
    reg = jnp.transpose(out[..., 0:4], (0, 3, 1, 2))          # (N, 4, H', W')
    prob = out[..., 4]                                        # softmax(a)[:, 1]
    return reg, prob


# ---------------------- pure-JAX reference (for checking) -------------------- #

def ref_forward(x_nchw, p):
    def conv(x, w, b):
        y = lax.conv_general_dilated(x, w, (1, 1), 'VALID',
                                     dimension_numbers=('NCHW', 'OIHW', 'NCHW'))
        return y + b[None, :, None, None]

    def prelu(x, a):
        return jnp.where(x > 0, x, x * a[None, :, None, None])

    x = prelu(conv(x_nchw, p['w1'], p['b1']), p['a1'])
    ph = (-x.shape[2]) % 2
    pw = (-x.shape[3]) % 2
    xp = jnp.pad(x, ((0, 0), (0, 0), (0, ph), (0, pw)), constant_values=-jnp.inf)
    x = lax.reduce_window(xp, -jnp.inf, lax.max, (1, 1, 2, 2), (1, 1, 2, 2), 'VALID')
    x = prelu(conv(x, p['w2'], p['b2']), p['a2'])
    x = prelu(conv(x, p['w3'], p['b3']), p['a3'])
    a = jax.nn.softmax(conv(x, p['w41'], p['b41']), axis=1)
    b = conv(x, p['w42'], p['b42'])
    return b, a[:, 1]


# ------------------------------ deterministic init --------------------------- #

def init_params(key):
    ks = jax.random.split(key, 13)

    def w(k, shape, scale=0.1):
        return scale * jax.random.normal(k, shape, jnp.float32)

    return dict(
        w1=w(ks[0], (10, 3, 3, 3)), b1=w(ks[1], (10,)),
        a1=jax.random.uniform(ks[2], (10,), jnp.float32, 0.1, 0.5),
        w2=w(ks[3], (16, 10, 3, 3)), b2=w(ks[4], (16,)),
        a2=jax.random.uniform(ks[5], (16,), jnp.float32, 0.1, 0.5),
        w3=w(ks[6], (32, 16, 3, 3)), b3=w(ks[7], (32,)),
        a3=jax.random.uniform(ks[8], (32,), jnp.float32, 0.1, 0.5),
        w41=w(ks[9], (2, 32, 1, 1)), b41=w(ks[10], (2,)),
        w42=w(ks[11], (4, 32, 1, 1)), b42=w(ks[12], (4,)),
    )


if __name__ == "__main__":
    key = jax.random.PRNGKey(0)
    pkey, xkey = jax.random.split(key)
    params = init_params(pkey)
    x = jax.random.normal(xkey, (2, 3, 16, 16), jnp.float32)   # N=2, C=3, 16x16

    b_out, prob = jax.block_until_ready(pnet_forward(x, params))

    b_ref, prob_ref = ref_forward(x, params)
    np.testing.assert_allclose(np.asarray(b_out), np.asarray(b_ref),
                               rtol=1e-3, atol=1e-3)
    np.testing.assert_allclose(np.asarray(prob), np.asarray(prob_ref),
                               rtol=1e-3, atol=1e-3)
    assert b_out.shape == (2, 4, 3, 3) and prob.shape == (2, 3, 3)
    print("KERNEL_OK")
</pallas_src>

<mosaic_0001>
module attributes {stable_mosaic.version = 11 : i64} {
  func.func @kernel(%arg0: i32, %arg1: memref<1x264x3xf32, #tpu.memory_space<vmem>>, %arg2: memref<9x3x10xf32, #tpu.memory_space<vmem>>, %arg3: memref<1x10xf32, #tpu.memory_space<vmem>>, %arg4: memref<1x10xf32, #tpu.memory_space<vmem>>, %arg5: memref<9x10x16xf32, #tpu.memory_space<vmem>>, %arg6: memref<1x16xf32, #tpu.memory_space<vmem>>, %arg7: memref<1x16xf32, #tpu.memory_space<vmem>>, %arg8: memref<9x16x32xf32, #tpu.memory_space<vmem>>, %arg9: memref<1x32xf32, #tpu.memory_space<vmem>>, %arg10: memref<1x32xf32, #tpu.memory_space<vmem>>, %arg11: memref<32x8xf32, #tpu.memory_space<vmem>>, %arg12: memref<1x8xf32, #tpu.memory_space<vmem>>, %arg13: memref<1x21x8xf32, #tpu.memory_space<vmem>>, %arg14: memref<224x10xf32, #tpu.memory_space<vmem>>, %arg15: memref<57x10xf32, #tpu.memory_space<vmem>>, %arg16: memref<43x16xf32, #tpu.memory_space<vmem>>) attributes {dimension_semantics = [#tpu.dimension_semantics<parallel>], iteration_bounds = array<i64: 2>, scalar_prefetch = 0 : i64, scratch_operands = 3 : i64, tpu.core_type = #tpu.core_type<tc>, window_params = [{transform_indices = @transform_0, window_bounds = array<i64: 1, 264, 3>}, {pipeline_mode = #tpu.pipeline_mode<synchronous>, transform_indices = @transform_1, window_bounds = array<i64: 9, 3, 10>}, {pipeline_mode = #tpu.pipeline_mode<synchronous>, transform_indices = @transform_2, window_bounds = array<i64: 1, 10>}, {pipeline_mode = #tpu.pipeline_mode<synchronous>, transform_indices = @transform_3, window_bounds = array<i64: 1, 10>}, {pipeline_mode = #tpu.pipeline_mode<synchronous>, transform_indices = @transform_4, window_bounds = array<i64: 9, 10, 16>}, {pipeline_mode = #tpu.pipeline_mode<synchronous>, transform_indices = @transform_5, window_bounds = array<i64: 1, 16>}, {pipeline_mode = #tpu.pipeline_mode<synchronous>, transform_indices = @transform_6, window_bounds = array<i64: 1, 16>}, {pipeline_mode = #tpu.pipeline_mode<synchronous>, transform_indices = @transform_7, window_bounds = array<i64: 9, 16, 32>}, {pipeline_mode = #tpu.pipeline_mode<synchronous>, transform_indices = @transform_8, window_bounds = array<i64: 1, 32>}, {pipeline_mode = #tpu.pipeline_mode<synchronous>, transform_indices = @transform_9, window_bounds = array<i64: 1, 32>}, {pipeline_mode = #tpu.pipeline_mode<synchronous>, transform_indices = @transform_10, window_bounds = array<i64: 32, 8>}, {pipeline_mode = #tpu.pipeline_mode<synchronous>, transform_indices = @transform_11, window_bounds = array<i64: 1, 8>}, {transform_indices = @transform_12, window_bounds = array<i64: 1, 21, 8>}]} {
    %cst = arith.constant 0.000000e+00 : f32
    %0 = vector.broadcast %cst : f32 to vector<8x10xf32>
    %c49 = arith.constant 49 : index
    %c0 = arith.constant 0 : index
    %1 = vector.load %arg15[%c49, %c0] : memref<57x10xf32, #tpu.memory_space<vmem>>, vector<8x10xf32>
    tpu.vector_store %arg15[%c49, %c0], %0 {strides = array<i32>} : memref<57x10xf32, #tpu.memory_space<vmem>>, vector<8x10xf32>,
    %cst_0 = arith.constant 0.000000e+00 : f32
    %2 = vector.broadcast %cst_0 : f32 to vector<8x16xf32>
    %c35 = arith.constant 35 : index
    %c0_1 = arith.constant 0 : index
    %3 = vector.load %arg16[%c35, %c0_1] : memref<43x16xf32, #tpu.memory_space<vmem>>, vector<8x16xf32>
    tpu.vector_store %arg16[%c35, %c0_1], %2 {strides = array<i32>} : memref<43x16xf32, #tpu.memory_space<vmem>>, vector<8x16xf32>,
    %cst_2 = arith.constant 0.000000e+00 : f32
    %4 = vector.broadcast %cst_2 : f32 to vector<224x10xf32>
    %c0_3 = arith.constant 0 : index
    %c0_4 = arith.constant 0 : index
    %c0_5 = arith.constant 0 : index
    %5 = vector.load %arg1[%c0_3, %c0_4, %c0_5] : memref<1x264x3xf32, #tpu.memory_space<vmem>>, vector<1x224x3xf32>
    %6 = vector.shape_cast %5 : vector<1x224x3xf32> to vector<224x3xf32>
    %c0_6 = arith.constant 0 : index
    %c0_7 = arith.constant 0 : index
    %c0_8 = arith.constant 0 : index
    %7 = vector.load %arg2[%c0_6, %c0_7, %c0_8] : memref<9x3x10xf32, #tpu.memory_space<vmem>>, vector<1x3x10xf32>
    %8 = vector.shape_cast %7 : vector<1x3x10xf32> to vector<3x10xf32>
    %cst_9 = arith.constant dense<0.000000e+00> : vector<224x10xf32>
    %9 = tpu.matmul %6, %8, %cst_9 {dimension_numbers = #tpu.dot_dimension_numbers<[1], [0], [0], [1], [0, 0, 1, 1], [], []>} : vector<224x3xf32>, vector<3x10xf32>, vector<224x10xf32> -> vector<224x10xf32>
    %10 = arith.addf %4, %9 : vector<224x10xf32>
    %c0_10 = arith.constant 0 : index
    %c1 = arith.constant 1 : index
    %c0_11 = arith.constant 0 : index
    %11 = vector.load %arg1[%c0_10, %c1, %c0_11] : memref<1x264x3xf32, #tpu.memory_space<vmem>>, vector<1x224x3xf32>
    %12 = vector.shape_cast %11 : vector<1x224x3xf32> to vector<224x3xf32>
    %c1_12 = arith.constant 1 : index
    %c0_13 = arith.constant 0 : index
    %c0_14 = arith.constant 0 : index
    %13 = vector.load %arg2[%c1_12, %c0_13, %c0_14] : memref<9x3x10xf32, #tpu.memory_space<vmem>>, vector<1x3x10xf32>
    %14 = vector.shape_cast %13 : vector<1x3x10xf32> to vector<3x10xf32>
    %cst_15 = arith.constant dense<0.000000e+00> : vector<224x10xf32>
    %15 = tpu.matmul %12, %14, %cst_15 {dimension_numbers = #tpu.dot_dimension_numbers<[1], [0], [0], [1], [0, 0, 1, 1], [], []>} : vector<224x3xf32>, vector<3x10xf32>, vector<224x10xf32> -> vector<224x10xf32>
    %16 = arith.addf %10, %15 : vector<224x10xf32>
    %c0_16 = arith.constant 0 : index
    %c2 = arith.constant 2 : index
    %c0_17 = arith.constant 0 : index
    %17 = vector.load %arg1[%c0_16, %c2, %c0_17] : memref<1x264x3xf32, #tpu.memory_space<vmem>>, vector<1x224x3xf32>
    %18 = vector.shape_cast %17 : vector<1x224x3xf32> to vector<224x3xf32>
    %c2_18 = arith.constant 2 : index
    %c0_19 = arith.constant 0 : index
    %c0_20 = arith.constant 0 : index
    %19 = vector.load %arg2[%c2_18, %c0_19, %c0_20] : memref<9x3x10xf32, #tpu.memory_space<vmem>>, vector<1x3x10xf32>
    %20 = vector.shape_cast %19 : vector<1x3x10xf32> to vector<3x10xf32>
    %cst_21 = arith.constant dense<0.000000e+00> : vector<224x10xf32>
    %21 = tpu.matmul %18, %20, %cst_21 {dimension_numbers = #tpu.dot_dimension_numbers<[1], [0], [0], [1], [0, 0, 1, 1], [], []>} : vector<224x3xf32>, vector<3x10xf32>, vector<224x10xf32> -> vector<224x10xf32>
    %22 = arith.addf %16, %21 : vector<224x10xf32>
    %c0_22 = arith.constant 0 : index
    %c16 = arith.constant 16 : index
    %c0_23 = arith.constant 0 : index
    %23 = vector.load %arg1[%c0_22, %c16, %c0_23] : memref<1x264x3xf32, #tpu.memory_space<vmem>>, vector<1x224x3xf32>
    %24 = vector.shape_cast %23 : vector<1x224x3xf32> to vector<224x3xf32>
    %c3 = arith.constant 3 : index
    %c0_24 = arith.constant 0 : index
    %c0_25 = arith.constant 0 : index
    %25 = vector.load %arg2[%c3, %c0_24, %c0_25] : memref<9x3x10xf32, #tpu.memory_space<vmem>>, vector<1x3x10xf32>
    %26 = vector.shape_cast %25 : vector<1x3x10xf32> to vector<3x10xf32>
    %cst_26 = arith.constant dense<0.000000e+00> : vector<224x10xf32>
    %27 = tpu.matmul %24, %26, %cst_26 {dimension_numbers = #tpu.dot_dimension_numbers<[1], [0], [0], [1], [0, 0, 1, 1], [], []>} : vector<224x3xf32>, vector<3x10xf32>, vector<224x10xf32> -> vector<224x10xf32>
    %28 = arith.addf %22, %27 : vector<224x10xf32>
    %c0_27 = arith.constant 0 : index
    %c17 = arith.constant 17 : index
    %c0_28 = arith.constant 0 : index
    %29 = vector.load %arg1[%c0_27, %c17, %c0_28] : memref<1x264x3xf32, #tpu.memory_space<vmem>>, vector<1x224x3xf32>
    %30 = vector.shape_cast %29 : vector<1x224x3xf32> to vector<224x3xf32>
    %c4 = arith.constant 4 : index
    %c0_29 = arith.constant 0 : index
    %c0_30 = arith.constant 0 : index
    %31 = vector.load %arg2[%c4, %c0_29, %c0_30] : memref<9x3x10xf32, #tpu.memory_space<vmem>>, vector<1x3x10xf32>
    %32 = vector.shape_cast %31 : vector<1x3x10xf32> to vector<3x10xf32>
    %cst_31 = arith.constant dense<0.000000e+00> : vector<224x10xf32>
    %33 = tpu.matmul %30, %32, %cst_31 {dimension_numbers = #tpu.dot_dimension_numbers<[1], [0], [0], [1], [0, 0, 1, 1], [], []>} : vector<224x3xf32>, vector<3x10xf32>, vector<224x10xf32> -> vector<224x10xf32>
    %34 = arith.addf %28, %33 : vector<224x10xf32>
    %c0_32 = arith.constant 0 : index
    %c18 = arith.constant 18 : index
    %c0_33 = arith.constant 0 : index
    %35 = vector.load %arg1[%c0_32, %c18, %c0_33] : memref<1x264x3xf32, #tpu.memory_space<vmem>>, vector<1x224x3xf32>
    %36 = vector.shape_cast %35 : vector<1x224x3xf32> to vector<224x3xf32>
    %c5 = arith.constant 5 : index
    %c0_34 = arith.constant 0 : index
    %c0_35 = arith.constant 0 : index
    %37 = vector.load %arg2[%c5, %c0_34, %c0_35] : memref<9x3x10xf32, #tpu.memory_space<vmem>>, vector<1x3x10xf32>
    %38 = vector.shape_cast %37 : vector<1x3x10xf32> to vector<3x10xf32>
    %cst_36 = arith.constant dense<0.000000e+00> : vector<224x10xf32>
    %39 = tpu.matmul %36, %38, %cst_36 {dimension_numbers = #tpu.dot_dimension_numbers<[1], [0], [0], [1], [0, 0, 1, 1], [], []>} : vector<224x3xf32>, vector<3x10xf32>, vector<224x10xf32> -> vector<224x10xf32>
    %40 = arith.addf %34, %39 : vector<224x10xf32>
    %c0_37 = arith.constant 0 : index
    %c32 = arith.constant 32 : index
    %c0_38 = arith.constant 0 : index
    %41 = vector.load %arg1[%c0_37, %c32, %c0_38] : memref<1x264x3xf32, #tpu.memory_space<vmem>>, vector<1x224x3xf32>
    %42 = vector.shape_cast %41 : vector<1x224x3xf32> to vector<224x3xf32>
    %c6 = arith.constant 6 : index
    %c0_39 = arith.constant 0 : index
    %c0_40 = arith.constant 0 : index
    %43 = vector.load %arg2[%c6, %c0_39, %c0_40] : memref<9x3x10xf32, #tpu.memory_space<vmem>>, vector<1x3x10xf32>
    %44 = vector.shape_cast %43 : vector<1x3x10xf32> to vector<3x10xf32>
    %cst_41 = arith.constant dense<0.000000e+00> : vector<224x10xf32>
    %45 = tpu.matmul %42, %44, %cst_41 {dimension_numbers = #tpu.dot_dimension_numbers<[1], [0], [0], [1], [0, 0, 1, 1], [], []>} : vector<224x3xf32>, vector<3x10xf32>, vector<224x10xf32> -> vector<224x10xf32>
    %46 = arith.addf %40, %45 : vector<224x10xf32>
    %c0_42 = arith.constant 0 : index
    %c33 = arith.constant 33 : index
    %c0_43 = arith.constant 0 : index
    %47 = vector.load %arg1[%c0_42, %c33, %c0_43] : memref<1x264x3xf32, #tpu.memory_space<vmem>>, vector<1x224x3xf32>
    %48 = vector.shape_cast %47 : vector<1x224x3xf32> to vector<224x3xf32>
    %c7 = arith.constant 7 : index
    %c0_44 = arith.constant 0 : index
    %c0_45 = arith.constant 0 : index
    %49 = vector.load %arg2[%c7, %c0_44, %c0_45] : memref<9x3x10xf32, #tpu.memory_space<vmem>>, vector<1x3x10xf32>
    %50 = vector.shape_cast %49 : vector<1x3x10xf32> to vector<3x10xf32>
    %cst_46 = arith.constant dense<0.000000e+00> : vector<224x10xf32>
    %51 = tpu.matmul %48, %50, %cst_46 {dimension_numbers = #tpu.dot_dimension_numbers<[1], [0], [0], [1], [0, 0, 1, 1], [], []>} : vector<224x3xf32>, vector<3x10xf32>, vector<224x10xf32> -> vector<224x10xf32>
    %52 = arith.addf %46, %51 : vector<224x10xf32>
    %c0_47 = arith.constant 0 : index
    %c34 = arith.constant 34 : index
    %c0_48 = arith.constant 0 : index
    %53 = vector.load %arg1[%c0_47, %c34, %c0_48] : memref<1x264x3xf32, #tpu.memory_space<vmem>>, vector<1x224x3xf32>
    %54 = vector.shape_cast %53 : vector<1x224x3xf32> to vector<224x3xf32>
    %c8 = arith.constant 8 : index
    %c0_49 = arith.constant 0 : index
    %c0_50 = arith.constant 0 : index
    %55 = vector.load %arg2[%c8, %c0_49, %c0_50] : memref<9x3x10xf32, #tpu.memory_space<vmem>>, vector<1x3x10xf32>
    %56 = vector.shape_cast %55 : vector<1x3x10xf32> to vector<3x10xf32>
    %cst_51 = arith.constant dense<0.000000e+00> : vector<224x10xf32>
    %57 = tpu.matmul %54, %56, %cst_51 {dimension_numbers = #tpu.dot_dimension_numbers<[1], [0], [0], [1], [0, 0, 1, 1], [], []>} : vector<224x3xf32>, vector<3x10xf32>, vector<224x10xf32> -> vector<224x10xf32>
    %58 = arith.addf %52, %57 : vector<224x10xf32>
    %c0_52 = arith.constant 0 : index
    %c0_53 = arith.constant 0 : index
    %59 = vector.load %arg3[%c0_52, %c0_53] : memref<1x10xf32, #tpu.memory_space<vmem>>, vector<1x10xf32>
    %60 = vector.broadcast %59 : vector<1x10xf32> to vector<224x10xf32>
    %61 = arith.addf %58, %60 : vector<224x10xf32>
    %cst_54 = arith.constant 0.000000e+00 : f32
    %62 = vector.broadcast %cst_54 : f32 to vector<224x10xf32>
    %63 = arith.cmpf ogt, %61, %62 : vector<224x10xf32>
    %c0_55 = arith.constant 0 : index
    %c0_56 = arith.constant 0 : index
    %64 = vector.load %arg4[%c0_55, %c0_56] : memref<1x10xf32, #tpu.memory_space<vmem>>, vector<1x10xf32>
    %65 = vector.broadcast %64 : vector<1x10xf32> to vector<224x10xf32>
    %66 = arith.mulf %61, %65 : vector<224x10xf32>
    %67 = arith.select %63, %61, %66 : vector<224x10xi1>, vector<224x10xf32>
    %c0_57 = arith.constant 0 : index
    %c0_58 = arith.constant 0 : index
    %68 = vector.load %arg14[%c0_57, %c0_58] : memref<224x10xf32, #tpu.memory_space<vmem>>, vector<224x10xf32>
    tpu.vector_store %arg14[%c0_57, %c0_58], %67 {strides = array<i32>} : memref<224x10xf32, #tpu.memory_space<vmem>>, vector<224x10xf32>,
    %c0_59 = arith.constant 0 : index
    %c0_60 = arith.constant 0 : index
    %69 = tpu.strided_load %arg14[%c0_59, %c0_60] {strides = array<i32: 2, 1>} : memref<224x10xf32, #tpu.memory_space<vmem>>, vector<7x10xf32>
    %c16_61 = arith.constant 16 : index
    %c0_62 = arith.constant 0 : index
    %70 = tpu.strided_load %arg14[%c16_61, %c0_62] {strides = array<i32: 2, 1>} : memref<224x10xf32, #tpu.memory_space<vmem>>, vector<7x10xf32>
    %71 = arith.maximumf %69, %70 : vector<7x10xf32>
    %c1_63 = arith.constant 1 : index
    %c0_64 = arith.constant 0 : index
    %72 = tpu.strided_load %arg14[%c1_63, %c0_64] {strides = array<i32: 2, 1>} : memref<224x10xf32, #tpu.memory_space<vmem>>, vector<7x10xf32>
    %c17_65 = arith.constant 17 : index
    %c0_66 = arith.constant 0 : index
    %73 = tpu.strided_load %arg14[%c17_65, %c0_66] {strides = array<i32: 2, 1>} : memref<224x10xf32, #tpu.memory_space<vmem>>, vector<7x10xf32>
    %74 = arith.maximumf %72, %73 : vector<7x10xf32>
    %75 = arith.maximumf %71, %74 : vector<7x10xf32>
    %c0_67 = arith.constant 0 : index
    %c0_68 = arith.constant 0 : index
    %76 = vector.load %arg15[%c0_67, %c0_68] : memref<57x10xf32, #tpu.memory_space<vmem>>, vector<7x10xf32>
    tpu.vector_store %arg15[%c0_67, %c0_68], %75 {strides = array<i32>} : memref<57x10xf32, #tpu.memory_space<vmem>>, vector<7x10xf32>,
    %c32_69 = arith.constant 32 : index
    %c0_70 = arith.constant 0 : index
    %77 = tpu.strided_load %arg14[%c32_69, %c0_70] {strides = array<i32: 2, 1>} : memref<224x10xf32, #tpu.memory_space<vmem>>, vector<7x10xf32>
    %c48 = arith.constant 48 : index
    %c0_71 = arith.constant 0 : index
    %78 = tpu.strided_load %arg14[%c48, %c0_71] {strides = array<i32: 2, 1>} : memref<224x10xf32, #tpu.memory_space<vmem>>, vector<7x10xf32>
    %79 = arith.maximumf %77, %78 : vector<7x10xf32>
    %c33_72 = arith.constant 33 : index
    %c0_73 = arith.constant 0 : index
    %80 = tpu.strided_load %arg14[%c33_72, %c0_73] {strides = array<i32: 2, 1>} : memref<224x10xf32, #tpu.memory_space<vmem>>, vector<7x10xf32>
    %c49_74 = arith.constant 49 : index
    %c0_75 = arith.constant 0 : index
    %81 = tpu.strided_load %arg14[%c49_74, %c0_75] {strides = array<i32: 2, 1>} : memref<224x10xf32, #tpu.memory_space<vmem>>, vector<7x10xf32>
    %82 = arith.maximumf %80, %81 : vector<7x10xf32>
    %83 = arith.maximumf %79, %82 : vector<7x10xf32>
    %c7_76 = arith.constant 7 : index
    %c0_77 = arith.constant 0 : index
    %84 = vector.load %arg15[%c7_76, %c0_77] : memref<57x10xf32, #tpu.memory_space<vmem>>, vector<7x10xf32>
    tpu.vector_store %arg15[%c7_76, %c0_77], %83 {strides = array<i32>} : memref<57x10xf32, #tpu.memory_space<vmem>>, vector<7x10xf32>,
    %c64 = arith.constant 64 : index
    %c0_78 = arith.constant 0 : index
    %85 = tpu.strided_load %arg14[%c64, %c0_78] {strides = array<i32: 2, 1>} : memref<224x10xf32, #tpu.memory_space<vmem>>, vector<7x10xf32>
    %c80 = arith.constant 80 : index
    %c0_79 = arith.constant 0 : index
    %86 = tpu.strided_load %arg14[%c80, %c0_79] {strides = array<i32: 2, 1>} : memref<224x10xf32, #tpu.memory_space<vmem>>, vector<7x10xf32>
    %87 = arith.maximumf %85, %86 : vector<7x10xf32>
    %c65 = arith.constant 65 : index
    %c0_80 = arith.constant 0 : index
    %88 = tpu.strided_load %arg14[%c65, %c0_80] {strides = array<i32: 2, 1>} : memref<224x10xf32, #tpu.memory_space<vmem>>, vector<7x10xf32>
    %c81 = arith.constant 81 : index
    %c0_81 = arith.constant 0 : index
    %89 = tpu.strided_load %arg14[%c81, %c0_81] {strides = array<i32: 2, 1>} : memref<224x10xf32, #tpu.memory_space<vmem>>, vector<7x10xf32>
    %90 = arith.maximumf %88, %89 : vector<7x10xf32>
    %91 = arith.maximumf %87, %90 : vector<7x10xf32>
    %c14 = arith.constant 14 : index
    %c0_82 = arith.constant 0 : index
    %92 = vector.load %arg15[%c14, %c0_82] : memref<57x10xf32, #tpu.memory_space<vmem>>, vector<7x10xf32>
    tpu.vector_store %arg15[%c14, %c0_82], %91 {strides = array<i32>} : memref<57x10xf32, #tpu.memory_space<vmem>>, vector<7x10xf32>,
    %c96 = arith.constant 96 : index
    %c0_83 = arith.constant 0 : index
    %93 = tpu.strided_load %arg14[%c96, %c0_83] {strides = array<i32: 2, 1>} : memref<224x10xf32, #tpu.memory_space<vmem>>, vector<7x10xf32>
    %c112 = arith.constant 112 : index
    %c0_84 = arith.constant 0 : index
    %94 = tpu.strided_load %arg14[%c112, %c0_84] {strides = array<i32: 2, 1>} : memref<224x10xf32, #tpu.memory_space<vmem>>, vector<7x10xf32>
    %95 = arith.maximumf %93, %94 : vector<7x10xf32>
    %c97 = arith.constant 97 : index
    %c0_85 = arith.constant 0 : index
    %96 = tpu.strided_load %arg14[%c97, %c0_85] {strides = array<i32: 2, 1>} : memref<224x10xf32, #tpu.memory_space<vmem>>, vector<7x10xf32>
    %c113 = arith.constant 113 : index
    %c0_86 = arith.constant 0 : index
    %97 = tpu.strided_load %arg14[%c113, %c0_86] {strides = array<i32: 2, 1>} : memref<224x10xf32, #tpu.memory_space<vmem>>, vector<7x10xf32>
    %98 = arith.maximumf %96, %97 : vector<7x10xf32>
    %99 = arith.maximumf %95, %98 : vector<7x10xf32>
    %c21 = arith.constant 21 : index
    %c0_87 = arith.constant 0 : index
    %100 = vector.load %arg15[%c21, %c0_87] : memref<57x10xf32, #tpu.memory_space<vmem>>, vector<7x10xf32>
    tpu.vector_store %arg15[%c21, %c0_87], %99 {strides = array<i32>} : memref<57x10xf32, #tpu.memory_space<vmem>>, vector<7x10xf32>,
    %c128 = arith.constant 128 : index
    %c0_88 = arith.constant 0 : index
    %101 = tpu.strided_load %arg14[%c128, %c0_88] {strides = array<i32: 2, 1>} : memref<224x10xf32, #tpu.memory_space<vmem>>, vector<7x10xf32>
    %c144 = arith.constant 144 : index
    %c0_89 = arith.constant 0 : index
    %102 = tpu.strided_load %arg14[%c144, %c0_89] {strides = array<i32: 2, 1>} : memref<224x10xf32, #tpu.memory_space<vmem>>, vector<7x10xf32>
    %103 = arith.maximumf %101, %102 : vector<7x10xf32>
    %c129 = arith.constant 129 : index
    %c0_90 = arith.constant 0 : index
    %104 = tpu.strided_load %arg14[%c129, %c0_90] {strides = array<i32: 2, 1>} : memref<224x10xf32, #tpu.memory_space<vmem>>, vector<7x10xf32>
    %c145 = arith.constant 145 : index
    %c0_91 = arith.constant 0 : index
    %105 = tpu.strided_load %arg14[%c145, %c0_91] {strides = array<i32: 2, 1>} : memref<224x10xf32, #tpu.memory_space<vmem>>, vector<7x10xf32>
    %106 = arith.maximumf %104, %105 : vector<7x10xf32>
    %107 = arith.maximumf %103, %106 : vector<7x10xf32>
    %c28 = arith.constant 28 : index
    %c0_92 = arith.constant 0 : index
    %108 = vector.load %arg15[%c28, %c0_92] : memref<57x10xf32, #tpu.memory_space<vmem>>, vector<7x10xf32>
    tpu.vector_store %arg15[%c28, %c0_92], %107 {strides = array<i32>} : memref<57x10xf32, #tpu.memory_space<vmem>>, vector<7x10xf32>,
    %c160 = arith.constant 160 : index
    %c0_93 = arith.constant 0 : index
    %109 = tpu.strided_load %arg14[%c160, %c0_93] {strides = array<i32: 2, 1>} : memref<224x10xf32, #tpu.memory_space<vmem>>, vector<7x10xf32>
    %c176 = arith.constant 176 : index
    %c0_94 = arith.constant 0 : index
    %110 = tpu.strided_load %arg14[%c176, %c0_94] {strides = array<i32: 2, 1>} : memref<224x10xf32, #tpu.memory_space<vmem>>, vector<7x10xf32>
    %111 = arith.maximumf %109, %110 : vector<7x10xf32>
    %c161 = arith.constant 161 : index
    %c0_95 = arith.constant 0 : index
    %112 = tpu.strided_load %arg14[%c161, %c0_95] {strides = array<i32: 2, 1>} : memref<224x10xf32, #tpu.memory_space<vmem>>, vector<7x10xf32>
    %c177 = arith.constant 177 : index
    %c0_96 = arith.constant 0 : index
    %113 = tpu.strided_load %arg14[%c177, %c0_96] {strides = array<i32: 2, 1>} : memref<224x10xf32, #tpu.memory_space<vmem>>, vector<7x10xf32>
    %114 = arith.maximumf %112, %113 : vector<7x10xf32>
    %115 = arith.maximumf %111, %114 : vector<7x10xf32>
    %c35_97 = arith.constant 35 : index
    %c0_98 = arith.constant 0 : index
    %116 = vector.load %arg15[%c35_97, %c0_98] : memref<57x10xf32, #tpu.memory_space<vmem>>, vector<7x10xf32>
    tpu.vector_store %arg15[%c35_97, %c0_98], %115 {strides = array<i32>} : memref<57x10xf32, #tpu.memory_space<vmem>>, vector<7x10xf32>,
    %c192 = arith.constant 192 : index
    %c0_99 = arith.constant 0 : index
    %117 = tpu.strided_load %arg14[%c192, %c0_99] {strides = array<i32: 2, 1>} : memref<224x10xf32, #tpu.memory_space<vmem>>, vector<7x10xf32>
    %c208 = arith.constant 208 : index
    %c0_100 = arith.constant 0 : index
    %118 = tpu.strided_load %arg14[%c208, %c0_100] {strides = array<i32: 2, 1>} : memref<224x10xf32, #tpu.memory_space<vmem>>, vector<7x10xf32>
    %119 = arith.maximumf %117, %118 : vector<7x10xf32>
    %c193 = arith.constant 193 : index
    %c0_101 = arith.constant 0 : index
    %120 = tpu.strided_load %arg14[%c193, %c0_101] {strides = array<i32: 2, 1>} : memref<224x10xf32, #tpu.memory_space<vmem>>, vector<7x10xf32>
    %c209 = arith.constant 209 : index
    %c0_102 = arith.constant 0 : index
    %121 = tpu.strided_load %arg14[%c209, %c0_102] {strides = array<i32: 2, 1>} : memref<224x10xf32, #tpu.memory_space<vmem>>, vector<7x10xf32>
    %122 = arith.maximumf %120, %121 : vector<7x10xf32>
    %123 = arith.maximumf %119, %122 : vector<7x10xf32>
    %c42 = arith.constant 42 : index
    %c0_103 = arith.constant 0 : index
    %124 = vector.load %arg15[%c42, %c0_103] : memref<57x10xf32, #tpu.memory_space<vmem>>, vector<7x10xf32>
    tpu.vector_store %arg15[%c42, %c0_103], %123 {strides = array<i32>} : memref<57x10xf32, #tpu.memory_space<vmem>>, vector<7x10xf32>,
    %cst_104 = arith.constant 0.000000e+00 : f32
    %125 = vector.broadcast %cst_104 : f32 to vector<35x16xf32>
    %c0_105 = arith.constant 0 : index
    %c0_106 = arith.constant 0 : index
    %126 = vector.load %arg15[%c0_105, %c0_106] : memref<57x10xf32, #tpu.memory_space<vmem>>, vector<35x10xf32>
    %c0_107 = arith.constant 0 : index
    %c0_108 = arith.constant 0 : index
    %c0_109 = arith.constant 0 : index
    %127 = vector.load %arg5[%c0_107, %c0_108, %c0_109] : memref<9x10x16xf32, #tpu.memory_space<vmem>>, vector<1x10x16xf32>
    %128 = vector.shape_cast %127 : vector<1x10x16xf32> to vector<10x16xf32>
    %cst_110 = arith.constant dense<0.000000e+00> : vector<35x16xf32>
    %129 = tpu.matmul %126, %128, %cst_110 {dimension_numbers = #tpu.dot_dimension_numbers<[1], [0], [0], [1], [0, 0, 1, 1], [], []>} : vector<35x10xf32>, vector<10x16xf32>, vector<35x16xf32> -> vector<35x16xf32>
    %130 = arith.addf %125, %129 : vector<35x16xf32>
    %c1_111 = arith.constant 1 : index
    %c0_112 = arith.constant 0 : index
    %131 = vector.load %arg15[%c1_111, %c0_112] : memref<57x10xf32, #tpu.memory_space<vmem>>, vector<35x10xf32>
    %c1_113 = arith.constant 1 : index
    %c0_114 = arith.constant 0 : index
    %c0_115 = arith.constant 0 : index
    %132 = vector.load %arg5[%c1_113, %c0_114, %c0_115] : memref<9x10x16xf32, #tpu.memory_space<vmem>>, vector<1x10x16xf32>
    %133 = vector.shape_cast %132 : vector<1x10x16xf32> to vector<10x16xf32>
    %cst_116 = arith.constant dense<0.000000e+00> : vector<35x16xf32>
    %134 = tpu.matmul %131, %133, %cst_116 {dimension_numbers = #tpu.dot_dimension_numbers<[1], [0], [0], [1], [0, 0, 1, 1], [], []>} : vector<35x10xf32>, vector<10x16xf32>, vector<35x16xf32> -> vector<35x16xf32>
    %135 = arith.addf %130, %134 : vector<35x16xf32>
    %c2_117 = arith.constant 2 : index
    %c0_118 = arith.constant 0 : index
    %136 = vector.load %arg15[%c2_117, %c0_118] : memref<57x10xf32, #tpu.memory_space<vmem>>, vector<35x10xf32>
    %c2_119 = arith.constant 2 : index
    %c0_120 = arith.constant 0 : index
    %c0_121 = arith.constant 0 : index
    %137 = vector.load %arg5[%c2_119, %c0_120, %c0_121] : memref<9x10x16xf32, #tpu.memory_space<vmem>>, vector<1x10x16xf32>
    %138 = vector.shape_cast %137 : vector<1x10x16xf32> to vector<10x16xf32>
    %cst_122 = arith.constant dense<0.000000e+00> : vector<35x16xf32>
    %139 = tpu.matmul %136, %138, %cst_122 {dimension_numbers = #tpu.dot_dimension_numbers<[1], [0], [0], [1], [0, 0, 1, 1], [], []>} : vector<35x10xf32>, vector<10x16xf32>, vector<35x16xf32> -> vector<35x16xf32>
    %140 = arith.addf %135, %139 : vector<35x16xf32>
    %c7_123 = arith.constant 7 : index
    %c0_124 = arith.constant 0 : index
    %141 = vector.load %arg15[%c7_123, %c0_124] : memref<57x10xf32, #tpu.memory_space<vmem>>, vector<35x10xf32>
    %c3_125 = arith.constant 3 : index
    %c0_126 = arith.constant 0 : index
    %c0_127 = arith.constant 0 : index
    %142 = vector.load %arg5[%c3_125, %c0_126, %c0_127] : memref<9x10x16xf32, #tpu.memory_space<vmem>>, vector<1x10x16xf32>
    %143 = vector.shape_cast %142 : vector<1x10x16xf32> to vector<10x16xf32>
    %cst_128 = arith.constant dense<0.000000e+00> : vector<35x16xf32>
    %144 = tpu.matmul %141, %143, %cst_128 {dimension_numbers = #tpu.dot_dimension_numbers<[1], [0], [0], [1], [0, 0, 1, 1], [], []>} : vector<35x10xf32>, vector<10x16xf32>, vector<35x16xf32> -> vector<35x16xf32>
    %145 = arith.addf %140, %144 : vector<35x16xf32>
    %c8_129 = arith.constant 8 : index
    %c0_130 = arith.constant 0 : index
    %146 = vector.load %arg15[%c8_129, %c0_130] : memref<57x10xf32, #tpu.memory_space<vmem>>, vector<35x10xf32>
    %c4_131 = arith.constant 4 : index
    %c0_132 = arith.constant 0 : index
    %c0_133 = arith.constant 0 : index
    %147 = vector.load %arg5[%c4_131, %c0_132, %c0_133] : memref<9x10x16xf32, #tpu.memory_space<vmem>>, vector<1x10x16xf32>
    %148 = vector.shape_cast %147 : vector<1x10x16xf32> to vector<10x16xf32>
    %cst_134 = arith.constant dense<0.000000e+00> : vector<35x16xf32>
    %149 = tpu.matmul %146, %148, %cst_134 {dimension_numbers = #tpu.dot_dimension_numbers<[1], [0], [0], [1], [0, 0, 1, 1], [], []>} : vector<35x10xf32>, vector<10x16xf32>, vector<35x16xf32> -> vector<35x16xf32>
    %150 = arith.addf %145, %149 : vector<35x16xf32>
    %c9 = arith.constant 9 : index
    %c0_135 = arith.constant 0 : index
    %151 = vector.load %arg15[%c9, %c0_135] : memref<57x10xf32, #tpu.memory_space<vmem>>, vector<35x10xf32>
    %c5_136 = arith.constant 5 : index
    %c0_137 = arith.constant 0 : index
    %c0_138 = arith.constant 0 : index
    %152 = vector.load %arg5[%c5_136, %c0_137, %c0_138] : memref<9x10x16xf32, #tpu.memory_space<vmem>>, vector<1x10x16xf32>
    %153 = vector.shape_cast %152 : vector<1x10x16xf32> to vector<10x16xf32>
    %cst_139 = arith.constant dense<0.000000e+00> : vector<35x16xf32>
    %154 = tpu.matmul %151, %153, %cst_139 {dimension_numbers = #tpu.dot_dimension_numbers<[1], [0], [0], [1], [0, 0, 1, 1], [], []>} : vector<35x10xf32>, vector<10x16xf32>, vector<35x16xf32> -> vector<35x16xf32>
    %155 = arith.addf %150, %154 : vector<35x16xf32>
    %c14_140 = arith.constant 14 : index
    %c0_141 = arith.constant 0 : index
    %156 = vector.load %arg15[%c14_140, %c0_141] : memref<57x10xf32, #tpu.memory_space<vmem>>, vector<35x10xf32>
    %c6_142 = arith.constant 6 : index
    %c0_143 = arith.constant 0 : index
    %c0_144 = arith.constant 0 : index
    %157 = vector.load %arg5[%c6_142, %c0_143, %c0_144] : memref<9x10x16xf32, #tpu.memory_space<vmem>>, vector<1x10x16xf32>
    %158 = vector.shape_cast %157 : vector<1x10x16xf32> to vector<10x16xf32>
    %cst_145 = arith.constant dense<0.000000e+00> : vector<35x16xf32>
    %159 = tpu.matmul %156, %158, %cst_145 {dimension_numbers = #tpu.dot_dimension_numbers<[1], [0], [0], [1], [0, 0, 1, 1], [], []>} : vector<35x10xf32>, vector<10x16xf32>, vector<35x16xf32> -> vector<35x16xf32>
    %160 = arith.addf %155, %159 : vector<35x16xf32>
    %c15 = arith.constant 15 : index
    %c0_146 = arith.constant 0 : index
    %161 = vector.load %arg15[%c15, %c0_146] : memref<57x10xf32, #tpu.memory_space<vmem>>, vector<35x10xf32>
    %c7_147 = arith.constant 7 : index
    %c0_148 = arith.constant 0 : index
    %c0_149 = arith.constant 0 : index
    %162 = vector.load %arg5[%c7_147, %c0_148, %c0_149] : memref<9x10x16xf32, #tpu.memory_space<vmem>>, vector<1x10x16xf32>
    %163 = vector.shape_cast %162 : vector<1x10x16xf32> to vector<10x16xf32>
    %cst_150 = arith.constant dense<0.000000e+00> : vector<35x16xf32>
    %164 = tpu.matmul %161, %163, %cst_150 {dimension_numbers = #tpu.dot_dimension_numbers<[1], [0], [0], [1], [0, 0, 1, 1], [], []>} : vector<35x10xf32>, vector<10x16xf32>, vector<35x16xf32> -> vector<35x16xf32>
    %165 = arith.addf %160, %164 : vector<35x16xf32>
    %c16_151 = arith.constant 16 : index
    %c0_152 = arith.constant 0 : index
    %166 = vector.load %arg15[%c16_151, %c0_152] : memref<57x10xf32, #tpu.memory_space<vmem>>, vector<35x10xf32>
    %c8_153 = arith.constant 8 : index
    %c0_154 = arith.constant 0 : index
    %c0_155 = arith.constant 0 : index
    %167 = vector.load %arg5[%c8_153, %c0_154, %c0_155] : memref<9x10x16xf32, #tpu.memory_space<vmem>>, vector<1x10x16xf32>
    %168 = vector.shape_cast %167 : vector<1x10x16xf32> to vector<10x16xf32>
    %cst_156 = arith.constant dense<0.000000e+00> : vector<35x16xf32>
    %169 = tpu.matmul %166, %168, %cst_156 {dimension_numbers = #tpu.dot_dimension_numbers<[1], [0], [0], [1], [0, 0, 1, 1], [], []>} : vector<35x10xf32>, vector<10x16xf32>, vector<35x16xf32> -> vector<35x16xf32>
    %170 = arith.addf %165, %169 : vector<35x16xf32>
    %c0_157 = arith.constant 0 : index
    %c0_158 = arith.constant 0 : index
    %171 = vector.load %arg6[%c0_157, %c0_158] : memref<1x16xf32, #tpu.memory_space<vmem>>, vector<1x16xf32>
    %172 = vector.broadcast %171 : vector<1x16xf32> to vector<35x16xf32>
    %173 = arith.addf %170, %172 : vector<35x16xf32>
    %cst_159 = arith.constant 0.000000e+00 : f32
    %174 = vector.broadcast %cst_159 : f32 to vector<35x16xf32>
    %175 = arith.cmpf ogt, %173, %174 : vector<35x16xf32>
    %c0_160 = arith.constant 0 : index
    %c0_161 = arith.constant 0 : index
    %176 = vector.load %arg7[%c0_160, %c0_161] : memref<1x16xf32, #tpu.memory_space<vmem>>, vector<1x16xf32>
    %177 = vector.broadcast %176 : vector<1x16xf32> to vector<35x16xf32>
    %178 = arith.mulf %173, %177 : vector<35x16xf32>
    %179 = arith.select %175, %173, %178 : vector<35x16xi1>, vector<35x16xf32>
    %c0_162 = arith.constant 0 : index
    %c0_163 = arith.constant 0 : index
    %180 = vector.load %arg16[%c0_162, %c0_163] : memref<43x16xf32, #tpu.memory_space<vmem>>, vector<35x16xf32>
    tpu.vector_store %arg16[%c0_162, %c0_163], %179 {strides = array<i32>} : memref<43x16xf32, #tpu.memory_space<vmem>>, vector<35x16xf32>,
    %cst_164 = arith.constant 0.000000e+00 : f32
    %181 = vector.broadcast %cst_164 : f32 to vector<21x32xf32>
    %c0_165 = arith.constant 0 : index
    %c0_166 = arith.constant 0 : index
    %182 = vector.load %arg16[%c0_165, %c0_166] : memref<43x16xf32, #tpu.memory_space<vmem>>, vector<21x16xf32>
    %c0_167 = arith.constant 0 : index
    %c0_168 = arith.constant 0 : index
    %c0_169 = arith.constant 0 : index
    %183 = vector.load %arg8[%c0_167, %c0_168, %c0_169] : memref<9x16x32xf32, #tpu.memory_space<vmem>>, vector<1x16x32xf32>
    %184 = vector.shape_cast %183 : vector<1x16x32xf32> to vector<16x32xf32>
    %cst_170 = arith.constant dense<0.000000e+00> : vector<21x32xf32>
    %185 = tpu.matmul %182, %184, %cst_170 {dimension_numbers = #tpu.dot_dimension_numbers<[1], [0], [0], [1], [0, 0, 1, 1], [], []>} : vector<21x16xf32>, vector<16x32xf32>, vector<21x32xf32> -> vector<21x32xf32>
    %186 = arith.addf %181, %185 : vector<21x32xf32>
    %c1_171 = arith.constant 1 : index
    %c0_172 = arith.constant 0 : index
    %187 = vector.load %arg16[%c1_171, %c0_172] : memref<43x16xf32, #tpu.memory_space<vmem>>, vector<21x16xf32>
    %c1_173 = arith.constant 1 : index
    %c0_174 = arith.constant 0 : index
    %c0_175 = arith.constant 0 : index
    %188 = vector.load %arg8[%c1_173, %c0_174, %c0_175] : memref<9x16x32xf32, #tpu.memory_space<vmem>>, vector<1x16x32xf32>
    %189 = vector.shape_cast %188 : vector<1x16x32xf32> to vector<16x32xf32>
    %cst_176 = arith.constant dense<0.000000e+00> : vector<21x32xf32>
    %190 = tpu.matmul %187, %189, %cst_176 {dimension_numbers = #tpu.dot_dimension_numbers<[1], [0], [0], [1], [0, 0, 1, 1], [], []>} : vector<21x16xf32>, vector<16x32xf32>, vector<21x32xf32> -> vector<21x32xf32>
    %191 = arith.addf %186, %190 : vector<21x32xf32>
    %c2_177 = arith.constant 2 : index
    %c0_178 = arith.constant 0 : index
    %192 = vector.load %arg16[%c2_177, %c0_178] : memref<43x16xf32, #tpu.memory_space<vmem>>, vector<21x16xf32>
    %c2_179 = arith.constant 2 : index
    %c0_180 = arith.constant 0 : index
    %c0_181 = arith.constant 0 : index
    %193 = vector.load %arg8[%c2_179, %c0_180, %c0_181] : memref<9x16x32xf32, #tpu.memory_space<vmem>>, vector<1x16x32xf32>
    %194 = vector.shape_cast %193 : vector<1x16x32xf32> to vector<16x32xf32>
    %cst_182 = arith.constant dense<0.000000e+00> : vector<21x32xf32>
    %195 = tpu.matmul %192, %194, %cst_182 {dimension_numbers = #tpu.dot_dimension_numbers<[1], [0], [0], [1], [0, 0, 1, 1], [], []>} : vector<21x16xf32>, vector<16x32xf32>, vector<21x32xf32> -> vector<21x32xf32>
    %196 = arith.addf %191, %195 : vector<21x32xf32>
    %c7_183 = arith.constant 7 : index
    %c0_184 = arith.constant 0 : index
    %197 = vector.load %arg16[%c7_183, %c0_184] : memref<43x16xf32, #tpu.memory_space<vmem>>, vector<21x16xf32>
    %c3_185 = arith.constant 3 : index
    %c0_186 = arith.constant 0 : index
    %c0_187 = arith.constant 0 : index
    %198 = vector.load %arg8[%c3_185, %c0_186, %c0_187] : memref<9x16x32xf32, #tpu.memory_space<vmem>>, vector<1x16x32xf32>
    %199 = vector.shape_cast %198 : vector<1x16x32xf32> to vector<16x32xf32>
    %cst_188 = arith.constant dense<0.000000e+00> : vector<21x32xf32>
    %200 = tpu.matmul %197, %199, %cst_188 {dimension_numbers = #tpu.dot_dimension_numbers<[1], [0], [0], [1], [0, 0, 1, 1], [], []>} : vector<21x16xf32>, vector<16x32xf32>, vector<21x32xf32> -> vector<21x32xf32>
    %201 = arith.addf %196, %200 : vector<21x32xf32>
    %c8_189 = arith.constant 8 : index
    %c0_190 = arith.constant 0 : index
    %202 = vector.load %arg16[%c8_189, %c0_190] : memref<43x16xf32, #tpu.memory_space<vmem>>, vector<21x16xf32>
    %c4_191 = arith.constant 4 : index
    %c0_192 = arith.constant 0 : index
    %c0_193 = arith.constant 0 : index
    %203 = vector.load %arg8[%c4_191, %c0_192, %c0_193] : memref<9x16x32xf32, #tpu.memory_space<vmem>>, vector<1x16x32xf32>
    %204 = vector.shape_cast %203 : vector<1x16x32xf32> to vector<16x32xf32>
    %cst_194 = arith.constant dense<0.000000e+00> : vector<21x32xf32>
    %205 = tpu.matmul %202, %204, %cst_194 {dimension_numbers = #tpu.dot_dimension_numbers<[1], [0], [0], [1], [0, 0, 1, 1], [], []>} : vector<21x16xf32>, vector<16x32xf32>, vector<21x32xf32> -> vector<21x32xf32>
    %206 = arith.addf %201, %205 : vector<21x32xf32>
    %c9_195 = arith.constant 9 : index
    %c0_196 = arith.constant 0 : index
    %207 = vector.load %arg16[%c9_195, %c0_196] : memref<43x16xf32, #tpu.memory_space<vmem>>, vector<21x16xf32>
    %c5_197 = arith.constant 5 : index
    %c0_198 = arith.constant 0 : index
    %c0_199 = arith.constant 0 : index
    %208 = vector.load %arg8[%c5_197, %c0_198, %c0_199] : memref<9x16x32xf32, #tpu.memory_space<vmem>>, vector<1x16x32xf32>
    %209 = vector.shape_cast %208 : vector<1x16x32xf32> to vector<16x32xf32>
    %cst_200 = arith.constant dense<0.000000e+00> : vector<21x32xf32>
    %210 = tpu.matmul %207, %209, %cst_200 {dimension_numbers = #tpu.dot_dimension_numbers<[1], [0], [0], [1], [0, 0, 1, 1], [], []>} : vector<21x16xf32>, vector<16x32xf32>, vector<21x32xf32> -> vector<21x32xf32>
    %211 = arith.addf %206, %210 : vector<21x32xf32>
    %c14_201 = arith.constant 14 : index
    %c0_202 = arith.constant 0 : index
    %212 = vector.load %arg16[%c14_201, %c0_202] : memref<43x16xf32, #tpu.memory_space<vmem>>, vector<21x16xf32>
    %c6_203 = arith.constant 6 : index
    %c0_204 = arith.constant 0 : index
    %c0_205 = arith.constant 0 : index
    %213 = vector.load %arg8[%c6_203, %c0_204, %c0_205] : memref<9x16x32xf32, #tpu.memory_space<vmem>>, vector<1x16x32xf32>
    %214 = vector.shape_cast %213 : vector<1x16x32xf32> to vector<16x32xf32>
    %cst_206 = arith.constant dense<0.000000e+00> : vector<21x32xf32>
    %215 = tpu.matmul %212, %214, %cst_206 {dimension_numbers = #tpu.dot_dimension_numbers<[1], [0], [0], [1], [0, 0, 1, 1], [], []>} : vector<21x16xf32>, vector<16x32xf32>, vector<21x32xf32> -> vector<21x32xf32>
    %216 = arith.addf %211, %215 : vector<21x32xf32>
    %c15_207 = arith.constant 15 : index
    %c0_208 = arith.constant 0 : index
    %217 = vector.load %arg16[%c15_207, %c0_208] : memref<43x16xf32, #tpu.memory_space<vmem>>, vector<21x16xf32>
    %c7_209 = arith.constant 7 : index
    %c0_210 = arith.constant 0 : index
    %c0_211 = arith.constant 0 : index
    %218 = vector.load %arg8[%c7_209, %c0_210, %c0_211] : memref<9x16x32xf32, #tpu.memory_space<vmem>>, vector<1x16x32xf32>
    %219 = vector.shape_cast %218 : vector<1x16x32xf32> to vector<16x32xf32>
    %cst_212 = arith.constant dense<0.000000e+00> : vector<21x32xf32>
    %220 = tpu.matmul %217, %219, %cst_212 {dimension_numbers = #tpu.dot_dimension_numbers<[1], [0], [0], [1], [0, 0, 1, 1], [], []>} : vector<21x16xf32>, vector<16x32xf32>, vector<21x32xf32> -> vector<21x32xf32>
    %221 = arith.addf %216, %220 : vector<21x32xf32>
    %c16_213 = arith.constant 16 : index
    %c0_214 = arith.constant 0 : index
    %222 = vector.load %arg16[%c16_213, %c0_214] : memref<43x16xf32, #tpu.memory_space<vmem>>, vector<21x16xf32>
    %c8_215 = arith.constant 8 : index
    %c0_216 = arith.constant 0 : index
    %c0_217 = arith.constant 0 : index
    %223 = vector.load %arg8[%c8_215, %c0_216, %c0_217] : memref<9x16x32xf32, #tpu.memory_space<vmem>>, vector<1x16x32xf32>
    %224 = vector.shape_cast %223 : vector<1x16x32xf32> to vector<16x32xf32>
    %cst_218 = arith.constant dense<0.000000e+00> : vector<21x32xf32>
    %225 = tpu.matmul %222, %224, %cst_218 {dimension_numbers = #tpu.dot_dimension_numbers<[1], [0], [0], [1], [0, 0, 1, 1], [], []>} : vector<21x16xf32>, vector<16x32xf32>, vector<21x32xf32> -> vector<21x32xf32>
    %226 = arith.addf %221, %225 : vector<21x32xf32>
    %c0_219 = arith.constant 0 : index
    %c0_220 = arith.constant 0 : index
    %227 = vector.load %arg9[%c0_219, %c0_220] : memref<1x32xf32, #tpu.memory_space<vmem>>, vector<1x32xf32>
    %228 = vector.broadcast %227 : vector<1x32xf32> to vector<21x32xf32>
    %229 = arith.addf %226, %228 : vector<21x32xf32>
    %cst_221 = arith.constant 0.000000e+00 : f32
    %230 = vector.broadcast %cst_221 : f32 to vector<21x32xf32>
    %231 = arith.cmpf ogt, %229, %230 : vector<21x32xf32>
    %c0_222 = arith.constant 0 : index
    %c0_223 = arith.constant 0 : index
    %232 = vector.load %arg10[%c0_222, %c0_223] : memref<1x32xf32, #tpu.memory_space<vmem>>, vector<1x32xf32>
    %233 = vector.broadcast %232 : vector<1x32xf32> to vector<21x32xf32>
    %234 = arith.mulf %229, %233 : vector<21x32xf32>
    %235 = arith.select %231, %229, %234 : vector<21x32xi1>, vector<21x32xf32>
    %c0_224 = arith.constant 0 : index
    %c0_225 = arith.constant 0 : index
    %236 = vector.load %arg11[%c0_224, %c0_225] : memref<32x8xf32, #tpu.memory_space<vmem>>, vector<32x8xf32>
    %cst_226 = arith.constant dense<0.000000e+00> : vector<21x8xf32>
    %237 = tpu.matmul %235, %236, %cst_226 {dimension_numbers = #tpu.dot_dimension_numbers<[1], [0], [0], [1], [0, 0, 1, 1], [], []>} : vector<21x32xf32>, vector<32x8xf32>, vector<21x8xf32> -> vector<21x8xf32>
    %c0_227 = arith.constant 0 : index
    %c0_228 = arith.constant 0 : index
    %238 = vector.load %arg12[%c0_227, %c0_228] : memref<1x8xf32, #tpu.memory_space<vmem>>, vector<1x8xf32>
    %239 = vector.broadcast %238 : vector<1x8xf32> to vector<21x8xf32>
    %240 = arith.addf %237, %239 : vector<21x8xf32>
    %cst_229 = arith.constant 0.000000e+00 : f32
    %241 = vector.broadcast %cst_229 : f32 to vector<21x8xf32>
    %242 = arith.subf %241, %240 : vector<21x8xf32>
    %243 = math.exp %242 : vector<21x8xf32>
    %cst_230 = arith.constant 1.000000e+00 : f32
    %244 = vector.broadcast %cst_230 : f32 to vector<21x8xf32>
    %245 = arith.addf %244, %243 : vector<21x8xf32>
    %cst_231 = arith.constant 1.000000e+00 : f32
    %246 = vector.broadcast %cst_231 : f32 to vector<21x8xf32>
    %247 = arith.divf %246, %245 : vector<21x8xf32>
    %248 = tpu.iota {dimensions = array<i32: 1>} : vector<21x8xi32>
    %c4_i32 = arith.constant 4 : i32
    %249 = vector.broadcast %c4_i32 : i32 to vector<21x8xi32>
    %250 = arith.cmpi eq, %248, %249 : vector<21x8xi32>
    %251 = arith.select %250, %247, %240 : vector<21x8xi1>, vector<21x8xf32>
    %c0_232 = arith.constant 0 : index
    %c0_233 = arith.constant 0 : index
    %c0_234 = arith.constant 0 : index
    %252 = vector.load %arg13[%c0_232, %c0_233, %c0_234] : memref<1x21x8xf32, #tpu.memory_space<vmem>>, vector<1x21x8xf32>
    %253 = vector.shape_cast %252 : vector<1x21x8xf32> to vector<21x8xf32>
    %254 = vector.shape_cast %251 : vector<21x8xf32> to vector<1x21x8xf32>
    tpu.vector_store %arg13[%c0_232, %c0_233, %c0_234], %254 {strides = array<i32>} : memref<1x21x8xf32, #tpu.memory_space<vmem>>, vector<1x21x8xf32>,
    return
  }
  func.func @transform_0(%arg0: i32) -> (i32, i32, i32) {
    %c0_i32 = arith.constant 0 : i32
    %c0_i32_0 = arith.constant 0 : i32
    %c0_i32_1 = arith.constant 0 : i32
    return %arg0, %c0_i32, %c0_i32_0 : i32, i32, i32
  }
  func.func @transform_1(%arg0: i32) -> (i32, i32, i32) {
    %c0_i32 = arith.constant 0 : i32
    %c0_i32_0 = arith.constant 0 : i32
    %c0_i32_1 = arith.constant 0 : i32
    %c0_i32_2 = arith.constant 0 : i32
    return %c0_i32, %c0_i32_0, %c0_i32_1 : i32, i32, i32
  }
  func.func @transform_2(%arg0: i32) -> (i32, i32) {
    %c0_i32 = arith.constant 0 : i32
    %c0_i32_0 = arith.constant 0 : i32
    %c0_i32_1 = arith.constant 0 : i32
    return %c0_i32, %c0_i32_0 : i32, i32
  }
  func.func @transform_3(%arg0: i32) -> (i32, i32) {
    %c0_i32 = arith.constant 0 : i32
    %c0_i32_0 = arith.constant 0 : i32
    %c0_i32_1 = arith.constant 0 : i32
    return %c0_i32, %c0_i32_0 : i32, i32
  }
  func.func @transform_4(%arg0: i32) -> (i32, i32, i32) {
    %c0_i32 = arith.constant 0 : i32
    %c0_i32_0 = arith.constant 0 : i32
    %c0_i32_1 = arith.constant 0 : i32
    %c0_i32_2 = arith.constant 0 : i32
    return %c0_i32, %c0_i32_0, %c0_i32_1 : i32, i32, i32
  }
  func.func @transform_5(%arg0: i32) -> (i32, i32) {
    %c0_i32 = arith.constant 0 : i32
    %c0_i32_0 = arith.constant 0 : i32
    %c0_i32_1 = arith.constant 0 : i32
    return %c0_i32, %c0_i32_0 : i32, i32
  }
  func.func @transform_6(%arg0: i32) -> (i32, i32) {
    %c0_i32 = arith.constant 0 : i32
    %c0_i32_0 = arith.constant 0 : i32
    %c0_i32_1 = arith.constant 0 : i32
    return %c0_i32, %c0_i32_0 : i32, i32
  }
  func.func @transform_7(%arg0: i32) -> (i32, i32, i32) {
    %c0_i32 = arith.constant 0 : i32
    %c0_i32_0 = arith.constant 0 : i32
    %c0_i32_1 = arith.constant 0 : i32
    %c0_i32_2 = arith.constant 0 : i32
    return %c0_i32, %c0_i32_0, %c0_i32_1 : i32, i32, i32
  }
  func.func @transform_8(%arg0: i32) -> (i32, i32) {
    %c0_i32 = arith.constant 0 : i32
    %c0_i32_0 = arith.constant 0 : i32
    %c0_i32_1 = arith.constant 0 : i32
    return %c0_i32, %c0_i32_0 : i32, i32
  }
  func.func @transform_9(%arg0: i32) -> (i32, i32) {
    %c0_i32 = arith.constant 0 : i32
    %c0_i32_0 = arith.constant 0 : i32
    %c0_i32_1 = arith.constant 0 : i32
    return %c0_i32, %c0_i32_0 : i32, i32
  }
  func.func @transform_10(%arg0: i32) -> (i32, i32) {
    %c0_i32 = arith.constant 0 : i32
    %c0_i32_0 = arith.constant 0 : i32
    %c0_i32_1 = arith.constant 0 : i32
    return %c0_i32, %c0_i32_0 : i32, i32
  }
  func.func @transform_11(%arg0: i32) -> (i32, i32) {
    %c0_i32 = arith.constant 0 : i32
    %c0_i32_0 = arith.constant 0 : i32
    %c0_i32_1 = arith.constant 0 : i32
    return %c0_i32, %c0_i32_0 : i32, i32
  }
  func.func @transform_12(%arg0: i32) -> (i32, i32, i32) {
    %c0_i32 = arith.constant 0 : i32
    %c0_i32_0 = arith.constant 0 : i32
    %c0_i32_1 = arith.constant 0 : i32
    return %arg0, %c0_i32, %c0_i32_0 : i32, i32, i32
  }
}

</mosaic_0001>

<bundles_post_ra>
// kernel: tpu_custom_call.1
= control target key start
LH: loop header
LB: loop body
LE: loop exit
PB: predicated region body
PF: predicated region fallthrough
CT: control target
= control target key end

     0   :  { %s7832_s21 = smov 0   ;;  %s9297_s0 = inlined_call_operand.vmem [shape: f32[2,264,3], index: 0, kind: input, shape index: {}]   ;;  %s9298_s1 = inlined_call_operand.vmem [shape: f32[9,3,10], index: 1, kind: input, shape index: {}]   ;;  %s9299_s2 = inlined_call_operand.vmem [shape: f32[1,10], index: 2, kind: input, shape index: {}]   ;;  %s9300_s3 = inlined_call_operand.vmem [shape: f32[1,10], index: 3, kind: input, shape index: {}]   ;;  %s9301_s4 = inlined_call_operand.vmem [shape: f32[9,10,16], index: 4, kind: input, shape index: {}]   ;;  %s9302_s5 = inlined_call_operand.vmem [shape: f32[1,16], index: 5, kind: input, shape index: {}]   ;;  %s9303_s6 = inlined_call_operand.vmem [shape: f32[1,16], index: 6, kind: input, shape index: {}]   ;;  %s9304_s7 = inlined_call_operand.vmem [shape: f32[9,16,32], index: 7, kind: input, shape index: {}]   ;;  %s9305_s8 = inlined_call_operand.vmem [shape: f32[1,32], index: 8, kind: input, shape index: {}]   ;;  %s9306_s9 = inlined_call_operand.vmem [shape: f32[1,32], index: 9, kind: input, shape index: {}]   ;;  %s9307_s10 = inlined_call_operand.vmem [shape: f32[32,8], index: 10, kind: input, shape index: {}]   ;;  %s9308_s11 = inlined_call_operand.vmem [shape: f32[1,8], index: 11, kind: input, shape index: {}]   ;;  %s9309_s12 = inlined_call_operand.vmem [shape: f32[2,21,8], index: 12, kind: output, shape index: {}]  }
   0x1 LB: > { %s5956_s22 = sadd.s32 4294967295, %s7761_s21   ;;  %p5960_p0 = scmp.ge.s32.totalorder %s7761_s21, 1  ;;  %s7761_s21 = sphi %s7832_s21, %s22_s21  }
   0x2   : > { %p362_p1 = scmp.lt.s32.totalorder %s7761_s21, 3 }
   0x4   : > { %p363_p2 = pnand %p5960_p0, %p362_p1 }
   0x6   : > { %366 = sbr.rel (%p363_p2) target bundleno = 1598 (0x63e), region = 68 }
   0xd   : > { %v7843_v0 = vld [vmem:[%s9298_s1] sm:$0x7]  ;;  %vm562_vm0 = vcmask 1042432   ;;  %p404_p3 = scmp.lt.s32.totalorder %s5956_s22, 1  ;;  %v6022_v1 = vld [vmem:[%s9298_s1 + $0x8] sm:$0x7] }
   0xe   : > { %6777 = vmatprep.subr.msk.mxu0 %vm562_vm0, %v7843_v0  ;;  %vm477_vm1 = vcmask 23552   ;;  %v6052_v5 = vld [vmem:[%s9298_s1 + $0xc] sm:$0x7]  ;;  %v6082_v12 = vld [vmem:[%s9298_s1 + $0x10] sm:$0x7]  ;;  %vm3781_vm2 = vcmask 1041408  }
   0xf   : > { %6778 = vmatpush3.msk.msra.mxu0 %vm562_vm0, %v7843_v0  ;;  %s9361_s22 = smov (!%p404_p3, %s5956_s22), 1  ;;  %v6112_v38 = vld [vmem:[%s9298_s1 + $0x14] sm:$0x7]  ;;  %vm7764_vm3 = vmmov 1   ;;  %vm414_vm5 = vcmask 80896   ;;  %vm7765_vm6 = vmmov 0  }
  0x10   : > { %6821 = vmatprep.subr.msk.mxu0 %vm562_vm0, %v6022_v1  ;;  %s7729_s27 = smul.u32 264, %s9361_s22  ;;  %vm8716_vm4 = vmpackc.low %vm3781_vm2, %vm7764_vm3 }
  0x12   : > { %s7859_s30 = scalar_lea.vmem %s9297_s0, %s7729_s27  ;;  %s7730_s27 = smul.u32 24, %s9361_s22 }
  0x13   : > { %v418_v2 = vld [vmem:[%s7859_s30] sm:$0xff]  ;;  %v419_v3 = vld [vmem:[%s7859_s30 + $0x8] sm:$0xff]  ;;  %v7864_v4 = vld [vmem:[%s7859_s30 + $0x10] sm:$0xff] }
  0x14   : > { %6779 = vmatprep.mubr.msk.f32.mxu0 %vm477_vm1, %v418_v2  ;;  %v7875_v6 = vld [vmem:[%s7859_s30 + $0x18] sm:$0xff]  ;;  %v7878_v7 = vld [vmem:[%s7859_s30 + $0x20] sm:$0xff]  ;;  %v7886_v8 = vld [vmem:[%s7859_s30 + $0x28] sm:$0xff] }
  0x15   : > { %6780 = vmatmul.mubr.msk.f32.vlgmr.msra.gmra.mrb[0].mxu0 %vm477_vm1, %v419_v3  ;;  %v1063_v9 = vld [vmem:[%s7859_s30 + $0x2] sm:$0xff]  ;;  %v1064_v10 = vld [vmem:[%s7859_s30 + $0xa] sm:$0xff]  ;;  %v7894_v11 = vld [vmem:[%s7859_s30 + $0x12] sm:$0xff] }
  0x16   : > { %6822 = vmatpush3.msk.msra.mxu0 %vm562_vm0, %v6022_v1  ;;  %6782 = vmatprep.mubr.msk.f32.mxu0 %vm477_vm1, %v7864_v4  ;;  %v7904_v13 = vld [vmem:[%s7859_s30 + $0x1a] sm:$0xff]  ;;  %v7907_v14 = vld [vmem:[%s7859_s30 + $0x22] sm:$0xff]  ;;  %v7915_v15 = vld [vmem:[%s7859_s30 + $0x2a] sm:$0xff] }
  0x17   : > { %6865 = vmatprep.subr.msk.mxu0 %vm562_vm0, %v6052_v5  ;;  %v7918_v16 = vld [vmem:[%s7859_s30 + $0x32] sm:$0xff]  ;;  %v7925_v17 = vld [vmem:[%s7859_s30 + $0x3a] sm:$0xff]  ;;  %v7928_v18 = vld [vmem:[%s7859_s30 + $0x42] sm:$0xff] }
  0x18   : > { %v7935_v19 = vld [vmem:[%s7859_s30 + $0x4a] sm:$0xff]  ;;  %v7938_v20 = vld [vmem:[%s7859_s30 + $0x52] sm:$0xff]  ;;  %v7945_v21 = vld [vmem:[%s7859_s30 + $0x5a] sm:$0xff] }
  0x19   : > { %6783 = vmatmul.mubr.msk.f32.gmra.mrb[2].mxu0 %vm477_vm1, %v7875_v6  ;;  %v7948_v22 = vld [vmem:[%s7859_s30 + $0x62] sm:$0xff]  ;;  %v7955_v23 = vld [vmem:[%s7859_s30 + $0x6a] sm:$0xff]  ;;  %v7958_v24 = vld [vmem:[%s7859_s30 + $0x72] sm:$0xff] }
  0x1a   : > { %6785 = vmatprep.mubr.msk.f32.mxu0 %vm477_vm1, %v7878_v7  ;;  %v7965_v25 = vld [vmem:[%s7859_s30 + $0x7a] sm:$0xff]  ;;  %v7968_v26 = vld [vmem:[%s7859_s30 + $0x82] sm:$0xff]  ;;  %v7975_v27 = vld [vmem:[%s7859_s30 + $0x8a] sm:$0xff] }
  0x1b   : > { %v7978_v28 = vld [vmem:[%s7859_s30 + $0x92] sm:$0xff]  ;;  %v7985_v29 = vld [vmem:[%s7859_s30 + $0x9a] sm:$0xff]  ;;  %v7988_v30 = vld [vmem:[%s7859_s30 + $0xa2] sm:$0xff] }
  0x1c   : > { %v7995_v31 = vld [vmem:[%s7859_s30 + $0xaa] sm:$0xff]  ;;  %v7998_v32 = vld [vmem:[%s7859_s30 + $0xb2] sm:$0xff]  ;;  %v8005_v33 = vld [vmem:[%s7859_s30 + $0xba] sm:$0xff] }
  0x1d   : > { %6786 = vmatmul.mubr.msk.f32.gmra.mrb[4].mxu0 %vm477_vm1, %v7886_v8  ;;  %v8008_v34 = vld [vmem:[%s7859_s30 + $0xc2] sm:$0xff]  ;;  %v8015_v35 = vld [vmem:[%s7859_s30 + $0xca] sm:$0xff]  ;;  %v8018_v36 = vld [vmem:[%s7859_s30 + $0xd2] sm:$0xff] }
  0x1e   : > { %6823 = vmatprep.mubr.msk.f32.mxu0 %vm477_vm1, %v1063_v9  ;;  %v8025_v37 = vld [vmem:[%s7859_s30 + $0xda] sm:$0xff]  ;;  %v8040_v39 = vld [vmem:[%s7859_s30 + $0x30] sm:$0xff]  ;;  %v8058_v42 = vld [vmem:[%s7859_s30 + $0x48] sm:$0xff] }
  0x1f   : > { %v8048_v40 = vld [vmem:[%s7859_s30 + $0x38] sm:$0xff]  ;;  %v8051_v41 = vld [vmem:[%s7859_s30 + $0x40] sm:$0xff]  ;;  %v8061_v43 = vld [vmem:[%s7859_s30 + $0x50] sm:$0xff] }
  0x20   : > { %v8068_v44 = vld [vmem:[%s7859_s30 + $0x58] sm:$0xff]  ;;  %v8071_v45 = vld [vmem:[%s7859_s30 + $0x60] sm:$0xff]  ;;  %v8078_v46 = vld [vmem:[%s7859_s30 + $0x68] sm:$0xff] }
  0x21   : > { %6824 = vmatmul.mubr.msk.f32.vlgmr.msra.gmra.mrb[0].mxu0 %vm477_vm1, %v1064_v10  ;;  %v8081_v47 = vld [vmem:[%s7859_s30 + $0x70] sm:$0xff]  ;;  %v8088_v48 = vld [vmem:[%s7859_s30 + $0x78] sm:$0xff]  ;;  %v8091_v49 = vld [vmem:[%s7859_s30 + $0x80] sm:$0xff] }
  0x22   : > { %6866 = vmatpush3.msk.msra.mxu0 %vm562_vm0, %v6052_v5  ;;  %6826 = vmatprep.mubr.msk.f32.mxu0 %vm477_vm1, %v7894_v11  ;;  %v8098_v50 = vld [vmem:[%s7859_s30 + $0x88] sm:$0xff]  ;;  %v8101_v51 = vld [vmem:[%s7859_s30 + $0x90] sm:$0xff]  ;;  %v8108_v52 = vld [vmem:[%s7859_s30 + $0x98] sm:$0xff] }
  0x23   : > { %6909 = vmatprep.subr.msk.mxu0 %vm562_vm0, %v6082_v12  ;;  %v8111_v53 = vld [vmem:[%s7859_s30 + $0xa0] sm:$0xff]  ;;  %v8118_v54 = vld [vmem:[%s7859_s30 + $0xa8] sm:$0xff]  ;;  %v8121_v55 = vld [vmem:[%s7859_s30 + $0xb0] sm:$0xff] }
  0x24   : > { %v8128_v56 = vld [vmem:[%s7859_s30 + $0xb8] sm:$0xff]  ;;  %v8131_v57 = vld [vmem:[%s7859_s30 + $0xc0] sm:$0xff]  ;;  %v8138_v58 = vld [vmem:[%s7859_s30 + $0xc8] sm:$0xff] }
  0x25   : > { %6827 = vmatmul.mubr.msk.f32.gmra.mrb[2].mxu0 %vm477_vm1, %v7904_v13  ;;  %v8141_v59 = vld [vmem:[%s7859_s30 + $0xd0] sm:$0xff]  ;;  %v8148_v60 = vld [vmem:[%s7859_s30 + $0xd8] sm:$0xff]  ;;  %v8151_v61 = vld [vmem:[%s7859_s30 + $0xe0] sm:$0xff] }
  0x26   : > { %6829 = vmatprep.mubr.msk.f32.mxu0 %vm477_vm1, %v7907_v14  ;;  %v8158_v62 = vld [vmem:[%s7859_s30 + $0xe8] sm:$0xff]  ;;  %v1763_v63 = vld [vmem:[%s7859_s30 + $0x11] sm:$0xff]  ;;  %v1764_v1 = vld [vmem:[%s7859_s30 + $0x19] sm:$0xff] }
  0x27   : > { %9326 = vst [vmem:[#allocation5_spill] sm:$0xff] %v8158_v62  ;;  %v8166_v2 = vld [vmem:[%s7859_s30 + $0x21] sm:$0xff]  ;;  %v8171_v3 = vld [vmem:[%s9298_s1 + $0x18] sm:$0x7]  ;;  %v448_v10 = vld [vmem:[%s7859_s30 + $0x9] sm:$0xff] }
  0x28   : > { %v8181_v5 = vld [vmem:[%s7859_s30 + $0x31] sm:$0xff]  ;;  %v447_v9 = vld [vmem:[%s7859_s30 + $0x1] sm:$0xff] }
  0x29   : > { %6830 = vmatmul.mubr.msk.f32.gmra.mrb[4].mxu0 %vm477_vm1, %v7915_v15  ;;  %9327 = vst [vmem:[#allocation6_spill] sm:$0xff] %v8181_v5  ;;  %6735 = vmatprep.mubr.msk.f32.mxu1 %vm477_vm1, %v447_v9  ;;  %v8230_v9 = vld [vmem:[%s7859_s30 + $0x61] sm:$0xff] }
  0x2a   : > { %6832 = vmatprep.mubr.msk.f32.mxu0 %vm477_vm1, %v7918_v16  ;;  %9333 = vst [vmem:[#allocation12_spill] sm:$0xff] %v8230_v9 }
  0x2d   : > { %6833 = vmatmul.mubr.msk.f32.gmra.mrb[6].mxu0 %vm477_vm1, %v7925_v17 }
  0x2e   : > { %6835 = vmatprep.mubr.msk.f32.mxu0 %vm477_vm1, %v7928_v18 }
  0x31   : > { %6836 = vmatmul.mubr.msk.f32.gmra.mrb[8].mxu0 %vm477_vm1, %v7935_v19 }
  0x32   : > { %6838 = vmatprep.mubr.msk.f32.mxu0 %vm477_vm1, %v7938_v20 }
  0x35   : > { %6839 = vmatmul.mubr.msk.f32.gmra.mrb[10].mxu0 %vm477_vm1, %v7945_v21 }
  0x36   : > { %6841 = vmatprep.mubr.msk.f32.mxu0 %vm477_vm1, %v7948_v22 }
  0x39   : > { %6842 = vmatmul.mubr.msk.f32.gmra.mrb[12].mxu0 %vm477_vm1, %v7955_v23 }
  0x3a   : > { %6844 = vmatprep.mubr.msk.f32.mxu0 %vm477_vm1, %v7958_v24 }
  0x3d   : > { %6845 = vmatmul.mubr.msk.f32.gmra.mrb[14].mxu0 %vm477_vm1, %v7965_v25 }
  0x3e   : > { %6847 = vmatprep.mubr.msk.f32.mxu0 %vm477_vm1, %v7968_v26 }
  0x41   : > { %6848 = vmatmul.mubr.msk.f32.gmra.mrb[16].mxu0 %vm477_vm1, %v7975_v27 }
  0x42   : > { %6850 = vmatprep.mubr.msk.f32.mxu0 %vm477_vm1, %v7978_v28 }
  0x45   : > { %6851 = vmatmul.mubr.msk.f32.gmra.mrb[18].mxu0 %vm477_vm1, %v7985_v29 }
  0x46   : > { %6853 = vmatprep.mubr.msk.f32.mxu0 %vm477_vm1, %v7988_v30 }
  0x49   : > { %6854 = vmatmul.mubr.msk.f32.gmra.mrb[20].mxu0 %vm477_vm1, %v7995_v31 }
  0x4a   : > { %6856 = vmatprep.mubr.msk.f32.mxu0 %vm477_vm1, %v7998_v32 }
  0x4d   : > { %6857 = vmatmul.mubr.msk.f32.gmra.mrb[22].mxu0 %vm477_vm1, %v8005_v33 }
  0x4e   : > { %6859 = vmatprep.mubr.msk.f32.mxu0 %vm477_vm1, %v8008_v34 }
  0x51   : > { %6860 = vmatmul.mubr.msk.f32.gmra.mrb[24].mxu0 %vm477_vm1, %v8015_v35 }
  0x52   : > { %6862 = vmatprep.mubr.msk.f32.mxu0 %vm477_vm1, %v8018_v36 }
  0x55   : > { %6863 = vmatmul.mubr.msk.f32.gmra.mrb[26].mxu0 %vm477_vm1, %v8025_v37 }
  0x56   : > { %6867 = vmatprep.mubr.msk.f32.mxu0 %vm477_vm1, %v7864_v4  ;;  %v8178_v4 = vld [vmem:[%s7859_s30 + $0x29] sm:$0xff] }
  0x59   : > { %6868 = vmatmul.mubr.msk.f32.vlgmr.msra.gmra.mrb[0].mxu0 %vm477_vm1, %v7875_v6  ;;  %v5963_v6 = vld [vmem:[%s9298_s1 + $0x4] sm:$0x7] }
  0x5a   : > { %6910 = vmatpush3.msk.msra.mxu0 %vm562_vm0, %v6082_v12  ;;  %6870 = vmatprep.mubr.msk.f32.mxu0 %vm477_vm1, %v7878_v7  ;;  %v8195_v12 = vld [vmem:[%s7859_s30 + $0x39] sm:$0xff] }
  0x5b   : > { %6953 = vmatprep.subr.msk.mxu0 %vm562_vm0, %v6112_v38  ;;  %9328 = vst [vmem:[#allocation7_spill] sm:$0xff] %v8195_v12  ;;  %6733 = vmatprep.subr.msk.mxu1 %vm562_vm0, %v5963_v6 }
  0x5c   : > { %6734 = vmatpush3.msk.msra.mxu1 %vm562_vm0, %v5963_v6  ;;  %v8217_v6 = vld [vmem:[%s7859_s30 + $0x51] sm:$0xff] }
  0x5d   : > { %6871 = vmatmul.mubr.msk.f32.gmra.mrb[2].mxu0 %vm477_vm1, %v7886_v8  ;;  %6736 = vmatmul.mubr.msk.f32.vlgmr.msra.gmra.mrb[0].mxu1 %vm477_vm1, %v448_v10  ;;  %9331 = vst [vmem:[#allocation10_spill] sm:$0xff] %v8217_v6  ;;  %v8255_v10 = vld [vmem:[%s7859_s30 + $0x79] sm:$0xff] }
  0x5e   : > { %6873 = vmatprep.mubr.msk.f32.mxu0 %vm477_vm1, %v8040_v39  ;;  %7503 = vmatprep.subr.msk.mxu1 %vm562_vm0, %v7843_v0  ;;  %9336 = vst [vmem:[#allocation15_spill] sm:$0xff] %v8255_v10 }
  0x5f   : > { %6738 = vmatprep.mubr.msk.f32.mxu1 %vm477_vm1, %v1763_v63  ;;  %7504 = vmatpush3.msk.msra.mxu1 %vm562_vm0, %v7843_v0  ;;  %v8241_v0 = vld [vmem:[%s7859_s30 + $0x69] sm:$0xff] }
  0x60   : > { %9334 = vst [vmem:[#allocation13_spill] sm:$0xff] %v8241_v0 }
  0x61   : > { %6874 = vmatmul.mubr.msk.f32.gmra.mrb[4].mxu0 %vm477_vm1, %v8048_v40  ;;  %6739 = vmatmul.mubr.msk.f32.gmra.mrb[2].mxu1 %vm477_vm1, %v1764_v1 }
  0x62   : > { %6876 = vmatprep.mubr.msk.f32.mxu0 %vm477_vm1, %v8051_v41  ;;  %6741 = vmatprep.mubr.msk.f32.mxu1 %vm477_vm1, %v8166_v2 }
  0x65   : > { %6877 = vmatmul.mubr.msk.f32.gmra.mrb[6].mxu0 %vm477_vm1, %v8058_v42  ;;  %6742 = vmatmul.mubr.msk.f32.gmra.mrb[4].mxu1 %vm477_vm1, %v8178_v4 }
  0x66   : > { %6879 = vmatprep.mubr.msk.f32.mxu0 %vm477_vm1, %v8061_v43  ;;  %6744 = vmatprep.mubr.msk.f32.mxu1 %vm477_vm1, %v8181_v5 }
  0x69   : > { %6880 = vmatmul.mubr.msk.f32.gmra.mrb[8].mxu0 %vm477_vm1, %v8068_v44  ;;  %6745 = vmatmul.mubr.msk.f32.gmra.mrb[6].mxu1 %vm477_vm1, %v8195_v12 }
  0x6a   : > { %6882 = vmatprep.mubr.msk.f32.mxu0 %vm477_vm1, %v8071_v45 }
  0x6d   : > { %6883 = vmatmul.mubr.msk.f32.gmra.mrb[10].mxu0 %vm477_vm1, %v8078_v46 }
  0x6e   : > { %6885 = vmatprep.mubr.msk.f32.mxu0 %vm477_vm1, %v8081_v47 }
  0x71   : > { %6886 = vmatmul.mubr.msk.f32.gmra.mrb[12].mxu0 %vm477_vm1, %v8088_v48 }
  0x72   : > { %6888 = vmatprep.mubr.msk.f32.mxu0 %vm477_vm1, %v8091_v49 }
  0x75   : > { %6889 = vmatmul.mubr.msk.f32.gmra.mrb[14].mxu0 %vm477_vm1, %v8098_v50 }
  0x76   : > { %6891 = vmatprep.mubr.msk.f32.mxu0 %vm477_vm1, %v8101_v51 }
  0x79   : > { %6892 = vmatmul.mubr.msk.f32.gmra.mrb[16].mxu0 %vm477_vm1, %v8108_v52 }
  0x7a   : > { %6894 = vmatprep.mubr.msk.f32.mxu0 %vm477_vm1, %v8111_v53 }
  0x7d   : > { %6895 = vmatmul.mubr.msk.f32.gmra.mrb[18].mxu0 %vm477_vm1, %v8118_v54 }
  0x7e   : > { %6897 = vmatprep.mubr.msk.f32.mxu0 %vm477_vm1, %v8121_v55 }
  0x81   : > { %6898 = vmatmul.mubr.msk.f32.gmra.mrb[20].mxu0 %vm477_vm1, %v8128_v56 }
  0x82   : > { %6900 = vmatprep.mubr.msk.f32.mxu0 %vm477_vm1, %v8131_v57 }
  0x85   : > { %6901 = vmatmul.mubr.msk.f32.gmra.mrb[22].mxu0 %vm477_vm1, %v8138_v58 }
  0x86   : > { %6903 = vmatprep.mubr.msk.f32.mxu0 %vm477_vm1, %v8141_v59 }
  0x89   : > { %6904 = vmatmul.mubr.msk.f32.gmra.mrb[24].mxu0 %vm477_vm1, %v8148_v60 }
  0x8a   : > { %6906 = vmatprep.mubr.msk.f32.mxu0 %vm477_vm1, %v8151_v61 }
  0x8d   : > { %6907 = vmatmul.mubr.msk.f32.gmra.mrb[26].mxu0 %vm477_vm1, %v8158_v62  ;;  %v8212_v62 = vld [vmem:[%s7859_s30 + $0x49] sm:$0xff] }
  0x8e   : > { %6911 = vmatprep.mubr.msk.f32.mxu0 %vm477_vm1, %v1763_v63  ;;  %9330 = vst [vmem:[#allocation9_spill] sm:$0xff] %v8212_v62  ;;  %v8227_v63 = vld [vmem:[%s7859_s30 + $0x59] sm:$0xff] }
  0x8f   : > { %9332 = vst [vmem:[#allocation11_spill] sm:$0xff] %v8227_v63 }
  0x91   : > { %6912 = vmatmul.mubr.msk.f32.vlgmr.msra.gmra.mrb[0].mxu0 %vm477_vm1, %v1764_v1  ;;  %v8244_v1 = vld [vmem:[%s7859_s30 + $0x71] sm:$0xff] }
  0x92   : > { %6954 = vmatpush3.msk.msra.mxu0 %vm562_vm0, %v6112_v38  ;;  %6914 = vmatprep.mubr.msk.f32.mxu0 %vm477_vm1, %v8166_v2  ;;  %v8199_v38 = vld [vmem:[%s7859_s30 + $0x41] sm:$0xff]  ;;  %9335 = vst [vmem:[#allocation14_spill] sm:$0xff] %v8244_v1 }
  0x93   : > { %6997 = vmatprep.subr.msk.mxu0 %vm562_vm0, %v8171_v3  ;;  %9329 = vst [vmem:[#allocation8_spill] sm:$0xff] %v8199_v38  ;;  %6747 = vmatprep.mubr.msk.f32.mxu1 %vm477_vm1, %v8199_v38 }
  0x94   : > { %6748 = vmatmul.mubr.msk.f32.gmra.mrb[8].mxu1 %vm477_vm1, %v8212_v62 }
  0x95   : > { %6915 = vmatmul.mubr.msk.f32.gmra.mrb[2].mxu0 %vm477_vm1, %v8178_v4  ;;  %6750 = vmatprep.mubr.msk.f32.mxu1 %vm477_vm1, %v8217_v6 }
  0x96   : > { %6917 = vmatprep.mubr.msk.f32.mxu0 %vm477_vm1, %v8181_v5  ;;  %v8258_v5 = vld [vmem:[%s7859_s30 + $0x81] sm:$0xff] }
  0x97   : > { %9337 = vst [vmem:[#allocation16_spill] sm:$0xff] %v8258_v5 }
  0x98   : > { %6751 = vmatmul.mubr.msk.f32.gmra.mrb[10].mxu1 %vm477_vm1, %v8227_v63 }
  0x99   : > { %6918 = vmatmul.mubr.msk.f32.gmra.mrb[4].mxu0 %vm477_vm1, %v8195_v12  ;;  %v8272_v12 = vld [vmem:[%s7859_s30 + $0x91] sm:$0xff]  ;;  %6753 = vmatprep.mubr.msk.f32.mxu1 %vm477_vm1, %v8230_v9 }
  0x9a   : > { %6920 = vmatprep.mubr.msk.f32.mxu0 %vm477_vm1, %v8199_v38  ;;  %v8269_v38 = vld [vmem:[%s7859_s30 + $0x89] sm:$0xff]  ;;  %9339 = vst [vmem:[#allocation18_spill] sm:$0xff] %v8272_v12 }
  0x9b   : > { %9338 = vst [vmem:[#allocation17_spill] sm:$0xff] %v8269_v38 }
  0x9c   : > { %6754 = vmatmul.mubr.msk.f32.gmra.mrb[12].mxu1 %vm477_vm1, %v8241_v0 }
  0x9d   : > { %6921 = vmatmul.mubr.msk.f32.gmra.mrb[6].mxu0 %vm477_vm1, %v8212_v62  ;;  %v8286_v62 = vld [vmem:[%s7859_s30 + $0xa1] sm:$0xff]  ;;  %6756 = vmatprep.mubr.msk.f32.mxu1 %vm477_vm1, %v8244_v1 }
  0x9e   : > { %6923 = vmatprep.mubr.msk.f32.mxu0 %vm477_vm1, %v8217_v6  ;;  %v8283_v6 = vld [vmem:[%s7859_s30 + $0x99] sm:$0xff]  ;;  %9340 = vst [vmem:[#allocation19_spill] sm:$0xff] %v8286_v62 }
  0xa0   : > { %6757 = vmatmul.mubr.msk.f32.gmra.mrb[14].mxu1 %vm477_vm1, %v8255_v10 }
  0xa1   : > { %6924 = vmatmul.mubr.msk.f32.gmra.mrb[8].mxu0 %vm477_vm1, %v8227_v63  ;;  %v8300_v63 = vld [vmem:[%s7859_s30 + $0xb1] sm:$0xff]  ;;  %6759 = vmatprep.mubr.msk.f32.mxu1 %vm477_vm1, %v8258_v5 }
  0xa2   : > { %6926 = vmatprep.mubr.msk.f32.mxu0 %vm477_vm1, %v8230_v9  ;;  %v8297_v9 = vld [vmem:[%s7859_s30 + $0xa9] sm:$0xff]  ;;  %9341 = vst [vmem:[#allocation20_spill] sm:$0xff] %v8300_v63 }
  0xa4   : > { %6760 = vmatmul.mubr.msk.f32.gmra.mrb[16].mxu1 %vm477_vm1, %v8269_v38 }
  0xa5   : > { %6927 = vmatmul.mubr.msk.f32.gmra.mrb[10].mxu0 %vm477_vm1, %v8241_v0  ;;  %v8314_v0 = vld [vmem:[%s7859_s30 + $0xc1] sm:$0xff]  ;;  %6762 = vmatprep.mubr.msk.f32.mxu1 %vm477_vm1, %v8272_v12 }
  0xa6   : > { %6929 = vmatprep.mubr.msk.f32.mxu0 %vm477_vm1, %v8244_v1  ;;  %v8311_v1 = vld [vmem:[%s7859_s30 + $0xb9] sm:$0xff] }
  0xa8   : > { %6763 = vmatmul.mubr.msk.f32.gmra.mrb[18].mxu1 %vm477_vm1, %v8283_v6 }
  0xa9   : > { %6930 = vmatmul.mubr.msk.f32.gmra.mrb[12].mxu0 %vm477_vm1, %v8255_v10  ;;  %v8328_v10 = vld [vmem:[%s7859_s30 + $0xd1] sm:$0xff]  ;;  %6765 = vmatprep.mubr.msk.f32.mxu1 %vm477_vm1, %v8286_v62 }
  0xaa   : > { %6932 = vmatprep.mubr.msk.f32.mxu0 %vm477_vm1, %v8258_v5  ;;  %v8325_v5 = vld [vmem:[%s7859_s30 + $0xc9] sm:$0xff] }
  0xac   : > { %6766 = vmatmul.mubr.msk.f32.gmra.mrb[20].mxu1 %vm477_vm1, %v8297_v9 }
  0xad   : > { %6933 = vmatmul.mubr.msk.f32.gmra.mrb[14].mxu0 %vm477_vm1, %v8269_v38  ;;  %v8342_v38 = vld [vmem:[%s7859_s30 + $0xe1] sm:$0xff]  ;;  %6768 = vmatprep.mubr.msk.f32.mxu1 %vm477_vm1, %v8300_v63 }
  0xae   : > { %6935 = vmatprep.mubr.msk.f32.mxu0 %vm477_vm1, %v8272_v12  ;;  %v8339_v12 = vld [vmem:[%s7859_s30 + $0xd9] sm:$0xff] }
  0xb0   : > { %6769 = vmatmul.mubr.msk.f32.gmra.mrb[22].mxu1 %vm477_vm1, %v8311_v1 }
  0xb1   : > { %6936 = vmatmul.mubr.msk.f32.gmra.mrb[16].mxu0 %vm477_vm1, %v8283_v6  ;;  %6771 = vmatprep.mubr.msk.f32.mxu1 %vm477_vm1, %v8314_v0 }
  0xb2   : > { %6938 = vmatprep.mubr.msk.f32.mxu0 %vm477_vm1, %v8286_v62  ;;  %v8353_v62 = vld [vmem:[%s7859_s30 + $0xe9] sm:$0xff] }
  0xb4   : > { %6772 = vmatmul.mubr.msk.f32.gmra.mrb[24].mxu1 %vm477_vm1, %v8325_v5 }
  0xb5   : > { %6939 = vmatmul.mubr.msk.f32.gmra.mrb[18].mxu0 %vm477_vm1, %v8297_v9  ;;  %6774 = vmatprep.mubr.msk.f32.mxu1 %vm477_vm1, %v8328_v10 }
  0xb6   : > { %6941 = vmatprep.mubr.msk.f32.mxu0 %vm477_vm1, %v8300_v63  ;;  %v6172_v63 = vld [vmem:[%s9298_s1 + $0x1c] sm:$0x7] }
  0xb8   : > { %6775 = vmatmul.mubr.msk.f32.gmra.mrb[26].mxu1 %vm477_vm1, %v8339_v12 }
  0xb9   : > { %6942 = vmatmul.mubr.msk.f32.gmra.mrb[20].mxu0 %vm477_vm1, %v8311_v1  ;;  %6788 = vmatprep.mubr.msk.f32.mxu1 %vm477_vm1, %v8040_v39 }
  0xba   : > { %6944 = vmatprep.mubr.msk.f32.mxu0 %vm477_vm1, %v8314_v0 }
  0xbc   : > { %6789 = vmatmul.mubr.msk.f32.vlgmr.msra.gmra.mrb[6].mxu1 %vm477_vm1, %v8048_v40 }
  0xbd   : > { %6945 = vmatmul.mubr.msk.f32.gmra.mrb[22].mxu0 %vm477_vm1, %v8325_v5  ;;  %6791 = vmatprep.mubr.msk.f32.mxu1 %vm477_vm1, %v8051_v41 }
  0xbe   : > { %6947 = vmatprep.mubr.msk.f32.mxu0 %vm477_vm1, %v8328_v10 }
  0xc0   : > { %6792 = vmatmul.mubr.msk.f32.gmra.mrb[8].mxu1 %vm477_vm1, %v8058_v42 }
  0xc1   : > { %6948 = vmatmul.mubr.msk.f32.gmra.mrb[24].mxu0 %vm477_vm1, %v8339_v12  ;;  %6794 = vmatprep.mubr.msk.f32.mxu1 %vm477_vm1, %v8061_v43 }
  0xc2   : > { %6950 = vmatprep.mubr.msk.f32.mxu0 %vm477_vm1, %v8342_v38 }
  0xc4   : > { %6795 = vmatmul.mubr.msk.f32.gmra.mrb[10].mxu1 %vm477_vm1, %v8068_v44 }
  0xc5   : > { %6951 = vmatmul.mubr.msk.f32.gmra.mrb[26].mxu0 %vm477_vm1, %v8353_v62  ;;  %6797 = vmatprep.mubr.msk.f32.mxu1 %vm477_vm1, %v8071_v45 }
  0xc6   : > { %6955 = vmatprep.mubr.msk.f32.mxu0 %vm477_vm1, %v7894_v11  ;;  %v8466_v11 = vld [vmem:[%s7859_s30 + $0xe2] sm:$0xff] }
  0xc8   : > { %6798 = vmatmul.mubr.msk.f32.gmra.mrb[12].mxu1 %vm477_vm1, %v8078_v46 }
  0xc9   : > { %6956 = vmatmul.mubr.msk.f32.vlgmr.msra.gmra.mrb[0].mxu0 %vm477_vm1, %v7904_v13  ;;  %6800 = vmatprep.mubr.msk.f32.mxu1 %vm477_vm1, %v8081_v47  ;;  %v8475_v13 = vld [vmem:[%s7859_s30 + $0xea] sm:$0xff] }
  0xca   : > { %6998 = vmatpush3.msk.msra.mxu0 %vm562_vm0, %v8171_v3  ;;  %6958 = vmatprep.mubr.msk.f32.mxu0 %vm477_vm1, %v7907_v14  ;;  %v6202_v3 = vld [vmem:[%s9298_s1 + $0x20] sm:$0x7] }
  0xcb   : > { %7041 = vmatprep.subr.msk.mxu0 %vm562_vm0, %v6172_v63 }
  0xcc   : > { %6801 = vmatmul.mubr.msk.f32.gmra.mrb[14].mxu1 %vm477_vm1, %v8088_v48 }
  0xcd   : > { %6959 = vmatmul.mubr.msk.f32.gmra.mrb[2].mxu0 %vm477_vm1, %v7915_v15  ;;  %6803 = vmatprep.mubr.msk.f32.mxu1 %vm477_vm1, %v8091_v49 }
  0xce   : > { %6961 = vmatprep.mubr.msk.f32.mxu0 %vm477_vm1, %v7918_v16 }
  0xd0   : > { %6804 = vmatmul.mubr.msk.f32.gmra.mrb[16].mxu1 %vm477_vm1, %v8098_v50 }
  0xd1   : > { %6962 = vmatmul.mubr.msk.f32.gmra.mrb[4].mxu0 %vm477_vm1, %v7925_v17  ;;  %6806 = vmatprep.mubr.msk.f32.mxu1 %vm477_vm1, %v8101_v51 }
  0xd2   : > { %6964 = vmatprep.mubr.msk.f32.mxu0 %vm477_vm1, %v7928_v18 }
  0xd4   : > { %6807 = vmatmul.mubr.msk.f32.gmra.mrb[18].mxu1 %vm477_vm1, %v8108_v52 }
  0xd5   : > { %6965 = vmatmul.mubr.msk.f32.gmra.mrb[6].mxu0 %vm477_vm1, %v7935_v19  ;;  %6809 = vmatprep.mubr.msk.f32.mxu1 %vm477_vm1, %v8111_v53 }
  0xd6   : > { %6967 = vmatprep.mubr.msk.f32.mxu0 %vm477_vm1, %v7938_v20 }
  0xd8   : > { %6810 = vmatmul.mubr.msk.f32.gmra.mrb[20].mxu1 %vm477_vm1, %v8118_v54 }
  0xd9   : > { %6968 = vmatmul.mubr.msk.f32.gmra.mrb[8].mxu0 %vm477_vm1, %v7945_v21  ;;  %6812 = vmatprep.mubr.msk.f32.mxu1 %vm477_vm1, %v8121_v55 }
  0xda   : > { %6970 = vmatprep.mubr.msk.f32.mxu0 %vm477_vm1, %v7948_v22 }
  0xdc   : > { %6813 = vmatmul.mubr.msk.f32.gmra.mrb[22].mxu1 %vm477_vm1, %v8128_v56 }
  0xdd   : > { %6971 = vmatmul.mubr.msk.f32.gmra.mrb[10].mxu0 %vm477_vm1, %v7955_v23  ;;  %6815 = vmatprep.mubr.msk.f32.mxu1 %vm477_vm1, %v8131_v57 }
  0xde   : > { %6973 = vmatprep.mubr.msk.f32.mxu0 %vm477_vm1, %v7958_v24 }
  0xe0   : > { %6816 = vmatmul.mubr.msk.f32.gmra.mrb[24].mxu1 %vm477_vm1, %v8138_v58 }
  0xe1   : > { %6974 = vmatmul.mubr.msk.f32.gmra.mrb[12].mxu0 %vm477_vm1, %v7965_v25  ;;  %6818 = vmatprep.mubr.msk.f32.mxu1 %vm477_vm1, %v8141_v59 }
  0xe2   : > { %6976 = vmatprep.mubr.msk.f32.mxu0 %vm477_vm1, %v7968_v26 }
  0xe4   : > { %6819 = vmatmul.mubr.msk.f32.gmra.mrb[26].mxu1 %vm477_vm1, %v8148_v60 }
  0xe5   : > { %6977 = vmatmul.mubr.msk.f32.gmra.mrb[14].mxu0 %vm477_vm1, %v7975_v27 }
  0xe6   : > { %6979 = vmatprep.mubr.msk.f32.mxu0 %vm477_vm1, %v7978_v28 }
  0xe9   : > { %6980 = vmatmul.mubr.msk.f32.gmra.mrb[16].mxu0 %vm477_vm1, %v7985_v29 }
  0xea   : > { %6982 = vmatprep.mubr.msk.f32.mxu0 %vm477_vm1, %v7988_v30 }
  0xed   : > { %6983 = vmatmul.mubr.msk.f32.gmra.mrb[18].mxu0 %vm477_vm1, %v7995_v31 }
  0xee   : > { %6985 = vmatprep.mubr.msk.f32.mxu0 %vm477_vm1, %v7998_v32 }
  0xf1   : > { %6986 = vmatmul.mubr.msk.f32.gmra.mrb[20].mxu0 %vm477_vm1, %v8005_v33 }
  0xf2   : > { %6988 = vmatprep.mubr.msk.f32.mxu0 %vm477_vm1, %v8008_v34 }
  0xf5   : > { %6989 = vmatmul.mubr.msk.f32.gmra.mrb[22].mxu0 %vm477_vm1, %v8015_v35 }
  0xf6   : > { %6991 = vmatprep.mubr.msk.f32.mxu0 %vm477_vm1, %v8018_v36 }
  0xf9   : > { %6992 = vmatmul.mubr.msk.f32.gmra.mrb[24].mxu0 %vm477_vm1, %v8025_v37 }
  0xfa   : > { %6994 = vmatprep.mubr.msk.f32.mxu0 %vm477_vm1, %v8466_v11 }
  0xfd   : > { %6995 = vmatmul.mubr.msk.f32.gmra.mrb[26].mxu0 %vm477_vm1, %v8475_v13 }
  0xfe   : > { %6999 = vmatprep.mubr.msk.f32.mxu0 %vm477_vm1, %v7878_v7  ;;  %v2489_v7 = vld [vmem:[%s7859_s30 + $0xf0] sm:$0xff] }
 0x101   : > { %7000 = vmatmul.mubr.msk.f32.vlgmr.msra.gmra.mrb[0].mxu0 %vm477_vm1, %v7886_v8  ;;  %v9342_v8 = vld [vmem:[#allocation5_spill] sm:$0xff] }
 0x102   : > { %7042 = vmatpush3.msk.msra.mxu0 %vm562_vm0, %v6172_v63  ;;  %7002 = vmatprep.mubr.msk.f32.mxu0 %vm477_vm1, %v8040_v39  ;;  %v2490_v39 = vld [vmem:[%s7859_s30 + $0xf8] sm:$0xff] }
 0x103   : > { %7085 = vmatprep.subr.msk.mxu0 %vm562_vm0, %v6202_v3 }
 0x105   : > { %7003 = vmatmul.mubr.msk.f32.gmra.mrb[2].mxu0 %vm477_vm1, %v8048_v40  ;;  %v9343_v40 = vld [vmem:[#allocation6_spill] sm:$0xff] }
 0x106   : > { %7005 = vmatprep.mubr.msk.f32.mxu0 %vm477_vm1, %v8051_v41  ;;  %v9344_v41 = vld [vmem:[#allocation7_spill] sm:$0xff] }
 0x109   : > { %7006 = vmatmul.mubr.msk.f32.gmra.mrb[4].mxu0 %vm477_vm1, %v8058_v42  ;;  %v9345_v42 = vld [vmem:[#allocation8_spill] sm:$0xff] }
 0x10a   : > { %7008 = vmatprep.mubr.msk.f32.mxu0 %vm477_vm1, %v8061_v43  ;;  %v9346_v43 = vld [vmem:[#allocation9_spill] sm:$0xff] }
 0x10d   : > { %7009 = vmatmul.mubr.msk.f32.gmra.mrb[6].mxu0 %vm477_vm1, %v8068_v44  ;;  %v9347_v44 = vld [vmem:[#allocation10_spill] sm:$0xff] }
 0x10e   : > { %7011 = vmatprep.mubr.msk.f32.mxu0 %vm477_vm1, %v8071_v45  ;;  %v9348_v45 = vld [vmem:[#allocation11_spill] sm:$0xff] }
 0x111   : > { %7012 = vmatmul.mubr.msk.f32.gmra.mrb[8].mxu0 %vm477_vm1, %v8078_v46  ;;  %v9349_v46 = vld [vmem:[#allocation12_spill] sm:$0xff] }
 0x112   : > { %7014 = vmatprep.mubr.msk.f32.mxu0 %vm477_vm1, %v8081_v47  ;;  %v9350_v47 = vld [vmem:[#allocation13_spill] sm:$0xff] }
 0x115   : > { %7015 = vmatmul.mubr.msk.f32.gmra.mrb[10].mxu0 %vm477_vm1, %v8088_v48  ;;  %v9351_v48 = vld [vmem:[#allocation14_spill] sm:$0xff] }
 0x116   : > { %7017 = vmatprep.mubr.msk.f32.mxu0 %vm477_vm1, %v8091_v49  ;;  %v9352_v49 = vld [vmem:[#allocation15_spill] sm:$0xff] }
 0x119   : > { %7018 = vmatmul.mubr.msk.f32.gmra.mrb[12].mxu0 %vm477_vm1, %v8098_v50  ;;  %v9353_v50 = vld [vmem:[#allocation16_spill] sm:$0xff] }
 0x11a   : > { %7020 = vmatprep.mubr.msk.f32.mxu0 %vm477_vm1, %v8101_v51  ;;  %v9354_v51 = vld [vmem:[#allocation17_spill] sm:$0xff] }
 0x11d   : > { %7021 = vmatmul.mubr.msk.f32.gmra.mrb[14].mxu0 %vm477_vm1, %v8108_v52  ;;  %v9355_v52 = vld [vmem:[#allocation18_spill] sm:$0xff] }
 0x11e   : > { %7023 = vmatprep.mubr.msk.f32.mxu0 %vm477_vm1, %v8111_v53  ;;  %v9356_v53 = vld [vmem:[#allocation19_spill] sm:$0xff] }
 0x121   : > { %7024 = vmatmul.mubr.msk.f32.gmra.mrb[16].mxu0 %vm477_vm1, %v8118_v54  ;;  %v9357_v54 = vld [vmem:[#allocation20_spill] sm:$0xff] }
 0x122   : > { %7026 = vmatprep.mubr.msk.f32.mxu0 %vm477_vm1, %v8121_v55  ;;  %v2839_v55 = vld [vmem:[%s7859_s30 + $0xf1] sm:$0xff] }
 0x125   : > { %7027 = vmatmul.mubr.msk.f32.gmra.mrb[18].mxu0 %vm477_vm1, %v8128_v56  ;;  %v2840_v56 = vld [vmem:[%s7859_s30 + $0xf9] sm:$0xff] }
 0x126   : > { %7029 = vmatprep.mubr.msk.f32.mxu0 %vm477_vm1, %v8131_v57 }
 0x129   : > { %7030 = vmatmul.mubr.msk.f32.gmra.mrb[20].mxu0 %vm477_vm1, %v8138_v58 }
 0x12a   : > { %7032 = vmatprep.mubr.msk.f32.mxu0 %vm477_vm1, %v8141_v59 }
 0x12d   : > { %7033 = vmatmul.mubr.msk.f32.gmra.mrb[22].mxu0 %vm477_vm1, %v8148_v60 }
 0x12e   : > { %7035 = vmatprep.mubr.msk.f32.mxu0 %vm477_vm1, %v8151_v61 }
 0x130   : > { %v8596_v57 = vpop.f32.mrb[0].mxu1 }
 0x131   : > { %7036 = vmatmul.mubr.msk.f32.gmra.mrb[24].mxu0 %vm477_vm1, %v9342_v8  ;;  %v8598_v58 = vpop.f32.mrb[1].mxu1 }
 0x132   : > { %7038 = vmatprep.mubr.msk.f32.mxu0 %vm477_vm1, %v2489_v7 }
 0x134   : > { %v8603_v59 = vpop.f32.mrb[2].mxu1 }
 0x135   : > { %7039 = vmatmul.mubr.msk.f32.gmra.mrb[26].mxu0 %vm477_vm1, %v2490_v39  ;;  %v8605_v60 = vpop.f32.mrb[3].mxu1 }
 0x136   : > { %7043 = vmatprep.mubr.msk.f32.mxu0 %vm477_vm1, %v8166_v2  ;;  %v7763_v2 = vmov 0.0|0.0  }
 0x137   : > { %7434 = vmatprep.subr.bf16.mxu1 %v7763_v2 }
 0x138   : > { %v8611_v61 = vpop.f32.mrb[4].mxu1 }
 0x139   : > { %7044 = vmatmul.mubr.msk.f32.vlgmr.msra.gmra.mrb[0].mxu0 %vm477_vm1, %v8178_v4  ;;  %v6234_v4 = vld [vmem:[%s9301_s4 + $0x10] sm:$0xff] }
 0x13a   : > { %7086 = vmatpush3.msk.msra.mxu0 %vm562_vm0, %v6202_v3  ;;  %7046 = vmatprep.mubr.msk.f32.mxu0 %vm477_vm1, %v9343_v40  ;;  %vm3677_vm0 = vcmask 79872  }
 0x13d   : > { %7047 = vmatmul.mubr.msk.f32.gmra.mrb[2].mxu0 %vm477_vm1, %v9344_v41 }
 0x13e   : > { %7049 = vmatprep.mubr.msk.f32.mxu0 %vm477_vm1, %v9345_v42 }
 0x141   : > { %7050 = vmatmul.mubr.msk.f32.gmra.mrb[4].mxu0 %vm477_vm1, %v9346_v43 }
 0x142   : > { %7052 = vmatprep.mubr.msk.f32.mxu0 %vm477_vm1, %v9347_v44 }
 0x145   : > { %7053 = vmatmul.mubr.msk.f32.gmra.mrb[6].mxu0 %vm477_vm1, %v9348_v45 }
 0x146   : > { %7055 = vmatprep.mubr.msk.f32.mxu0 %vm477_vm1, %v9349_v46 }
 0x149   : > { %7056 = vmatmul.mubr.msk.f32.gmra.mrb[8].mxu0 %vm477_vm1, %v9350_v47 }
 0x14a   : > { %7058 = vmatprep.mubr.msk.f32.mxu0 %vm477_vm1, %v9351_v48 }
 0x14d   : > { %7059 = vmatmul.mubr.msk.f32.gmra.mrb[10].mxu0 %vm477_vm1, %v9352_v49 }
 0x14e   : > { %7061 = vmatprep.mubr.msk.f32.mxu0 %vm477_vm1, %v9353_v50 }
 0x151   : > { %7062 = vmatmul.mubr.msk.f32.gmra.mrb[12].mxu0 %vm477_vm1, %v9354_v51 }
 0x152   : > { %7064 = vmatprep.mubr.msk.f32.mxu0 %vm477_vm1, %v9355_v52 }
 0x155   : > { %7065 = vmatmul.mubr.msk.f32.gmra.mrb[14].mxu0 %vm477_vm1, %v8283_v6  ;;  %v7766_v6 = vmov 0.0  }
 0x156   : > { %7067 = vmatprep.mubr.msk.f32.mxu0 %vm477_vm1, %v9356_v53  ;;  %7133 = vmatprep.mubr.msk.f32.mxu1 %vm7765_vm6, %v7766_v6  ;;  %415 = vst.msk [vmem:[#allocation3 + $0x31] sm:$0xff] %vm414_vm5, %v7766_v6 }
 0x159   : > { %7068 = vmatmul.mubr.msk.f32.gmra.mrb[16].mxu0 %vm477_vm1, %v8297_v9  ;;  %v8730_v9 = vld [vmem:[%s9299_s2] ss:$0 sm:$0xff] }
 0x15a   : > { %7070 = vmatprep.mubr.msk.f32.mxu0 %vm477_vm1, %v9357_v54 }
 0x15d   : > { %7071 = vmatmul.mubr.msk.f32.gmra.mrb[18].mxu0 %vm477_vm1, %v8311_v1 }
 0x15e   : > { %7073 = vmatprep.mubr.msk.f32.mxu0 %vm477_vm1, %v8314_v0 }
 0x161   : > { %7074 = vmatmul.mubr.msk.f32.gmra.mrb[20].mxu0 %vm477_vm1, %v8325_v5  ;;  %v6235_v5 = vld [vmem:[%s9301_s4 + $0x18] sm:$0x3] }
 0x162   : > { %7076 = vmatprep.mubr.msk.f32.mxu0 %vm477_vm1, %v8328_v10  ;;  %v8736_v10 = vld [vmem:[%s9300_s3] ss:$0 sm:$0xff] }
 0x165   : > { %7077 = vmatmul.mubr.msk.f32.gmra.mrb[22].mxu0 %vm477_vm1, %v8339_v12  ;;  %v7435_v12 = vpack.c.bf16 %v6235_v5, %v6234_v4 }
 0x166   : > { %7079 = vmatprep.mubr.msk.f32.mxu0 %vm477_vm1, %v8342_v38 }
 0x167   : > { %7437 = vmatpush3.bf16.msk.msra.mxu1 %vm8716_vm4, %v7435_v12 }
 0x168   : > { %7438 = vmatprep.subr.bf16.mxu1 %v7763_v2 }
 0x169   : > { %7080 = vmatmul.mubr.msk.f32.gmra.mrb[24].mxu0 %vm477_vm1, %v8353_v62  ;;  %v8613_v62 = vpop.f32.mrb[5].mxu1 }
 0x16a   : > { %7082 = vmatprep.mubr.msk.f32.mxu0 %vm477_vm1, %v2839_v55 }
 0x16d   : > { %7083 = vmatmul.mubr.msk.f32.gmra.mrb[26].mxu0 %vm477_vm1, %v2840_v56 }
 0x16e   : > { %7087 = vmatprep.mubr.msk.f32.mxu0 %vm477_vm1, %v7907_v14  ;;  %v3189_v14 = vld [vmem:[%s7859_s30 + $0xf2] sm:$0xff] }
 0x171   : > { %7088 = vmatmul.mubr.msk.f32.vlgmr.msra.gmra.mrb[0].mxu0 %vm477_vm1, %v7915_v15  ;;  %v3190_v15 = vld [vmem:[%s7859_s30 + $0xfa] sm:$0xff]  ;;  %s413_s30 = scalar_lea.vmem %s9309_s12, %s7730_s27 }
 0x172   : > { %7090 = vmatprep.mubr.msk.f32.mxu0 %vm477_vm1, %v7918_v16 }
 0x175   : > { %7091 = vmatmul.mubr.msk.f32.gmra.mrb[2].mxu0 %vm477_vm1, %v7925_v17 }
 0x176   : > { %7093 = vmatprep.mubr.msk.f32.mxu0 %vm477_vm1, %v7928_v18 }
 0x179   : > { %7094 = vmatmul.mubr.msk.f32.gmra.mrb[4].mxu0 %vm477_vm1, %v7935_v19 }
 0x17a   : > { %7096 = vmatprep.mubr.msk.f32.mxu0 %vm477_vm1, %v7938_v20 }
 0x17d   : > { %7097 = vmatmul.mubr.msk.f32.gmra.mrb[6].mxu0 %vm477_vm1, %v7945_v21 }
 0x17e   : > { %7099 = vmatprep.mubr.msk.f32.mxu0 %vm477_vm1, %v7948_v22 }
 0x181   : > { %7100 = vmatmul.mubr.msk.f32.gmra.mrb[8].mxu0 %vm477_vm1, %v7955_v23 }
 0x182   : > { %7102 = vmatprep.mubr.msk.f32.mxu0 %vm477_vm1, %v7958_v24 }
 0x185   : > { %7103 = vmatmul.mubr.msk.f32.gmra.mrb[10].mxu0 %vm477_vm1, %v7965_v25 }
 0x186   : > { %7105 = vmatprep.mubr.msk.f32.mxu0 %vm477_vm1, %v7968_v26 }
 0x189   : > { %7106 = vmatmul.mubr.msk.f32.gmra.mrb[12].mxu0 %vm477_vm1, %v7975_v27 }
 0x18a   : > { %7108 = vmatprep.mubr.msk.f32.mxu0 %vm477_vm1, %v7978_v28 }
 0x18d   : > { %7109 = vmatmul.mubr.msk.f32.gmra.mrb[14].mxu0 %vm477_vm1, %v7985_v29 }
 0x18e   : > { %7111 = vmatprep.mubr.msk.f32.mxu0 %vm477_vm1, %v7988_v30 }
 0x18f   : > { %v8664_v16 = vpop.f32.mrb[6].mxu1 }
 0x190   : > { %v8666_v17 = vpop.f32.mrb[7].mxu1 }
 0x191   : > { %7112 = vmatmul.mubr.msk.f32.gmra.mrb[16].mxu0 %vm477_vm1, %v7995_v31 }
 0x192   : > { %7114 = vmatprep.mubr.msk.f32.mxu0 %vm477_vm1, %v7998_v32 }
 0x193   : > { %v8669_v18 = vpop.f32.mrb[8].mxu1 }
 0x194   : > { %v8671_v19 = vpop.f32.mrb[9].mxu1 }
 0x195   : > { %7115 = vmatmul.mubr.msk.f32.gmra.mrb[18].mxu0 %vm477_vm1, %v8005_v33 }
 0x196   : > { %7117 = vmatprep.mubr.msk.f32.mxu0 %vm477_vm1, %v8008_v34 }
 0x197   : > { %v8673_v20 = vpop.f32.mrb[10].mxu1 }
 0x198   : > { %v8675_v21 = vpop.f32.mrb[11].mxu1 }
 0x199   : > { %7118 = vmatmul.mubr.msk.f32.gmra.mrb[20].mxu0 %vm477_vm1, %v8015_v35 }
 0x19a   : > { %7120 = vmatprep.mubr.msk.f32.mxu0 %vm477_vm1, %v8018_v36 }
 0x19b   : > { %v8677_v22 = vpop.f32.mrb[12].mxu1 }
 0x19c   : > { %v8679_v23 = vpop.f32.mrb[13].mxu1 }
 0x19d   : > { %7121 = vmatmul.mubr.msk.f32.gmra.mrb[22].mxu0 %vm477_vm1, %v8025_v37 }
 0x19e   : > { %7123 = vmatprep.mubr.msk.f32.mxu0 %vm477_vm1, %v8466_v11 }
 0x19f   : > { %v8681_v24 = vpop.f32.mrb[14].mxu1 }
 0x1a0   : > { %v8683_v25 = vpop.f32.mrb[15].mxu1 }
 0x1a1   : > { %7124 = vmatmul.mubr.msk.f32.gmra.mrb[24].mxu0 %vm477_vm1, %v8475_v13 }
 0x1a2   : > { %7126 = vmatprep.mubr.msk.f32.mxu0 %vm477_vm1, %v3189_v14 }
 0x1a3   : > { %v8685_v26 = vpop.f32.mrb[16].mxu1 }
 0x1a4   : > { %v8687_v27 = vpop.f32.mrb[17].mxu1 }
 0x1a5   : > { %7127 = vmatmul.mubr.msk.f32.gmra.mrb[26].mxu0 %vm477_vm1, %v3190_v15 }
 0x1a7   : > { %v8689_v28 = vpop.f32.mrb[18].mxu1 }
 0x1a8   : > { %v8691_v29 = vpop.f32.mrb[19].mxu1 }
 0x1ab   : > { %v8693_v30 = vpop.f32.mrb[20].mxu1 }
 0x1ac   : > { %v8695_v31 = vpop.f32.mrb[21].mxu1 }
 0x1af   : > { %v8697_v32 = vpop.f32.mrb[22].mxu1 }
 0x1b0   : > { %v8699_v33 = vpop.f32.mrb[23].mxu1 }
 0x1b3   : > { %v8701_v34 = vpop.f32.mrb[24].mxu1 }
 0x1b4   : > { %v8703_v35 = vpop.f32.mrb[25].mxu1 }
 0x1b7   : > { %v8705_v36 = vpop.f32.mrb[26].mxu1 }
 0x1b8   : > { %v8707_v37 = vpop.f32.mrb[27].mxu1 }
 0x244   : > { %v7089_v63 = vpop.f32.mrb[0].mxu0 }
 0x245   : > { %v7505_v0 = vadd.f32 %v7089_v63, %v8596_v57  ;;  %v3346_v1 = vpop.f32.mrb[1].mxu0 }
 0x246   : > { %v7506_v11 = vadd.f32 %v3346_v1, %v8598_v58 }
 0x247   : > { %v3521_v13 = vadd.f32 %v7505_v0, %v8730_v9 }
 0x248   : > { %v3520_v3 = vadd.f32 %v7506_v11, %v8730_v9  ;;  %v7092_v7 = vpop.f32.mrb[2].mxu0 }
 0x249   : > { %vm3549_vm7 = vcmp.gt.f32.partialorder %v3521_v13, 0.0  ;;  %v3584_v8 = vmul.f32 %v8736_v10, %v3521_v13  ;;  %v7507_v39 = vadd.f32 %v7092_v7, %v8603_v59  ;;  %v3356_v40 = vpop.f32.mrb[3].mxu0 }
 0x24a   : > { %vm3548_vm8 = vcmp.gt.f32.partialorder %v3520_v3, 0.0  ;;  %v3583_v41 = vmul.f32 %v8736_v10, %v3520_v3  ;;  %v7508_v42 = vadd.f32 %v3356_v40, %v8605_v60 }
 0x24b   : > { %v3612_v43 = vsel %vm3549_vm7, %v3521_v13, %v3584_v8  ;;  %v3523_v44 = vadd.f32 %v7507_v39, %v8730_v9 }
 0x24c   : > { %3640 = vst.msk [vmem:[#allocation2 + $0x8] sm:$0xff] %vm414_vm5, %v3612_v43  ;;  %v3611_v45 = vsel %vm3548_vm8, %v3520_v3, %v3583_v41  ;;  %v3522_v46 = vadd.f32 %v7508_v42, %v8730_v9  ;;  %v7095_v47 = vpop.f32.mrb[4].mxu0 }
 0x24d   : > { %3639 = vst.msk [vmem:[#allocation2] sm:$0xff] %vm414_vm5, %v3611_v45  ;;  %vm3551_vm9 = vcmp.gt.f32.partialorder %v3523_v44, 0.0  ;;  %v3586_v48 = vmul.f32 %v8736_v10, %v3523_v44  ;;  %v7509_v49 = vadd.f32 %v7095_v47, %v8611_v61  ;;  %v3366_v50 = vpop.f32.mrb[5].mxu0 }
 0x24e   : > { %vm3550_vm10 = vcmp.gt.f32.partialorder %v3522_v46, 0.0  ;;  %v3585_v51 = vmul.f32 %v8736_v10, %v3522_v46  ;;  %v7510_v52 = vadd.f32 %v3366_v50, %v8613_v62 }
 0x24f   : > { %v3614_v53 = vsel %vm3551_vm9, %v3523_v44, %v3586_v48  ;;  %v3525_v54 = vadd.f32 %v7509_v49, %v8730_v9 }
 0x250   : > { %3642 = vst.msk [vmem:[#allocation2 + $0x18] sm:$0xff] %vm414_vm5, %v3614_v53  ;;  %v3613_v55 = vsel %vm3550_vm10, %v3522_v46, %v3585_v51  ;;  %v3524_v56 = vadd.f32 %v7510_v52, %v8730_v9  ;;  %v7098_v57 = vpop.f32.mrb[6].mxu0 }
 0x251   : > { %3641 = vst.msk [vmem:[#allocation2 + $0x10] sm:$0xff] %vm414_vm5, %v3613_v55  ;;  %vm3553_vm11 = vcmp.gt.f32.partialorder %v3525_v54, 0.0  ;;  %v3588_v58 = vmul.f32 %v8736_v10, %v3525_v54  ;;  %v7511_v59 = vadd.f32 %v7098_v57, %v8664_v16  ;;  %v3376_v60 = vpop.f32.mrb[7].mxu0 }
 0x252   : > { %vm3552_vm12 = vcmp.gt.f32.partialorder %v3524_v56, 0.0  ;;  %v3587_v61 = vmul.f32 %v8736_v10, %v3524_v56  ;;  %v7512_v62 = vadd.f32 %v3376_v60, %v8666_v17 }
 0x253   : > { %v3616_v14 = vsel %vm3553_vm11, %v3525_v54, %v3588_v58  ;;  %v3527_v15 = vadd.f32 %v7511_v59, %v8730_v9 }
 0x254   : > { %3644 = vst.msk [vmem:[#allocation2 + $0x28] sm:$0xff] %vm414_vm5, %v3616_v14  ;;  %v3615_v4 = vsel %vm3552_vm12, %v3524_v56, %v3587_v61  ;;  %v3526_v5 = vadd.f32 %v7512_v62, %v8730_v9  ;;  %v7101_v16 = vpop.f32.mrb[8].mxu0  ;;  %v3667_v1 = vld [vmem:[#allocation2] ss:$2 sm:$0x7f] }
 0x255   : > { %3643 = vst.msk [vmem:[#allocation2 + $0x20] sm:$0xff] %vm414_vm5, %v3615_v4  ;;  %vm3555_vm13 = vcmp.gt.f32.partialorder %v3527_v15, 0.0  ;;  %v3590_v12 = vmul.f32 %v8736_v10, %v3527_v15  ;;  %v7513_v0 = vadd.f32 %v7101_v16, %v8669_v18  ;;  %v3386_v17 = vpop.f32.mrb[9].mxu0  ;;  %v3672_v11 = vld [vmem:[#allocation2 + $0x1] ss:$2 sm:$0x7f] }
 0x256   : > { %vm3554_vm14 = vcmp.gt.f32.partialorder %v3526_v5, 0.0  ;;  %v3589_v63 = vmul.f32 %v8736_v10, %v3526_v5  ;;  %v7514_v3 = vadd.f32 %v3386_v17, %v8671_v19 }
 0x257   : > { %v3618_v13 = vsel %vm3555_vm13, %v3527_v15, %v3590_v12  ;;  %v3529_v40 = vadd.f32 %v7513_v0, %v8730_v9 }
 0x258   : > { %v3669_v7 = vld [vmem:[#allocation2 + $0x10] ss:$2 sm:$0x7f]  ;;  %v3674_v8 = vld [vmem:[#allocation2 + $0x11] ss:$2 sm:$0x7f]  ;;  %v3617_v39 = vsel %vm3554_vm14, %v3526_v5, %v3589_v63  ;;  %v3528_v43 = vadd.f32 %v7514_v3, %v8730_v9 }
 0x259   : > { %3646 = vst.msk [vmem:[#allocation2 + $0x38] sm:$0xff] %vm414_vm5, %v3618_v13  ;;  %v3670_v41 = vmax.f32 %v3667_v1, %v3669_v7  ;;  %v3675_v42 = vmax.f32 %v3672_v11, %v3674_v8  ;;  %3645 = vst.msk [vmem:[#allocation2 + $0x30] sm:$0xff] %vm414_vm5, %v3617_v39  ;;  %v7104_v18 = vpop.f32.mrb[10].mxu0  ;;  %vm3557_vm15 = vcmp.gt.f32.partialorder %v3529_v40, 0.0  ;;  %v3592_v44 = vmul.f32 %v8736_v10, %v3529_v40  ;;  %v3756_v39 = vld [vmem:[%s9301_s4] sm:$0xff] }
 0x25a   : > { %v7515_v45 = vadd.f32 %v7104_v18, %v8673_v20  ;;  %v3396_v19 = vpop.f32.mrb[11].mxu0  ;;  %vm3556_vm1 = vcmp.gt.f32.partialorder %v3528_v43, 0.0  ;;  %v3591_v46 = vmul.f32 %v8736_v10, %v3528_v43 }
 0x25b   : > { %v7516_v47 = vadd.f32 %v3396_v19, %v8675_v21  ;;  %v3676_v48 = vmax.f32 %v3670_v41, %v3675_v42  ;;  %v3620_v49 = vsel %vm3557_vm15, %v3529_v40, %v3592_v44 }
 0x25c   : > { %v3531_v50 = vadd.f32 %v7515_v45, %v8730_v9  ;;  %3648 = vst.msk [vmem:[#allocation2 + $0x48] sm:$0xff] %vm414_vm5, %v3620_v49  ;;  %v3619_v51 = vsel %vm3556_vm1, %v3528_v43, %v3591_v46  ;;  %v7107_v53 = vpop.f32.mrb[12].mxu0  ;;  %v3680_v20 = vld [vmem:[#allocation2 + $0x20] ss:$2 sm:$0x7f] }
 0x25d   : > { %v3530_v52 = vadd.f32 %v7516_v47, %v8730_v9  ;;  %3678 = vst.msk [vmem:[#allocation3] sm:$0x7f] %vm3677_vm0, %v3676_v48  ;;  %v7517_v21 = vadd.f32 %v7107_v53, %v8677_v22  ;;  %v3406_v55 = vpop.f32.mrb[13].mxu0  ;;  %v3685_v56 = vld [vmem:[#allocation2 + $0x21] ss:$2 sm:$0x7f] }
 0x25e   : > { %3647 = vst.msk [vmem:[#allocation2 + $0x40] sm:$0xff] %vm414_vm5, %v3619_v51  ;;  %vm3559_vm2 = vcmp.gt.f32.partialorder %v3531_v50, 0.0  ;;  %v3594_v54 = vmul.f32 %v8736_v10, %v3531_v50  ;;  %v7518_v58 = vadd.f32 %v3406_v55, %v8679_v23  ;;  %v3757_v43 = vld [vmem:[%s9301_s4 + $0x8] sm:$0x3] }
 0x25f   : > { %vm3558_vm3 = vcmp.gt.f32.partialorder %v3530_v52, 0.0  ;;  %v3593_v57 = vmul.f32 %v8736_v10, %v3530_v52  ;;  %v3533_v62 = vadd.f32 %v7517_v21, %v8730_v9  ;;  %v7439_v53 = vpack.c.bf16 %v3757_v43, %v3756_v39 }
 0x260   : > { %v3682_v59 = vld [vmem:[#allocation2 + $0x30] ss:$2 sm:$0x7f]  ;;  %v3687_v60 = vld [vmem:[#allocation2 + $0x31] ss:$2 sm:$0x7f]  ;;  %v3622_v61 = vsel %vm3559_vm2, %v3531_v50, %v3594_v54  ;;  %v3532_v5 = vadd.f32 %v7518_v58, %v8730_v9 }
 0x261   : > { %v3683_v14 = vmax.f32 %v3680_v20, %v3682_v59  ;;  %v3688_v15 = vmax.f32 %v3685_v56, %v3687_v60  ;;  %3650 = vst.msk [vmem:[#allocation2 + $0x58] sm:$0xff] %vm414_vm5, %v3622_v61  ;;  %v3621_v4 = vsel %vm3558_vm3, %v3530_v52, %v3593_v57  ;;  %v7110_v22 = vpop.f32.mrb[14].mxu0  ;;  %vm3561_vm7 = vcmp.gt.f32.partialorder %v3533_v62, 0.0 }
 0x262   : > { %3649 = vst.msk [vmem:[#allocation2 + $0x50] sm:$0xff] %vm414_vm5, %v3621_v4  ;;  %v3596_v12 = vmul.f32 %v8736_v10, %v3533_v62  ;;  %v7519_v23 = vadd.f32 %v7110_v22, %v8681_v24  ;;  %v3416_v16 = vpop.f32.mrb[15].mxu0  ;;  %vm3560_vm8 = vcmp.gt.f32.partialorder %v3532_v5, 0.0  ;;  %v3595_v63 = vmul.f32 %v8736_v10, %v3532_v5 }
 0x263   : > { %v7520_v0 = vadd.f32 %v3416_v16, %v8683_v25  ;;  %v3689_v17 = vmax.f32 %v3683_v14, %v3688_v15 }
 0x264   : > { %v3624_v1 = vsel %vm3561_vm7, %v3533_v62, %v3596_v12  ;;  %v3535_v11 = vadd.f32 %v7519_v23, %v8730_v9  ;;  %v7113_v13 = vpop.f32.mrb[16].mxu0  ;;  %v3623_v3 = vsel %vm3560_vm8, %v3532_v5, %v3595_v63 }
 0x265   : > { %3652 = vst.msk [vmem:[#allocation2 + $0x68] sm:$0xff] %vm414_vm5, %v3624_v1  ;;  %v3534_v7 = vadd.f32 %v7520_v0, %v8730_v9  ;;  %v7521_v8 = vadd.f32 %v7113_v13, %v8685_v26  ;;  %3651 = vst.msk [vmem:[#allocation2 + $0x60] sm:$0xff] %vm414_vm5, %v3623_v3  ;;  %v3426_v25 = vpop.f32.mrb[17].mxu0  ;;  %v3692_v40 = vld [vmem:[#allocation2 + $0x40] ss:$2 sm:$0x7f] }
 0x266   : > { %3690 = vst.msk [vmem:[#allocation3 + $0x7] sm:$0x7f] %vm3677_vm0, %v3689_v17  ;;  %vm3563_vm9 = vcmp.gt.f32.partialorder %v3535_v11, 0.0  ;;  %v3598_v24 = vmul.f32 %v8736_v10, %v3535_v11  ;;  %v7522_v26 = vadd.f32 %v3426_v25, %v8687_v27  ;;  %v3697_v18 = vld [vmem:[#allocation2 + $0x41] ss:$2 sm:$0x7f] }
 0x267   : > { %vm3562_vm10 = vcmp.gt.f32.partialorder %v3534_v7, 0.0  ;;  %v3597_v41 = vmul.f32 %v8736_v10, %v3534_v7  ;;  %v3537_v42 = vadd.f32 %v7521_v8, %v8730_v9 }
 0x268   : > { %v3626_v44 = vsel %vm3563_vm9, %v3535_v11, %v3598_v24  ;;  %v7116_v45 = vpop.f32.mrb[18].mxu0  ;;  %v3536_v49 = vadd.f32 %v7522_v26, %v8730_v9 }
 0x269   : > { %v3694_v19 = vld [vmem:[#allocation2 + $0x50] ss:$2 sm:$0x7f]  ;;  %v3699_v46 = vld [vmem:[#allocation2 + $0x51] ss:$2 sm:$0x7f]  ;;  %v3625_v47 = vsel %vm3562_vm10, %v3534_v7, %v3597_v41  ;;  %v3600_v48 = vmul.f32 %v8736_v10, %v3537_v42  ;;  %v7523_v50 = vadd.f32 %v7116_v45, %v8689_v28 }
 0x26a   : > { %3654 = vst.msk [vmem:[#allocation2 + $0x78] sm:$0xff] %vm414_vm5, %v3626_v44  ;;  %3653 = vst.msk [vmem:[#allocation2 + $0x70] sm:$0xff] %vm414_vm5, %v3625_v47  ;;  %vm3565_vm11 = vcmp.gt.f32.partialorder %v3537_v42, 0.0  ;;  %v3436_v27 = vpop.f32.mrb[19].mxu0  ;;  %v3695_v51 = vmax.f32 %v3692_v40, %v3694_v19  ;;  %v3700_v52 = vmax.f32 %v3697_v18, %v3699_v46  ;;  %vm3564_vm12 = vcmp.gt.f32.partialorder %v3536_v49, 0.0 }
 0x26b   : > { %v3628_v20 = vsel %vm3565_vm11, %v3537_v42, %v3600_v48  ;;  %v3599_v54 = vmul.f32 %v8736_v10, %v3536_v49  ;;  %v3539_v21 = vadd.f32 %v7523_v50, %v8730_v9  ;;  %v7524_v55 = vadd.f32 %v3436_v27, %v8691_v29 }
 0x26c   : > { %3656 = vst.msk [vmem:[#allocation2 + $0x88] sm:$0xff] %vm414_vm5, %v3628_v20  ;;  %v7119_v56 = vpop.f32.mrb[20].mxu0  ;;  %v3701_v28 = vmax.f32 %v3695_v51, %v3700_v52  ;;  %v3704_v29 = vld [vmem:[#allocation2 + $0x60] ss:$2 sm:$0x7f] }
 0x26d   : > { %v3758_v57 = vld [vmem:[#allocation3 + $0x1] sm:$0xff]  ;;  %v3627_v58 = vsel %vm3564_vm12, %v3536_v49, %v3599_v54  ;;  %v3602_v59 = vmul.f32 %v8736_v10, %v3539_v21  ;;  %v7525_v60 = vadd.f32 %v7119_v56, %v8693_v30  ;;  %vm3567_vm13 = vcmp.gt.f32.partialorder %v3539_v21, 0.0  ;;  %v3446_v62 = vpop.f32.mrb[21].mxu0 }
 0x26e   : > { %7134 = vmatmul.mubr.msk.f32.vlgmr.msra.gmra.mrb[28].mxu1 %vm414_vm5, %v3758_v57  ;;  %3655 = vst.msk [vmem:[#allocation2 + $0x80] sm:$0xff] %vm414_vm5, %v3627_v58  ;;  %v3538_v61 = vadd.f32 %v7524_v55, %v8730_v9  ;;  %v7526_v15 = vadd.f32 %v3446_v62, %v8695_v31  ;;  %v3709_v4 = vld [vmem:[#allocation2 + $0x61] ss:$2 sm:$0x7f] }
 0x26f   : > { %7136 = vmatprep.mubr.msk.f32.mxu1 %vm7765_vm6, %v7766_v6  ;;  %3702 = vst.msk [vmem:[#allocation3 + $0xe] sm:$0x7f] %vm3677_vm0, %v3701_v28  ;;  %7441 = vmatpush3.bf16.msk.msra.mxu1 %vm8716_vm4, %v7439_v53  ;;  %v3630_v14 = vsel %vm3567_vm13, %v3539_v21, %v3602_v59  ;;  %v3541_v30 = vadd.f32 %v7525_v60, %v8730_v9 }
 0x270   : > { %7442 = vmatprep.subr.bf16.mxu1 %v7763_v2  ;;  %3658 = vst.msk [vmem:[#allocation2 + $0x98] sm:$0xff] %vm414_vm5, %v3630_v14  ;;  %vm3566_vm14 = vcmp.gt.f32.partialorder %v3538_v61, 0.0  ;;  %v3601_v5 = vmul.f32 %v8736_v10, %v3538_v61  ;;  %v7122_v22 = vpop.f32.mrb[22].mxu0  ;;  %v3540_v63 = vadd.f32 %v7526_v15, %v8730_v9 }
 0x271   : > { %v3706_v12 = vld [vmem:[#allocation2 + $0x70] ss:$2 sm:$0x7f]  ;;  %v3711_v23 = vld [vmem:[#allocation2 + $0x71] ss:$2 sm:$0x7f]  ;;  %v3604_v16 = vmul.f32 %v8736_v10, %v3541_v30  ;;  %v7527_v0 = vadd.f32 %v7122_v22, %v8697_v32 }
 0x272   : > { %v3629_v17 = vsel %vm3566_vm14, %v3538_v61, %v3601_v5  ;;  %vm3569_vm15 = vcmp.gt.f32.partialorder %v3541_v30, 0.0  ;;  %v3456_v31 = vpop.f32.mrb[23].mxu0  ;;  %v3707_v1 = vmax.f32 %v3704_v29, %v3706_v12  ;;  %v3712_v11 = vmax.f32 %v3709_v4, %v3711_v23 }
 0x273   : > { %3657 = vst.msk [vmem:[#allocation2 + $0x90] sm:$0xff] %vm414_vm5, %v3629_v17  ;;  %v3632_v13 = vsel %vm3569_vm15, %v3541_v30, %v3604_v16  ;;  %vm3568_vm1 = vcmp.gt.f32.partialorder %v3540_v63, 0.0  ;;  %v3603_v3 = vmul.f32 %v8736_v10, %v3540_v63  ;;  %v3543_v7 = vadd.f32 %v7527_v0, %v8730_v9  ;;  %v6249_v0 = vld [vmem:[%s9301_s4 + $0x28] sm:$0x3] }
 0x274   : > { %3660 = vst.msk [vmem:[#allocation2 + $0xa8] sm:$0xff] %vm414_vm5, %v3632_v13  ;;  %v7528_v8 = vadd.f32 %v3456_v31, %v8699_v33  ;;  %v7125_v24 = vpop.f32.mrb[24].mxu0  ;;  %v3713_v25 = vmax.f32 %v3707_v1, %v3712_v11  ;;  %v3751_v1 = vld [vmem:[#allocation3] sm:$0xff]  ;;  %vm4868_vm14 = vcmask 124928  }
 0x275   : > { %v3631_v32 = vsel %vm3568_vm1, %v3540_v63, %v3603_v3  ;;  %v3606_v39 = vmul.f32 %v8736_v10, %v3543_v7  ;;  %v7529_v40 = vadd.f32 %v7125_v24, %v8701_v34  ;;  %vm3571_vm2 = vcmp.gt.f32.partialorder %v3543_v7, 0.0  ;;  %v3466_v42 = vpop.f32.mrb[25].mxu0  ;;  %v3716_v45 = vld [vmem:[#allocation2 + $0x80] ss:$2 sm:$0x7f] }
 0x276   : > { %3659 = vst.msk [vmem:[#allocation2 + $0xa0] sm:$0xff] %vm414_vm5, %v3631_v32  ;;  %v3542_v41 = vadd.f32 %v7528_v8, %v8730_v9  ;;  %v8846_v26 = vld [vmem:[#allocation3 + $0x9] sm:$0xff]  ;;  %v7530_v18 = vadd.f32 %v3466_v42, %v8703_v35  ;;  %v6248_v63 = vld [vmem:[%s9301_s4 + $0x20] sm:$0xff]  ;;  %v6257_v8 = vld [vmem:[%s9301_s4 + $0x38] sm:$0x3]  ;;  %vm5782_vm1 = vcmask 261120  }
 0x277   : > { %3714 = vst.msk [vmem:[#allocation3 + $0x15] sm:$0x7f] %vm3677_vm0, %v3713_v25  ;;  %v3634_v43 = vsel %vm3571_vm2, %v3543_v7, %v3606_v39  ;;  %v3545_v33 = vadd.f32 %v7529_v40, %v8730_v9  ;;  %7137 = vmatmul.mubr.msk.f32.gmra.mrb[30].mxu1 %vm414_vm5, %v8846_v26  ;;  %v3721_v51 = vld [vmem:[#allocation2 + $0x81] ss:$2 sm:$0x7f]  ;;  %v7443_v31 = vpack.c.bf16 %v6249_v0, %v6248_v63  ;;  %v6256_v7 = vld [vmem:[%s9301_s4 + $0x30] sm:$0xff] }
 0x278   : > { %3662 = vst.msk [vmem:[#allocation2 + $0xb8] sm:$0xff] %vm414_vm5, %v3634_v43  ;;  %vm3570_vm3 = vcmp.gt.f32.partialorder %v3542_v41, 0.0  ;;  %v3605_v34 = vmul.f32 %v8736_v10, %v3542_v41  ;;  %v7128_v44 = vpop.f32.mrb[26].mxu0  ;;  %7139 = vmatprep.mubr.msk.f32.mxu1 %vm7765_vm6, %v7766_v6  ;;  %v3544_v46 = vadd.f32 %v7530_v18, %v8730_v9  ;;  %v3752_v11 = vld [vmem:[#allocation3 + $0x8] sm:$0xff]  ;;  %v7447_v25 = vpack.c.bf16 %v6257_v8, %v6256_v7  ;;  %v6264_v42 = vld [vmem:[%s9301_s4 + $0x40] sm:$0xff] }
 0x279   : > { %vm3573_vm7 = vcmp.gt.f32.partialorder %v3545_v33, 0.0  ;;  %v3608_v19 = vmul.f32 %v8736_v10, %v3545_v33  ;;  %v7531_v35 = vadd.f32 %v7128_v44, %v8705_v36  ;;  %v3476_v47 = vpop.f32.mrb[27].mxu0  ;;  %v3983_v32 = vld [vmem:[#allocation3 + $0x2] sm:$0xff]  ;;  %v3984_v39 = vld [vmem:[#allocation3 + $0xa] sm:$0xff] }
 0x27a   : > { %v3718_v48 = vld [vmem:[#allocation2 + $0x90] ss:$2 sm:$0x7f]  ;;  %v3723_v49 = vld [vmem:[#allocation2 + $0x91] ss:$2 sm:$0x7f]  ;;  %v3633_v50 = vsel %vm3570_vm3, %v3542_v41, %v3605_v34  ;;  %v7532_v27 = vadd.f32 %v3476_v47, %v8707_v37  ;;  %v3607_v53 = vmul.f32 %v8736_v10, %v3544_v46 }
 0x27b   : > { %3661 = vst.msk [vmem:[#allocation2 + $0xb0] sm:$0xff] %vm414_vm5, %v3633_v50  ;;  %v3636_v52 = vsel %vm3573_vm7, %v3545_v33, %v3608_v19  ;;  %vm3572_vm8 = vcmp.gt.f32.partialorder %v3544_v46, 0.0  ;;  %v3547_v20 = vadd.f32 %v7531_v35, %v8730_v9  ;;  %v3719_v36 = vmax.f32 %v3716_v45, %v3718_v48  ;;  %v6265_v43 = vld [vmem:[%s9301_s4 + $0x48] sm:$0x3]  ;;  %v6273_v35 = vld [vmem:[%s9301_s4 + $0x58] sm:$0x3] }
 0x27c   : > { %3664 = vst.msk [vmem:[#allocation2 + $0xc8] sm:$0xff] %vm414_vm5, %v3636_v52  ;;  %v3546_v54 = vadd.f32 %v7532_v27, %v8730_v9  ;;  %v3724_v21 = vmax.f32 %v3721_v51, %v3723_v49  ;;  %v3635_v55 = vsel %vm3572_vm8, %v3544_v46, %v3607_v53  ;;  %v7451_v18 = vpack.c.bf16 %v6265_v43, %v6264_v42  ;;  %v4104_v34 = vld [vmem:[#allocation3 + $0x7] sm:$0xff]  ;;  %v6272_v46 = vld [vmem:[%s9301_s4 + $0x50] sm:$0xff] }
 0x27d   : > { %v3610_v56 = vmul.f32 %v8736_v10, %v3547_v20  ;;  %3663 = vst.msk [vmem:[#allocation2 + $0xc0] sm:$0xff] %vm414_vm5, %v3635_v55  ;;  %vm3575_vm9 = vcmp.gt.f32.partialorder %v3547_v20, 0.0  ;;  %v3728_v59 = vld [vmem:[#allocation2 + $0xa0] ss:$2 sm:$0x7f]  ;;  %v7455_v48 = vpack.c.bf16 %v6273_v35, %v6272_v46  ;;  %v6288_v53 = vld [vmem:[%s9301_s4 + $0x70] sm:$0xff] }
 0x27e   : > { %vm3574_vm10 = vcmp.gt.f32.partialorder %v3546_v54, 0.0  ;;  %v3609_v37 = vmul.f32 %v8736_v10, %v3546_v54  ;;  %v8869_v57 = vld [vmem:[#allocation3 + $0x11] sm:$0xff]  ;;  %v3725_v28 = vmax.f32 %v3719_v36, %v3724_v21  ;;  %v3733_v60 = vld [vmem:[#allocation2 + $0xa1] ss:$2 sm:$0x7f]  ;;  %vm5896_vm7 = vcmask 64512  }
 0x27f   : > { %v3638_v58 = vsel %vm3575_vm9, %v3547_v20, %v3610_v56  ;;  %7140 = vmatmul.mubr.msk.f32.gmra.mrb[32].mxu1 %vm414_vm5, %v8869_v57  ;;  %v8904_v13 = vld [vmem:[#allocation3 + $0x10] sm:$0xff]  ;;  %v6280_v50 = vld [vmem:[%s9301_s4 + $0x60] sm:$0xff]  ;;  %v6281_v27 = vld [vmem:[%s9301_s4 + $0x68] sm:$0x3]  ;;  %vm5899_vm8 = vcmask 61440  }
 0x280   : > { %3666 = vst.msk [vmem:[#allocation2 + $0xd8] sm:$0xff] %vm414_vm5, %v3638_v58  ;;  %v3637_v9 = vsel %vm3574_vm10, %v3546_v54, %v3609_v37  ;;  %7142 = vmatprep.mubr.msk.f32.mxu1 %vm7765_vm6, %v7766_v6  ;;  %v3985_v40 = vld [vmem:[#allocation3 + $0x12] sm:$0xff]  ;;  %v7459_v52 = vpack.c.bf16 %v6281_v27, %v6280_v50 }
 0x281   : > { %3726 = vst.msk [vmem:[#allocation3 + $0x1c] sm:$0x7f] %vm3677_vm0, %v3725_v28  ;;  %v8955_v44 = vld [vmem:[#allocation3 + $0xf] sm:$0xff]  ;;  %v6289_v20 = vld [vmem:[%s9301_s4 + $0x78] sm:$0x3] }
 0x282   : > { %3665 = vst.msk [vmem:[#allocation2 + $0xd0] sm:$0xff] %vm414_vm5, %v3637_v9  ;;  %v3730_v10 = vld [vmem:[#allocation2 + $0xb0] ss:$2 sm:$0x7f]  ;;  %v7463_v36 = vpack.c.bf16 %v6289_v20, %v6288_v53  ;;  %v6297_v28 = vld [vmem:[%s9301_s4 + $0x88] sm:$0x3] }
 0x283   : > { %v3735_v61 = vld [vmem:[#allocation2 + $0xb1] ss:$2 sm:$0x7f]  ;;  %v3731_v62 = vmax.f32 %v3728_v59, %v3730_v10 }
 0x284   : > { %v3736_v29 = vmax.f32 %v3733_v60, %v3735_v61  ;;  %v3740_v30 = vld [vmem:[#allocation2 + $0xc0] ss:$2 sm:$0x7f]  ;;  %v3745_v15 = vld [vmem:[#allocation2 + $0xc1] ss:$2 sm:$0x7f] }
 0x285   : > { %v4467_v21 = vld [vmem:[#allocation3 + $0xe] sm:$0xff] }
 0x286   : > { %v3737_v14 = vmax.f32 %v3731_v62, %v3736_v29 }
 0x288   : > { %v8878_v4 = vld [vmem:[#allocation3 + $0x19] sm:$0xff]  ;;  %3738 = vst.msk [vmem:[#allocation3 + $0x23] sm:$0x7f] %vm3677_vm0, %v3737_v14 }
 0x289   : > { %v3742_v5 = vld [vmem:[#allocation2 + $0xd0] ss:$2 sm:$0x7f]  ;;  %v3747_v22 = vld [vmem:[#allocation2 + $0xd1] ss:$2 sm:$0x7f]  ;;  %7143 = vmatmul.mubr.msk.f32.gmra.mrb[34].mxu1 %vm414_vm5, %v8878_v4 }
 0x28a   : > { %7145 = vmatprep.mubr.msk.f32.mxu1 %vm7765_vm6, %v7766_v6  ;;  %v3743_v12 = vmax.f32 %v3740_v30, %v3742_v5  ;;  %v3748_v23 = vmax.f32 %v3745_v15, %v3747_v22  ;;  %v8910_v3 = vld [vmem:[#allocation3 + $0x18] sm:$0xff]  ;;  %v3755_v24 = vld [vmem:[#allocation3 + $0x20] sm:$0x7] }
 0x28b   : > { %v3986_v41 = vld [vmem:[#allocation3 + $0x1a] sm:$0xff] }
 0x28c   : > { %v3749_v16 = vmax.f32 %v3743_v12, %v3748_v23  ;;  %v8961_v45 = vld [vmem:[#allocation3 + $0x17] sm:$0xff] }
 0x28d   : > { %v4468_v55 = vld [vmem:[#allocation3 + $0x16] sm:$0xff] }
 0x28e   : > { %3750 = vst.msk [vmem:[#allocation3 + $0x2a] sm:$0x7f] %vm3677_vm0, %v3749_v16 }
 0x28f   : > { %v3762_v17 = vld [vmem:[#allocation3 + $0x21] sm:$0x7]  ;;  %v4108_v47 = vld [vmem:[#allocation3 + $0x27] sm:$0x7] }
 0x290   : > { %7146 = vmatmul.mubr.msk.f32.gmra.mrb[36].mxu1 %vm414_vm5, %v3762_v17  ;;  %v3987_v33 = vld [vmem:[#allocation3 + $0x22] sm:$0x7] }
 0x291   : > { %7152 = vmatprep.mubr.msk.f32.mxu1 %vm7765_vm6, %v7766_v6  ;;  %v8967_v19 = vld [vmem:[#allocation3 + $0x1f] sm:$0xff] }
 0x292   : > { %v8996_v49 = vld [vmem:[#allocation3 + $0x20] sm:$0xff] }
 0x293   : > { %v4469_v56 = vld [vmem:[#allocation3 + $0x1e] sm:$0xff] }
 0x294   : > { %7153 = vmatmul.mubr.msk.f32.vlgmr.msra.gmra.mrb[38].mxu1 %vm414_vm5, %v3751_v1 }
 0x295   : > { %7445 = vmatpush3.bf16.msk.msra.mxu1 %vm8716_vm4, %v7443_v31  ;;  %7155 = vmatprep.mubr.msk.f32.mxu1 %vm7765_vm6, %v7766_v6  ;;  %v4229_v51 = vld [vmem:[#allocation3 + $0x28] sm:$0x7]  ;;  %v4471_v58 = vld [vmem:[#allocation3 + $0x2e] sm:$0x7] }
 0x296   : > { %7446 = vmatprep.subr.bf16.mxu1 %v7763_v2  ;;  %v4350_v54 = vld [vmem:[#allocation3 + $0x29] sm:$0x7]  ;;  %v4592_v38 = vld [vmem:[#allocation3 + $0x2f] sm:$0x7] }
 0x297   : > { %v4470_v37 = vld [vmem:[#allocation3 + $0x26] sm:$0xff]  ;;  %v4713_v10 = vld [vmem:[#allocation3 + $0x30] sm:$0x7] }
 0x298   : > { %7156 = vmatmul.mubr.msk.f32.gmra.mrb[40].mxu1 %vm414_vm5, %v3752_v11  ;;  %v4591_v59 = vld [vmem:[#allocation3 + $0x27] sm:$0xff] }
 0x299   : > { %7158 = vmatprep.mubr.msk.f32.mxu1 %vm7765_vm6, %v7766_v6  ;;  %v4712_v60 = vld [vmem:[#allocation3 + $0x28] sm:$0xff] }
 0x29c   : > { %7159 = vmatmul.mubr.msk.f32.gmra.mrb[42].mxu1 %vm414_vm5, %v8904_v13 }
 0x29d   : > { %7161 = vmatprep.mubr.msk.f32.mxu1 %vm7765_vm6, %v7766_v6 }
 0x2a0   : > { %7162 = vmatmul.mubr.msk.f32.gmra.mrb[44].mxu1 %vm414_vm5, %v8910_v3 }
 0x2a1   : > { %7164 = vmatprep.mubr.msk.f32.mxu1 %vm7765_vm6, %v7766_v6 }
 0x2a4   : > { %7165 = vmatmul.mubr.msk.f32.gmra.mrb[46].mxu1 %vm414_vm5, %v3755_v24 }
 0x2a5   : > { %7171 = vmatprep.mubr.msk.f32.mxu1 %vm7765_vm6, %v7766_v6 }
 0x2a8   : > { %7172 = vmatmul.mubr.msk.f32.vlgmr.msra.gmra.mrb[48].mxu1 %vm414_vm5, %v3983_v32 }
 0x2a9   : > { %7449 = vmatpush3.bf16.msk.msra.mxu1 %vm8716_vm4, %v7447_v25  ;;  %7174 = vmatprep.mubr.msk.f32.mxu1 %vm7765_vm6, %v7766_v6 }
 0x2aa   : > { %7450 = vmatprep.subr.bf16.mxu1 %v7763_v2 }
 0x2ac   : > { %7175 = vmatmul.mubr.msk.f32.gmra.mrb[50].mxu1 %vm414_vm5, %v3984_v39 }
 0x2ad   : > { %7177 = vmatprep.mubr.msk.f32.mxu1 %vm7765_vm6, %v7766_v6 }
 0x2b0   : > { %7178 = vmatmul.mubr.msk.f32.gmra.mrb[52].mxu1 %vm414_vm5, %v3985_v40  ;;  %v6306_v40 = vld [vmem:[%s9304_s7 + $0x10] sm:$0xff] }
 0x2b1   : > { %7180 = vmatprep.mubr.msk.f32.mxu1 %vm7765_vm6, %v7766_v6 }
 0x2b4   : > { %7181 = vmatmul.mubr.msk.f32.gmra.mrb[54].mxu1 %vm414_vm5, %v3986_v41  ;;  %v6307_v41 = vld [vmem:[%s9304_s7 + $0x18] sm:$0xff] }
 0x2b5   : > { %7183 = vmatprep.mubr.msk.f32.mxu1 %vm7765_vm6, %v7766_v6 }
 0x2b8   : > { %7184 = vmatmul.mubr.msk.f32.gmra.mrb[56].mxu1 %vm414_vm5, %v3987_v33  ;;  %v7471_v33 = vpack.c.bf16 %v6307_v41, %v6306_v40 }
 0x2b9   : > { %7190 = vmatprep.mubr.msk.f32.mxu1 %vm7765_vm6, %v7766_v6 }
 0x2bc   : > { %7191 = vmatmul.mubr.msk.f32.vlgmr.msra.gmra.mrb[58].mxu1 %vm414_vm5, %v4104_v34 }
 0x2bd   : > { %7453 = vmatpush3.bf16.msk.msra.mxu1 %vm8716_vm4, %v7451_v18  ;;  %7193 = vmatprep.mubr.msk.f32.mxu1 %vm7765_vm6, %v7766_v6 }
 0x2be   : > { %7454 = vmatprep.subr.bf16.mxu1 %v7763_v2 }
 0x2c0   : > { %7194 = vmatmul.mubr.msk.f32.gmra.mrb[60].mxu1 %vm414_vm5, %v8955_v44 }
 0x2c1   : > { %7196 = vmatprep.mubr.msk.f32.mxu1 %vm7765_vm6, %v7766_v6 }
 0x2c4   : > { %7197 = vmatmul.mubr.msk.f32.gmra.mrb[62].mxu1 %vm414_vm5, %v8961_v45 }
 0x2c5   : > { %7199 = vmatprep.mubr.msk.f32.mxu1 %vm7765_vm6, %v7766_v6 }
 0x2c8   : > { %7200 = vmatmul.mubr.msk.f32.gmra.mrb[64].mxu1 %vm414_vm5, %v8967_v19 }
 0x2c9   : > { %7202 = vmatprep.mubr.msk.f32.mxu1 %vm7765_vm6, %v7766_v6 }
 0x2cc   : > { %7203 = vmatmul.mubr.msk.f32.gmra.mrb[66].mxu1 %vm414_vm5, %v4108_v47 }
 0x2cd   : > { %7209 = vmatprep.mubr.msk.f32.mxu1 %vm7765_vm6, %v7766_v6 }
 0x2d0   : > { %7210 = vmatmul.mubr.msk.f32.vlgmr.msra.gmra.mrb[68].mxu1 %vm414_vm5, %v3752_v11 }
 0x2d1   : > { %7457 = vmatpush3.bf16.msk.msra.mxu1 %vm8716_vm4, %v7455_v48  ;;  %7212 = vmatprep.mubr.msk.f32.mxu1 %vm7765_vm6, %v7766_v6 }
 0x2d2   : > { %7458 = vmatprep.subr.bf16.mxu1 %v7763_v2 }
 0x2d4   : > { %7213 = vmatmul.mubr.msk.f32.gmra.mrb[70].mxu1 %vm414_vm5, %v8904_v13 }
 0x2d5   : > { %7215 = vmatprep.mubr.msk.f32.mxu1 %vm7765_vm6, %v7766_v6 }
 0x2d8   : > { %7216 = vmatmul.mubr.msk.f32.gmra.mrb[72].mxu1 %vm414_vm5, %v8910_v3 }
 0x2d9   : > { %7218 = vmatprep.mubr.msk.f32.mxu1 %vm7765_vm6, %v7766_v6 }
 0x2dc   : > { %7219 = vmatmul.mubr.msk.f32.gmra.mrb[74].mxu1 %vm414_vm5, %v8996_v49 }
 0x2dd   : > { %7221 = vmatprep.mubr.msk.f32.mxu1 %vm7765_vm6, %v7766_v6 }
 0x2e0   : > { %7222 = vmatmul.mubr.msk.f32.gmra.mrb[76].mxu1 %vm414_vm5, %v4229_v51 }
 0x2e1   : > { %7228 = vmatprep.mubr.msk.f32.mxu1 %vm7765_vm6, %v7766_v6 }
 0x2e4   : > { %7229 = vmatmul.mubr.msk.f32.vlgmr.msra.gmra.mrb[78].mxu1 %vm414_vm5, %v8846_v26  ;;  %v4349_v26 = vld [vmem:[#allocation3 + $0x21] sm:$0xff] }
 0x2e5   : > { %7461 = vmatpush3.bf16.msk.msra.mxu1 %vm8716_vm4, %v7459_v52  ;;  %7231 = vmatprep.mubr.msk.f32.mxu1 %vm7765_vm6, %v7766_v6 }
 0x2e6   : > { %7462 = vmatprep.subr.bf16.mxu1 %v7763_v2 }
 0x2e8   : > { %7232 = vmatmul.mubr.msk.f32.gmra.mrb[80].mxu1 %vm414_vm5, %v8869_v57  ;;  %v6296_v57 = vld [vmem:[%s9301_s4 + $0x80] sm:$0xff] }
 0x2e9   : > { %7234 = vmatprep.mubr.msk.f32.mxu1 %vm7765_vm6, %v7766_v6  ;;  %v7467_v9 = vpack.c.bf16 %v6297_v28, %v6296_v57 }
 0x2ec   : > { %7235 = vmatmul.mubr.msk.f32.gmra.mrb[82].mxu1 %vm414_vm5, %v8878_v4 }
 0x2ed   : > { %7237 = vmatprep.mubr.msk.f32.mxu1 %vm7765_vm6, %v7766_v6 }
 0x2f0   : > { %7238 = vmatmul.mubr.msk.f32.gmra.mrb[84].mxu1 %vm414_vm5, %v4349_v26 }
 0x2f1   : > { %7240 = vmatprep.mubr.msk.f32.mxu1 %vm7765_vm6, %v7766_v6 }
 0x2f4   : > { %7241 = vmatmul.mubr.msk.f32.gmra.mrb[86].mxu1 %vm414_vm5, %v4350_v54 }
 0x2f5   : > { %7247 = vmatprep.mubr.msk.f32.mxu1 %vm7765_vm6, %v7766_v6 }
 0x2f8   : > { %7248 = vmatmul.mubr.msk.f32.vlgmr.msra.gmra.mrb[88].mxu1 %vm414_vm5, %v4467_v21 }
 0x2f9   : > { %7465 = vmatpush3.bf16.msk.msra.mxu1 %vm8716_vm4, %v7463_v36  ;;  %7250 = vmatprep.mubr.msk.f32.mxu1 %vm7765_vm6, %v7766_v6 }
 0x2fa   : > { %7466 = vmatprep.subr.bf16.mxu1 %v7763_v2 }
 0x2fc   : > { %7251 = vmatmul.mubr.msk.f32.gmra.mrb[90].mxu1 %vm414_vm5, %v4468_v55 }
 0x2fd   : > { %7253 = vmatprep.mubr.msk.f32.mxu1 %vm7765_vm6, %v7766_v6 }
 0x300   : > { %7254 = vmatmul.mubr.msk.f32.gmra.mrb[92].mxu1 %vm414_vm5, %v4469_v56 }
 0x301   : > { %7256 = vmatprep.mubr.msk.f32.mxu1 %vm7765_vm6, %v7766_v6 }
 0x304   : > { %7257 = vmatmul.mubr.msk.f32.gmra.mrb[94].mxu1 %vm414_vm5, %v4470_v37 }
 0x305   : > { %7259 = vmatprep.mubr.msk.f32.mxu1 %vm7765_vm6, %v7766_v6 }
 0x308   : > { %7260 = vmatmul.mubr.msk.f32.gmra.mrb[96].mxu1 %vm414_vm5, %v4471_v58 }
 0x309   : > { %7266 = vmatprep.mubr.msk.f32.mxu1 %vm7765_vm6, %v7766_v6 }
 0x30c   : > { %7267 = vmatmul.mubr.msk.f32.vlgmr.msra.gmra.mrb[98].mxu1 %vm414_vm5, %v8955_v44 }
 0x30d   : > { %7469 = vmatpush3.bf16.msk.msra.mxu1 %vm8716_vm4, %v7467_v9  ;;  %7269 = vmatprep.mubr.msk.f32.mxu1 %vm7765_vm6, %v7766_v6  ;;  %vm416_vm4 = vcmask 130048  }
 0x30e   : > { %7470 = vmatprep.subr.bf16.mxu1 %v7763_v2  ;;  %417 = vst.msk [vmem:[#allocation4 + $0x23] sm:$0xff] %vm416_vm4, %v7766_v6 }
 0x310   : > { %7270 = vmatmul.mubr.msk.f32.gmra.mrb[100].mxu1 %vm414_vm5, %v8961_v45 }
 0x311   : > { %7272 = vmatprep.mubr.msk.f32.mxu1 %vm7765_vm6, %v7766_v6 }
 0x314   : > { %7273 = vmatmul.mubr.msk.f32.gmra.mrb[102].mxu1 %vm414_vm5, %v8967_v19 }
 0x315   : > { %7275 = vmatprep.mubr.msk.f32.mxu1 %vm7765_vm6, %v7766_v6 }
 0x318   : > { %7276 = vmatmul.mubr.msk.f32.gmra.mrb[104].mxu1 %vm414_vm5, %v4591_v59 }
 0x319   : > { %7278 = vmatprep.mubr.msk.f32.mxu1 %vm7765_vm6, %v7766_v6 }
 0x31c   : > { %7279 = vmatmul.mubr.msk.f32.gmra.mrb[106].mxu1 %vm414_vm5, %v4592_v38 }
 0x31d   : > { %7285 = vmatprep.mubr.msk.f32.mxu1 %vm7765_vm6, %v7766_v6 }
 0x320   : > { %7286 = vmatmul.mubr.msk.f32.vlgmr.msra.gmra.mrb[108].mxu1 %vm414_vm5, %v8904_v13 }
 0x321   : > { %7288 = vmatprep.mubr.msk.f32.mxu1 %vm7765_vm6, %v7766_v6  ;;  %7472 = vmatpush3.bf16.msra.mxu1 %v7471_v33 }
 0x322   : > { %7473 = vmatprep.subr.bf16.mxu1 %v7763_v2 }
 0x324   : > { %7289 = vmatmul.mubr.msk.f32.gmra.mrb[110].mxu1 %vm414_vm5, %v8910_v3 }
 0x325   : > { %7291 = vmatprep.mubr.msk.f32.mxu1 %vm7765_vm6, %v7766_v6 }
 0x328   : > { %7292 = vmatmul.mubr.msk.f32.gmra.mrb[112].mxu1 %vm414_vm5, %v8996_v49 }
 0x329   : > { %7294 = vmatprep.mubr.msk.f32.mxu1 %vm7765_vm6, %v7766_v6 }
 0x32c   : > { %7295 = vmatmul.mubr.msk.f32.gmra.mrb[114].mxu1 %vm414_vm5, %v4712_v60 }
 0x32d   : > { %7297 = vmatprep.mubr.msk.f32.mxu1 %vm7765_vm6, %v7766_v6 }
 0x330   : > { %7298 = vmatmul.mubr.msk.f32.gmra.mrb[116].mxu1 %vm414_vm5, %v4713_v10 }
 0x331   : > { %7304 = vmatprep.mubr.msk.f32.mxu1 %vm7765_vm6, %v7766_v6 }
 0x341   : > { %v3851_v61 = vpop.f32.mrb[28].mxu1 }
 0x342   : > { %v7135_v62 = vpop.f32.mrb[29].mxu1 }
 0x34a   : > { %v3856_v29 = vpop.f32.mrb[30].mxu1 }
 0x34b   : > { %v7138_v14 = vpop.f32.mrb[31].mxu1 }
 0x352   : > { %v3861_v30 = vpop.f32.mrb[32].mxu1 }
 0x353   : > { %v7141_v15 = vpop.f32.mrb[33].mxu1 }
 0x35c   : > { %v3866_v4 = vpop.f32.mrb[34].mxu1 }
 0x35d   : > { %v7144_v5 = vpop.f32.mrb[35].mxu1 }
 0x363   : > { %v3871_v22 = vpop.f32.mrb[36].mxu1 }
 0x364   : > { %v7147_v12 = vpop.f32.mrb[37].mxu1 }
 0x367   : > { %v3959_v23 = vpop.f32.mrb[38].mxu1 }
 0x368   : > { %v3960_v16 = vadd.f32 %v3959_v23, %v3851_v61  ;;  %v7154_v63 = vpop.f32.mrb[39].mxu1 }
 0x36b   : > { %v3964_v0 = vpop.f32.mrb[40].mxu1 }
 0x36c   : > { %v3965_v17 = vadd.f32 %v3964_v0, %v3856_v29  ;;  %v7157_v31 = vpop.f32.mrb[41].mxu1 }
 0x36f   : > { %v3969_v1 = vpop.f32.mrb[42].mxu1 }
 0x370   : > { %v3970_v11 = vadd.f32 %v3969_v1, %v3861_v30  ;;  %v7160_v13 = vpop.f32.mrb[43].mxu1 }
 0x373   : > { %v3974_v3 = vpop.f32.mrb[44].mxu1 }
 0x374   : > { %v3975_v7 = vadd.f32 %v3974_v3, %v3866_v4  ;;  %v7163_v8 = vpop.f32.mrb[45].mxu1 }
 0x377   : > { %v3979_v24 = vpop.f32.mrb[46].mxu1 }
 0x378   : > { %v3980_v25 = vadd.f32 %v3979_v24, %v3871_v22  ;;  %v7166_v32 = vpop.f32.mrb[47].mxu1 }
 0x37b   : > { %v4075_v39 = vpop.f32.mrb[48].mxu1 }
 0x37c   : > { %v4099_v42 = vadd.f32 %v4075_v39, %v3960_v16  ;;  %v7173_v43 = vpop.f32.mrb[49].mxu1 }
 0x37f   : > { %v4080_v18 = vpop.f32.mrb[50].mxu1 }
 0x380   : > { %v4100_v34 = vadd.f32 %v4080_v18, %v3965_v17  ;;  %v7176_v44 = vpop.f32.mrb[51].mxu1 }
 0x383   : > { %v4085_v45 = vpop.f32.mrb[52].mxu1 }
 0x384   : > { %v4101_v19 = vadd.f32 %v4085_v45, %v3970_v11  ;;  %v7179_v46 = vpop.f32.mrb[53].mxu1 }
 0x387   : > { %v4090_v35 = vpop.f32.mrb[54].mxu1 }
 0x388   : > { %v4102_v47 = vadd.f32 %v4090_v35, %v3975_v7  ;;  %v7182_v48 = vpop.f32.mrb[55].mxu1 }
 0x38b   : > { %v4095_v49 = vpop.f32.mrb[56].mxu1 }
 0x38c   : > { %v4103_v50 = vadd.f32 %v4095_v49, %v3980_v25  ;;  %v7185_v27 = vpop.f32.mrb[57].mxu1 }
 0x38f   : > { %v4196_v51 = vpop.f32.mrb[58].mxu1 }
 0x390   : > { %v4220_v52 = vadd.f32 %v4196_v51, %v4099_v42  ;;  %v7192_v26 = vpop.f32.mrb[59].mxu1 }
 0x393   : > { %v4201_v53 = vpop.f32.mrb[60].mxu1 }
 0x394   : > { %v4221_v20 = vadd.f32 %v4201_v53, %v4100_v34  ;;  %v7195_v54 = vpop.f32.mrb[61].mxu1 }
 0x397   : > { %v4206_v36 = vpop.f32.mrb[62].mxu1 }
 0x398   : > { %v4222_v21 = vadd.f32 %v4206_v36, %v4101_v19  ;;  %v7198_v55 = vpop.f32.mrb[63].mxu1 }
 0x39b   : > { %v4211_v56 = vpop.f32.mrb[64].mxu1 }
 0x39c   : > { %v4223_v37 = vadd.f32 %v4211_v56, %v4102_v47  ;;  %v7201_v57 = vpop.f32.mrb[65].mxu1 }
 0x39f   : > { %v4216_v28 = vpop.f32.mrb[66].mxu1 }
 0x3a0   : > { %v4224_v58 = vadd.f32 %v4216_v28, %v4103_v50  ;;  %v7204_v9 = vpop.f32.mrb[67].mxu1 }
 0x3a1   : > { %v6304_v9 = vld [vmem:[%s9302_s5] ss:$0 sm:$0xff] }
 0x3a3   : > { %v4317_v59 = vpop.f32.mrb[68].mxu1 }
 0x3a4   : > { %v4341_v38 = vadd.f32 %v4317_v59, %v4220_v52  ;;  %v7211_v60 = vpop.f32.mrb[69].mxu1 }
 0x3a5   : > { %v6305_v60 = vld [vmem:[%s9303_s6] ss:$0 sm:$0xff] }
 0x3a7   : > { %v4322_v10 = vpop.f32.mrb[70].mxu1 }
 0x3a8   : > { %v4342_v61 = vadd.f32 %v4322_v10, %v4221_v20  ;;  %v7214_v62 = vpop.f32.mrb[71].mxu1 }
 0x3ab   : > { %v4327_v29 = vpop.f32.mrb[72].mxu1 }
 0x3ac   : > { %v4343_v14 = vadd.f32 %v4327_v29, %v4222_v21  ;;  %v7217_v30 = vpop.f32.mrb[73].mxu1 }
 0x3af   : > { %v4332_v15 = vpop.f32.mrb[74].mxu1 }
 0x3b0   : > { %v4344_v4 = vadd.f32 %v4332_v15, %v4223_v37  ;;  %v7220_v5 = vpop.f32.mrb[75].mxu1 }
 0x3b3   : > { %v4337_v22 = vpop.f32.mrb[76].mxu1 }
 0x3b4   : > { %v4345_v12 = vadd.f32 %v4337_v22, %v4224_v58  ;;  %v7223_v23 = vpop.f32.mrb[77].mxu1 }
 0x3b7   : > { %v4438_v16 = vpop.f32.mrb[78].mxu1 }
 0x3b8   : > { %v4462_v63 = vadd.f32 %v4438_v16, %v4341_v38  ;;  %v7230_v0 = vpop.f32.mrb[79].mxu1 }
 0x3bb   : > { %v4443_v17 = vpop.f32.mrb[80].mxu1 }
 0x3bc   : > { %v4463_v31 = vadd.f32 %v4443_v17, %v4342_v61  ;;  %v7233_v1 = vpop.f32.mrb[81].mxu1 }
 0x3bd   : > { %v4873_v1 = vld [vmem:[%s9304_s7] sm:$0xff] }
 0x3bf   : > { %v4448_v11 = vpop.f32.mrb[82].mxu1 }
 0x3c0   : > { %v4464_v13 = vadd.f32 %v4448_v11, %v4343_v14  ;;  %v7236_v3 = vpop.f32.mrb[83].mxu1  ;;  %v4874_v11 = vld [vmem:[%s9304_s7 + $0x8] sm:$0xff] }
 0x3c3   : > { %v4453_v7 = vpop.f32.mrb[84].mxu1 }
 0x3c4   : > { %v4465_v8 = vadd.f32 %v4453_v7, %v4344_v4  ;;  %v7239_v24 = vpop.f32.mrb[85].mxu1 }
 0x3c7   : > { %v4458_v25 = vpop.f32.mrb[86].mxu1 }
 0x3c8   : > { %v4466_v32 = vadd.f32 %v4458_v25, %v4345_v12  ;;  %v7242_v39 = vpop.f32.mrb[87].mxu1 }
 0x3cb   : > { %v4559_v40 = vpop.f32.mrb[88].mxu1 }
 0x3cc   : > { %v4583_v41 = vadd.f32 %v4559_v40, %v4462_v63  ;;  %v7249_v42 = vpop.f32.mrb[89].mxu1 }
 0x3cf   : > { %v4564_v43 = vpop.f32.mrb[90].mxu1 }
 0x3d0   : > { %v4584_v33 = vadd.f32 %v4564_v43, %v4463_v31  ;;  %v7252_v18 = vpop.f32.mrb[91].mxu1 }
 0x3d1   : > { %v6314_v18 = vld [vmem:[%s9304_s7 + $0x20] sm:$0xff] }
 0x3d3   : > { %v4569_v34 = vpop.f32.mrb[92].mxu1 }
 0x3d4   : > { %v4585_v44 = vadd.f32 %v4569_v34, %v4464_v13  ;;  %v7255_v45 = vpop.f32.mrb[93].mxu1  ;;  %v6315_v34 = vld [vmem:[%s9304_s7 + $0x28] sm:$0xff] }
 0x3d5   : > { %v7477_v45 = vpack.c.bf16 %v6315_v34, %v6314_v18 }
 0x3d7   : > { %v4574_v19 = vpop.f32.mrb[94].mxu1 }
 0x3d8   : > { %v4586_v46 = vadd.f32 %v4574_v19, %v4465_v8  ;;  %v7258_v35 = vpop.f32.mrb[95].mxu1 }
 0x3d9   : > { %v6319_v35 = vld [vmem:[%s9304_s7 + $0x30] sm:$0xff] }
 0x3db   : > { %v4579_v47 = vpop.f32.mrb[96].mxu1 }
 0x3dc   : > { %v4587_v48 = vadd.f32 %v4579_v47, %v4466_v32  ;;  %v7261_v49 = vpop.f32.mrb[97].mxu1  ;;  %v7474_v32 = vpack.c.bf16 %v4874_v11, %v4873_v1  ;;  %v6320_v47 = vld [vmem:[%s9304_s7 + $0x38] sm:$0xff] }
 0x3dd   : > { %v7480_v49 = vpack.c.bf16 %v6320_v47, %v6319_v35 }
 0x3df   : > { %v4680_v50 = vpop.f32.mrb[98].mxu1 }
 0x3e0   : > { %v4704_v27 = vadd.f32 %v4680_v50, %v4583_v41  ;;  %v7268_v51 = vpop.f32.mrb[99].mxu1 }
 0x3e1   : > { %v6324_v51 = vld [vmem:[%s9304_s7 + $0x40] sm:$0xff] }
 0x3e3   : > { %v4685_v52 = vpop.f32.mrb[100].mxu1 }
 0x3e4   : > { %v4705_v26 = vadd.f32 %v4685_v52, %v4584_v33  ;;  %v7271_v53 = vpop.f32.mrb[101].mxu1  ;;  %v6325_v52 = vld [vmem:[%s9304_s7 + $0x48] sm:$0xff] }
 0x3e5   : > { %v7483_v53 = vpack.c.bf16 %v6325_v52, %v6324_v51 }
 0x3e7   : > { %v4690_v20 = vpop.f32.mrb[102].mxu1 }
 0x3e8   : > { %v4706_v54 = vadd.f32 %v4690_v20, %v4585_v44  ;;  %v7274_v36 = vpop.f32.mrb[103].mxu1 }
 0x3e9   : > { %v6329_v36 = vld [vmem:[%s9304_s7 + $0x50] sm:$0xff] }
 0x3eb   : > { %v4695_v21 = vpop.f32.mrb[104].mxu1 }
 0x3ec   : > { %v4707_v55 = vadd.f32 %v4695_v21, %v4586_v46  ;;  %v7277_v56 = vpop.f32.mrb[105].mxu1  ;;  %v6330_v21 = vld [vmem:[%s9304_s7 + $0x58] sm:$0xff] }
 0x3ed   : > { %v7486_v56 = vpack.c.bf16 %v6330_v21, %v6329_v36 }
 0x3ef   : > { %v4700_v37 = vpop.f32.mrb[106].mxu1 }
 0x3f0   : > { %v4708_v57 = vadd.f32 %v4700_v37, %v4587_v48  ;;  %v7280_v28 = vpop.f32.mrb[107].mxu1 }
 0x3f1   : > { %v6335_v28 = vld [vmem:[%s9304_s7 + $0x68] sm:$0xff] }
 0x3f3   : > { %v4801_v58 = vpop.f32.mrb[108].mxu1 }
 0x3f4   : > { %v4825_v59 = vadd.f32 %v4801_v58, %v4704_v27  ;;  %v7287_v38 = vpop.f32.mrb[109].mxu1 }
 0x3f5   : > { %v6339_v38 = vld [vmem:[%s9304_s7 + $0x70] sm:$0xff] }
 0x3f6   : > { %v4837_v10 = vadd.f32 %v6304_v9, %v4825_v59 }
 0x3f7   : > { %v4806_v61 = vpop.f32.mrb[110].mxu1 }
 0x3f8   : > { %vm4842_vm5 = vcmp.gt.f32.partialorder %v4837_v10, 0.0  ;;  %v4854_v62 = vmul.f32 %v6305_v60, %v4837_v10  ;;  %v4826_v29 = vadd.f32 %v4806_v61, %v4705_v26  ;;  %v7290_v14 = vpop.f32.mrb[111].mxu1 }
 0x3f9   : > { %v6344_v14 = vld [vmem:[%s9304_s7 + $0x80] sm:$0xff] }
 0x3fa   : > { %v4859_v30 = vsel %vm4842_vm5, %v4837_v10, %v4854_v62  ;;  %v4838_v15 = vadd.f32 %v6304_v9, %v4826_v29 }
 0x3fb   : > { %4864 = vst.msk [vmem:[#allocation4] sm:$0xff] %vm416_vm4, %v4859_v30  ;;  %v4811_v4 = vpop.f32.mrb[112].mxu1  ;;  %v6345_v30 = vld [vmem:[%s9304_s7 + $0x88] sm:$0xff] }
 0x3fc   : > { %vm4843_vm0 = vcmp.gt.f32.partialorder %v4838_v15, 0.0  ;;  %v4855_v5 = vmul.f32 %v6305_v60, %v4838_v15  ;;  %v4827_v22 = vadd.f32 %v4811_v4, %v4706_v54  ;;  %v7293_v12 = vpop.f32.mrb[113].mxu1  ;;  %v7495_v4 = vpack.c.bf16 %v6345_v30, %v6344_v14 }
 0x3fe   : > { %v4860_v23 = vsel %vm4843_vm0, %v4838_v15, %v4855_v5  ;;  %v4839_v16 = vadd.f32 %v6304_v9, %v4827_v22 }
 0x3ff   : > { %4865 = vst.msk [vmem:[#allocation4 + $0x8] sm:$0xff] %vm416_vm4, %v4860_v23  ;;  %v4816_v63 = vpop.f32.mrb[114].mxu1 }
 0x400   : > { %vm4844_vm11 = vcmp.gt.f32.partialorder %v4839_v16, 0.0  ;;  %v4856_v0 = vmul.f32 %v6305_v60, %v4839_v16  ;;  %v4828_v17 = vadd.f32 %v4816_v63, %v4707_v55  ;;  %v7296_v31 = vpop.f32.mrb[115].mxu1  ;;  %v5772_v63 = vld [vmem:[%s9307_s10 + $0x8] sm:$0xff] }
 0x401   : > { %v5774_v31 = vld [vmem:[%s9307_s10 + $0x18] sm:$0xff] }
 0x402   : > { %v4861_v13 = vsel %vm4844_vm11, %v4839_v16, %v4856_v0  ;;  %v4840_v3 = vadd.f32 %v6304_v9, %v4828_v17  ;;  %v4870_v19 = vld [vmem:[#allocation4] sm:$0xff]  ;;  %v5773_v17 = vld [vmem:[%s9307_s10 + $0x10] sm:$0xff] }
 0x403   : > { %4866 = vst.msk [vmem:[#allocation4 + $0x10] sm:$0xff] %vm416_vm4, %v4861_v13  ;;  %v4821_v7 = vpop.f32.mrb[116].mxu1  ;;  %v5771_v16 = vld [vmem:[%s9307_s10] sm:$0xff]  ;;  %v7501_v1 = vpack.c.bf16 %v5774_v31, %v5773_v17 }
 0x404   : > { %vm4845_vm12 = vcmp.gt.f32.partialorder %v4840_v3, 0.0  ;;  %v4857_v8 = vmul.f32 %v6305_v60, %v4840_v3  ;;  %v4829_v24 = vadd.f32 %v4821_v7, %v4708_v57  ;;  %v7299_v25 = vpop.f32.mrb[117].mxu1  ;;  %v6334_v57 = vld [vmem:[%s9304_s7 + $0x60] sm:$0xff]  ;;  %v7498_v0 = vpack.c.bf16 %v5772_v63, %v5771_v16 }
 0x406   : > { %v4862_v39 = vsel %vm4845_vm12, %v4840_v3, %v4857_v8  ;;  %v4841_v40 = vadd.f32 %v6304_v9, %v4829_v24  ;;  %v4875_v41 = vld [vmem:[#allocation4 + $0x1] sm:$0xff]  ;;  %v7489_v9 = vpack.c.bf16 %v6335_v28, %v6334_v57 }
 0x407   : > { %4867 = vst.msk [vmem:[#allocation4 + $0x18] sm:$0xff] %vm416_vm4, %v4862_v39  ;;  %7305 = vmatmul.mubr.msk.f32.vlgmr.msra.gmra.mrb[118].mxu1 %vm416_vm4, %v4875_v41  ;;  %v4871_v46 = vld [vmem:[#allocation4 + $0x8] sm:$0xff] }
 0x408   : > { %vm4846_vm13 = vcmp.gt.f32.partialorder %v4841_v40, 0.0  ;;  %v4858_v42 = vmul.f32 %v6305_v60, %v4841_v40  ;;  %7475 = vmatpush3.bf16.msra.mxu1 %v7474_v32  ;;  %7307 = vmatprep.mubr.msk.f32.mxu1 %vm7765_vm6, %v7766_v6  ;;  %v5059_v50 = vld [vmem:[#allocation4 + $0x2] sm:$0xff]  ;;  %v6340_v60 = vld [vmem:[%s9304_s7 + $0x78] sm:$0xff] }
 0x409   : > { %7476 = vmatprep.subr.bf16.mxu1 %v7763_v2  ;;  %v5157_v20 = vld [vmem:[#allocation4 + $0x7] sm:$0xff]  ;;  %v7492_v61 = vpack.c.bf16 %v6340_v60, %v6339_v38 }
 0x40a   : > { %v4863_v43 = vsel %vm4846_vm13, %v4841_v40, %v4858_v42  ;;  %v9130_v33 = vld [vmem:[#allocation4 + $0x9] sm:$0xff]  ;;  %v4877_v44 = vld [vmem:[#allocation4 + $0x11] sm:$0x1f] }
 0x40b   : > { %4869 = vst.msk [vmem:[#allocation4 + $0x20] sm:$0x7] %vm4868_vm14, %v4863_v43  ;;  %7308 = vmatmul.mubr.msk.f32.gmra.mrb[120].mxu1 %vm416_vm4, %v9130_v33  ;;  %v4872_v48 = vld [vmem:[#allocation4 + $0x10] sm:$0x1f] }
 0x40c   : > { %7310 = vmatprep.mubr.msk.f32.mxu1 %vm7765_vm6, %v7766_v6  ;;  %v5060_v27 = vld [vmem:[#allocation4 + $0xa] sm:$0xff]  ;;  %v5061_v26 = vld [vmem:[#allocation4 + $0x12] sm:$0x1f] }
 0x40d   : > { %v5158_v54 = vld [vmem:[#allocation4 + $0xf] sm:$0xff] }
 0x40e   : > { %v5159_v55 = vld [vmem:[#allocation4 + $0x17] sm:$0x1f]  ;;  %v5451_v62 = vld [vmem:[#allocation4 + $0xe] sm:$0xff] }
 0x40f   : > { %7311 = vmatmul.mubr.msk.f32.gmra.mrb[122].mxu1 %vm416_vm4, %v4877_v44  ;;  %v5256_v37 = vld [vmem:[#allocation4 + $0x10] sm:$0xff]  ;;  %v5257_v58 = vld [vmem:[#allocation4 + $0x18] sm:$0x1f] }
 0x410   : > { %7317 = vmatprep.mubr.msk.f32.mxu1 %vm7765_vm6, %v7766_v6  ;;  %v5354_v59 = vld [vmem:[#allocation4 + $0x11] sm:$0xff]  ;;  %v5355_v10 = vld [vmem:[#allocation4 + $0x19] sm:$0x1f] }
 0x411   : > { %v5452_v29 = vld [vmem:[#allocation4 + $0x16] sm:$0xff] }
 0x412   : > { %v5453_v15 = vld [vmem:[#allocation4 + $0x1e] sm:$0x1f] }
 0x413   : > { %7318 = vmatmul.mubr.msk.f32.vlgmr.msra.gmra.mrb[124].mxu1 %vm416_vm4, %v4870_v19  ;;  %v5550_v5 = vld [vmem:[#allocation4 + $0x17] sm:$0xff]  ;;  %v5551_v22 = vld [vmem:[#allocation4 + $0x1f] sm:$0x1f] }
 0x414   : > { %7478 = vmatpush3.bf16.msra.mxu1 %v7477_v45  ;;  %7320 = vmatprep.mubr.msk.f32.mxu1 %vm7765_vm6, %v7766_v6  ;;  %v5648_v12 = vld [vmem:[#allocation4 + $0x18] sm:$0xff]  ;;  %v5649_v23 = vld [vmem:[#allocation4 + $0x20] sm:$0x1f] }
 0x415   : > { %7479 = vmatprep.subr.bf16.mxu1 %v7763_v2 }
 0x417   : > { %7321 = vmatmul.mubr.msk.f32.gmra.mrb[126].mxu1 %vm416_vm4, %v4871_v46 }
 0x418   : > { %7323 = vmatprep.mubr.msk.f32.mxu1 %vm7765_vm6, %v7766_v6 }
 0x41b   : > { %7324 = vmatmul.mubr.msk.f32.gmra.mrb[128].mxu1 %vm416_vm4, %v4872_v48 }
 0x41c   : > { %7330 = vmatprep.mubr.msk.f32.mxu1 %vm7765_vm6, %v7766_v6 }
 0x41f   : > { %7331 = vmatmul.mubr.msk.f32.vlgmr.msra.gmra.mrb[130].mxu1 %vm416_vm4, %v5059_v50 }
 0x420   : > { %7481 = vmatpush3.bf16.msra.mxu1 %v7480_v49  ;;  %7333 = vmatprep.mubr.msk.f32.mxu1 %vm7765_vm6, %v7766_v6 }
 0x421   : > { %7482 = vmatprep.subr.bf16.mxu1 %v7763_v2 }
 0x423   : > { %7334 = vmatmul.mubr.msk.f32.gmra.mrb[132].mxu1 %vm416_vm4, %v5060_v27 }
 0x424   : > { %7336 = vmatprep.mubr.msk.f32.mxu1 %vm7765_vm6, %v7766_v6 }
 0x427   : > { %7337 = vmatmul.mubr.msk.f32.gmra.mrb[134].mxu1 %vm416_vm4, %v5061_v26 }
 0x428   : > { %7343 = vmatprep.mubr.msk.f32.mxu1 %vm7765_vm6, %v7766_v6 }
 0x42b   : > { %7344 = vmatmul.mubr.msk.f32.vlgmr.msra.gmra.mrb[136].mxu1 %vm416_vm4, %v5157_v20 }
 0x42c   : > { %7484 = vmatpush3.bf16.msra.mxu1 %v7483_v53  ;;  %7346 = vmatprep.mubr.msk.f32.mxu1 %vm7765_vm6, %v7766_v6 }
 0x42d   : > { %7485 = vmatprep.subr.bf16.mxu1 %v7763_v2 }
 0x42f   : > { %7347 = vmatmul.mubr.msk.f32.gmra.mrb[138].mxu1 %vm416_vm4, %v5158_v54 }
 0x430   : > { %7349 = vmatprep.mubr.msk.f32.mxu1 %vm7765_vm6, %v7766_v6 }
 0x433   : > { %7350 = vmatmul.mubr.msk.f32.gmra.mrb[140].mxu1 %vm416_vm4, %v5159_v55 }
 0x434   : > { %7356 = vmatprep.mubr.msk.f32.mxu1 %vm7765_vm6, %v7766_v6 }
 0x437   : > { %7357 = vmatmul.mubr.msk.f32.vlgmr.msra.gmra.mrb[142].mxu1 %vm416_vm4, %v4871_v46 }
 0x438   : > { %7487 = vmatpush3.bf16.msra.mxu1 %v7486_v56  ;;  %7359 = vmatprep.mubr.msk.f32.mxu1 %vm7765_vm6, %v7766_v6 }
 0x439   : > { %7488 = vmatprep.subr.bf16.mxu1 %v7763_v2 }
 0x43b   : > { %7360 = vmatmul.mubr.msk.f32.gmra.mrb[144].mxu1 %vm416_vm4, %v5256_v37 }
 0x43c   : > { %7362 = vmatprep.mubr.msk.f32.mxu1 %vm7765_vm6, %v7766_v6 }
 0x43f   : > { %7363 = vmatmul.mubr.msk.f32.gmra.mrb[146].mxu1 %vm416_vm4, %v5257_v58 }
 0x440   : > { %7369 = vmatprep.mubr.msk.f32.mxu1 %vm7765_vm6, %v7766_v6 }
 0x443   : > { %7370 = vmatmul.mubr.msk.f32.vlgmr.msra.gmra.mrb[148].mxu1 %vm416_vm4, %v9130_v33 }
 0x444   : > { %7490 = vmatpush3.bf16.msra.mxu1 %v7489_v9  ;;  %7372 = vmatprep.mubr.msk.f32.mxu1 %vm7765_vm6, %v7766_v6 }
 0x445   : > { %7491 = vmatprep.subr.bf16.mxu1 %v7763_v2 }
 0x447   : > { %7373 = vmatmul.mubr.msk.f32.gmra.mrb[150].mxu1 %vm416_vm4, %v5354_v59 }
 0x448   : > { %7375 = vmatprep.mubr.msk.f32.mxu1 %vm7765_vm6, %v7766_v6 }
 0x44b   : > { %7376 = vmatmul.mubr.msk.f32.gmra.mrb[152].mxu1 %vm416_vm4, %v5355_v10 }
 0x44c   : > { %7382 = vmatprep.mubr.msk.f32.mxu1 %vm7765_vm6, %v7766_v6 }
 0x44f   : > { %7383 = vmatmul.mubr.msk.f32.vlgmr.msra.gmra.mrb[154].mxu1 %vm416_vm4, %v5451_v62 }
 0x450   : > { %7493 = vmatpush3.bf16.msra.mxu1 %v7492_v61  ;;  %7385 = vmatprep.mubr.msk.f32.mxu1 %vm7765_vm6, %v7766_v6 }
 0x451   : > { %7494 = vmatprep.subr.bf16.mxu1 %v7763_v2 }
 0x453   : > { %7386 = vmatmul.mubr.msk.f32.gmra.mrb[156].mxu1 %vm416_vm4, %v5452_v29 }
 0x454   : > { %7388 = vmatprep.mubr.msk.f32.mxu1 %vm7765_vm6, %v7766_v6 }
 0x457   : > { %7389 = vmatmul.mubr.msk.f32.gmra.mrb[158].mxu1 %vm416_vm4, %v5453_v15 }
 0x458   : > { %7395 = vmatprep.mubr.msk.f32.mxu1 %vm7765_vm6, %v7766_v6 }
 0x45b   : > { %7396 = vmatmul.mubr.msk.f32.vlgmr.msra.gmra.mrb[160].mxu1 %vm416_vm4, %v5158_v54 }
 0x45c   : > { %7496 = vmatpush3.bf16.msra.mxu1 %v7495_v4  ;;  %7398 = vmatprep.mubr.msk.f32.mxu1 %vm7765_vm6, %v7766_v6 }
 0x45d   : > { %7497 = vmatprep.subr.bf16.mxu1 %v7763_v2 }
 0x45f   : > { %7399 = vmatmul.mubr.msk.f32.gmra.mrb[162].mxu1 %vm416_vm4, %v5550_v5 }
 0x460   : > { %7401 = vmatprep.mubr.msk.f32.mxu1 %vm7765_vm6, %v7766_v6 }
 0x463   : > { %7402 = vmatmul.mubr.msk.f32.gmra.mrb[164].mxu1 %vm416_vm4, %v5551_v22 }
 0x464   : > { %7408 = vmatprep.mubr.msk.f32.mxu1 %vm7765_vm6, %v7766_v6 }
 0x467   : > { %7409 = vmatmul.mubr.msk.f32.vlgmr.msra.gmra.mrb[166].mxu1 %vm416_vm4, %v5256_v37 }
 0x468   : > { %7411 = vmatprep.mubr.msk.f32.mxu1 %vm7765_vm6, %v7766_v6  ;;  %7499 = vmatpush3.bf16.msra.mxu1 %v7498_v0 }
 0x469   : > { %7500 = vmatprep.subr.bf16.mxu1 %v7763_v2 }
 0x46b   : > { %7412 = vmatmul.mubr.msk.f32.gmra.mrb[168].mxu1 %vm416_vm4, %v5648_v12 }
 0x46c   : > { %7414 = vmatprep.mubr.msk.f32.mxu1 %vm7765_vm6, %v7766_v6  ;;  %7502 = vmatpush3.bf16.msra.mxu1 %v7501_v1 }
 0x46f   : > { %7415 = vmatmul.mubr.msk.f32.gmra.mrb[170].mxu1 %vm416_vm4, %v5649_v23 }
 0x470   : > { %7425 = vmatprep.mubr.msk.f32.mxu1 %vm7765_vm6, %v7766_v6 }
 0x4da   : > { %v4956_v11 = vpop.f32.mrb[118].mxu1 }
 0x4db   : > { %v7306_v13 = vpop.f32.mrb[119].mxu1 }
 0x4de   : > { %v4961_v3 = vpop.f32.mrb[120].mxu1 }
 0x4df   : > { %v7309_v7 = vpop.f32.mrb[121].mxu1 }
 0x4e2   : > { %v4966_v8 = vpop.f32.mrb[122].mxu1 }
 0x4e3   : > { %v7312_v24 = vpop.f32.mrb[123].mxu1 }
 0x4e6   : > { %v5045_v25 = vpop.f32.mrb[124].mxu1 }
 0x4e7   : > { %v5046_v32 = vadd.f32 %v5045_v25, %v4956_v11  ;;  %v7319_v39 = vpop.f32.mrb[125].mxu1 }
 0x4ea   : > { %v5050_v2 = vpop.f32.mrb[126].mxu1 }
 0x4eb   : > { %v5051_v40 = vadd.f32 %v5050_v2, %v4961_v3  ;;  %v7322_v41 = vpop.f32.mrb[127].mxu1 }
 0x4ee   : > { %v5055_v42 = vpop.f32.mrb[128].mxu1 }
 0x4ef   : > { %v5056_v43 = vadd.f32 %v5055_v42, %v4966_v8  ;;  %v7325_v33 = vpop.f32.mrb[129].mxu1 }
 0x4f2   : > { %v5140_v18 = vpop.f32.mrb[130].mxu1 }
 0x4f3   : > { %v5154_v34 = vadd.f32 %v5140_v18, %v5046_v32  ;;  %v7332_v44 = vpop.f32.mrb[131].mxu1  ;;  %v6349_v32 = vld [vmem:[%s9305_s8] ss:$0 sm:$0xff] }
 0x4f6   : > { %v5145_v45 = vpop.f32.mrb[132].mxu1 }
 0x4f7   : > { %v5155_v19 = vadd.f32 %v5145_v45, %v5051_v40  ;;  %v7335_v46 = vpop.f32.mrb[133].mxu1  ;;  %v6350_v40 = vld [vmem:[%s9306_s9] ss:$0 sm:$0xff] }
 0x4fa   : > { %v5150_v35 = vpop.f32.mrb[134].mxu1 }
 0x4fb   : > { %v5156_v47 = vadd.f32 %v5150_v35, %v5056_v43  ;;  %v7338_v48 = vpop.f32.mrb[135].mxu1 }
 0x4fe   : > { %v5238_v49 = vpop.f32.mrb[136].mxu1 }
 0x4ff   : > { %v5252_v50 = vadd.f32 %v5238_v49, %v5154_v34  ;;  %v7345_v27 = vpop.f32.mrb[137].mxu1 }
 0x500   : > { %v6351_v27 = vld [vmem:[%s9308_s11] ss:$0 sm:$0xff] }
 0x502   : > { %v5243_v51 = vpop.f32.mrb[138].mxu1 }
 0x503   : > { %v5253_v52 = vadd.f32 %v5243_v51, %v5155_v19  ;;  %v7348_v26 = vpop.f32.mrb[139].mxu1 }
 0x506   : > { %v5248_v53 = vpop.f32.mrb[140].mxu1 }
 0x507   : > { %v5254_v20 = vadd.f32 %v5248_v53, %v5156_v47  ;;  %v7351_v54 = vpop.f32.mrb[141].mxu1 }
 0x50a   : > { %v5336_v36 = vpop.f32.mrb[142].mxu1 }
 0x50b   : > { %v5350_v21 = vadd.f32 %v5336_v36, %v5252_v50  ;;  %v7358_v55 = vpop.f32.mrb[143].mxu1 }
 0x50e   : > { %v5341_v56 = vpop.f32.mrb[144].mxu1 }
 0x50f   : > { %v5351_v37 = vadd.f32 %v5341_v56, %v5253_v52  ;;  %v7361_v57 = vpop.f32.mrb[145].mxu1 }
 0x512   : > { %v5346_v28 = vpop.f32.mrb[146].mxu1 }
 0x513   : > { %v5352_v58 = vadd.f32 %v5346_v28, %v5254_v20  ;;  %v7364_v9 = vpop.f32.mrb[147].mxu1 }
 0x516   : > { %v5434_v59 = vpop.f32.mrb[148].mxu1 }
 0x517   : > { %v5448_v38 = vadd.f32 %v5434_v59, %v5350_v21  ;;  %v7371_v60 = vpop.f32.mrb[149].mxu1 }
 0x51a   : > { %v5439_v10 = vpop.f32.mrb[150].mxu1 }
 0x51b   : > { %v5449_v61 = vadd.f32 %v5439_v10, %v5351_v37  ;;  %v7374_v62 = vpop.f32.mrb[151].mxu1 }
 0x51e   : > { %v5444_v29 = vpop.f32.mrb[152].mxu1 }
 0x51f   : > { %v5450_v14 = vadd.f32 %v5444_v29, %v5352_v58  ;;  %v7377_v30 = vpop.f32.mrb[153].mxu1 }
 0x522   : > { %v5532_v15 = vpop.f32.mrb[154].mxu1 }
 0x523   : > { %v5546_v4 = vadd.f32 %v5532_v15, %v5448_v38  ;;  %v7384_v5 = vpop.f32.mrb[155].mxu1  ;;  %v5890_v38 = vlaneseq }
 0x526   : > { %v5537_v22 = vpop.f32.mrb[156].mxu1 }
 0x527   : > { %v5547_v12 = vadd.f32 %v5537_v22, %v5449_v61  ;;  %v7387_v23 = vpop.f32.mrb[157].mxu1  ;;  %v5891_v61 = vand.u32 127, %v5890_v38 }
 0x52a   : > { %v5542_v16 = vpop.f32.mrb[158].mxu1 }
 0x52b   : > { %v5548_v63 = vadd.f32 %v5542_v16, %v5450_v14  ;;  %v7390_v0 = vpop.f32.mrb[159].mxu1 }
 0x52e   : > { %v5630_v17 = vpop.f32.mrb[160].mxu1 }
 0x52f   : > { %v5644_v31 = vadd.f32 %v5630_v17, %v5546_v4  ;;  %v7397_v1 = vpop.f32.mrb[161].mxu1 }
 0x532   : > { %v5635_v11 = vpop.f32.mrb[162].mxu1 }
 0x533   : > { %v5645_v13 = vadd.f32 %v5635_v11, %v5547_v12  ;;  %v7400_v3 = vpop.f32.mrb[163].mxu1 }
 0x536   : > { %v5640_v7 = vpop.f32.mrb[164].mxu1 }
 0x537   : > { %v5646_v8 = vadd.f32 %v5640_v7, %v5548_v63  ;;  %v7403_v24 = vpop.f32.mrb[165].mxu1 }
 0x53a   : > { %v5728_v25 = vpop.f32.mrb[166].mxu1 }
 0x53b   : > { %v5742_v39 = vadd.f32 %v5728_v25, %v5644_v31  ;;  %v7410_v2 = vpop.f32.mrb[167].mxu1 }
 0x53d   : > { %v5752_v41 = vadd.f32 %v6349_v32, %v5742_v39 }
 0x53e   : > { %v5733_v42 = vpop.f32.mrb[168].mxu1 }
 0x53f   : > { %vm5755_vm15 = vcmp.gt.f32.partialorder %v5752_v41, 0.0  ;;  %v5765_v43 = vmul.f32 %v6350_v40, %v5752_v41  ;;  %v5743_v33 = vadd.f32 %v5733_v42, %v5645_v13  ;;  %v7413_v18 = vpop.f32.mrb[169].mxu1 }
 0x541   : > { %v5768_v34 = vsel %vm5755_vm15, %v5752_v41, %v5765_v43  ;;  %v5753_v44 = vadd.f32 %v6349_v32, %v5743_v33 }
 0x542   : > { %v5738_v45 = vpop.f32.mrb[170].mxu1  ;;  %7426 = vmatmul.mubr.msk.f32.vlgmr.msra.gmra.mrb[172].mxu1 %vm5782_vm1, %v5768_v34 }
 0x543   : > { %v5766_v19 = vmul.f32 %v6350_v40, %v5753_v44  ;;  %v5744_v46 = vadd.f32 %v5738_v45, %v5646_v8  ;;  %v7416_v35 = vpop.f32.mrb[171].mxu1  ;;  %7428 = vmatprep.mubr.msk.f32.mxu1 %vm7765_vm6, %v7766_v6  ;;  %vm5756_vm2 = vcmp.gt.f32.partialorder %v5753_v44, 0.0 }
 0x545   : > { %v5754_v47 = vadd.f32 %v6349_v32, %v5744_v46  ;;  %v5769_v48 = vsel %vm5756_vm2, %v5753_v44, %v5766_v19 }
 0x546   : > { %7429 = vmatmul.mubr.msk.f32.gmra.mrb[174].mxu1 %vm5782_vm1, %v5769_v48 }
 0x547   : > { %v5767_v49 = vmul.f32 %v6350_v40, %v5754_v47  ;;  %7431 = vmatprep.mubr.msk.f32.mxu1 %vm7765_vm6, %v7766_v6  ;;  %vm5757_vm3 = vcmp.gt.f32.partialorder %v5754_v47, 0.0  ;;  %vm5892_vm6 = vcmp.eq.s32.totalorder %v5891_v61, 4 }
 0x549   : > { %v5770_v50 = vsel %vm5757_vm3, %v5754_v47, %v5767_v49 }
 0x54a   : > { %7432 = vmatmul.mubr.msk.f32.gmra.mrb[176].mxu1 %vm5782_vm1, %v5770_v50 }
 0x615   : > { %v5858_v51 = vpop.f32.mrb[172].mxu1 }
 0x616   : > { %v5859_v52 = vadd.f32 %v6351_v27, %v5858_v51  ;;  %v7427_v26 = vpop.f32.mrb[173].mxu1 }
 0x618   : > { %v5872_v53 = vsub.f32 0.0, %v5859_v52 }
 0x619   : > { %v5863_v20 = vpop.f32.mrb[174].mxu1 }
 0x61a   : > { %v5875_v54 = vmul.f32 1.442695, %v5872_v53  ;;  %v5864_v36 = vadd.f32 %v6351_v27, %v5863_v20  ;;  %v7430_v21 = vpop.f32.mrb[175].mxu1 }
 0x61c   : > { %7743 = vpow2.f32 %v5875_v54  ;;  %v5873_v55 = vsub.f32 0.0, %v5864_v36 }
 0x61d   : > { %v5868_v56 = vpop.f32.mrb[176].mxu1 }
 0x61e   : > { %v5877_v6 = vmul.f32 1.442695, %v5873_v55  ;;  %v5869_v37 = vadd.f32 %v6351_v27, %v5868_v56  ;;  %v7433_v57 = vpop.f32.mrb[177].mxu1 }
 0x620   : > { %7745 = vpow2.f32 %v5877_v6  ;;  %v5874_v28 = vsub.f32 0.0, %v5869_v37 }
 0x622   : > { %v5879_v58 = vmul.f32 1.442695, %v5874_v28 }
 0x624   : > { %7747 = vpow2.f32 %v5879_v58 }
 0x626   : > { %v7744_v9 = vpop.eup %7743 }
 0x627   : > { %v5881_v59 = vadd.f32 1.0, %v7744_v9 }
 0x629   : > { %7749 = vrcp.f32 %v5881_v59 }
 0x62a   : > { %v7746_v60 = vpop.eup %7745 }
 0x62b   : > { %v5882_v10 = vadd.f32 1.0, %v7746_v60 }
 0x62d   : > { %7751 = vrcp.f32 %v5882_v10 }
 0x62e   : > { %v7748_v62 = vpop.eup %7747 }
 0x62f   : > { %v5883_v29 = vadd.f32 1.0, %v7748_v62 }
 0x631   : > { %7753 = vrcp.f32 %v5883_v29 }
 0x633   : > { %v7750_v14 = vpop.eup %7749 }
 0x634   : > { %v5893_v30 = vsel %vm5892_vm6, %v7750_v14, %v5859_v52 }
 0x635   : > { %5897 = vst.msk [vmem:[%s413_s30] sm:$0xff] %vm5896_vm7, %v5893_v30 }
 0x637   : > { %v7752_v15 = vpop.eup %7751 }
 0x638   : > { %v5894_v4 = vsel %vm5892_vm6, %v7752_v15, %v5864_v36 }
 0x639   : > { %5898 = vst.msk [vmem:[%s413_s30 + $0x8] sm:$0xff] %vm5896_vm7, %v5894_v4 }
 0x63b   : > { %v7754_v5 = vpop.eup %7753 }
 0x63c   : > { %v5895_v22 = vsel %vm5892_vm6, %v7754_v5, %v5869_v37 }
 0x63d   : > { %5900 = vst.msk [vmem:[%s413_s30 + $0x10] sm:$0x1f] %vm5899_vm8, %v5895_v22 }
 0x63e PF: > { %s22_s21 = sadd.s32 1, %s7761_s21  }
 0x63f   : > { %p19_p4 = scmp.ge.s32.totalorder %s22_s21, 4  }
 0x641   :  { %21 = sbr.rel (!%p19_p4) target bundleno = 1 (0x1), region = 149 }

</bundles_post_ra>
